<compile_context>
chip_gen: v7x
topology: tpu7x:2x2x1
jax: 0.10.0
libtpu: 0.0.40
codegen_flags: <defaults>
</compile_context>

<pallas_src>
import functools

import jax
import jax.numpy as jnp
import numpy as np
from jax.experimental import pallas as pl
from jax.experimental.pallas import tpu as pltpu

# ---- static configuration (mirrors Actor(Recurrent(layer_num, state_shape, ...), action_shape)) ----
LAYER_NUM = 2           # num_layers of the LSTM
STATE_DIM = 16          # np.prod(state_shape)
ACTION_DIM = 4          # np.prod(action_shape)
HIDDEN = 128            # fc1 out / LSTM hidden size (fixed by the module)

# Matmul operand dtype (both sides are cast; accumulation stays f32).
# bf16 uses the single-pass MXU path on v5e/v6e/v7x; set to jnp.float32 for
# bit-closer (but ~3-6x slower on the MXU) matmuls.
MATMUL_DTYPE = jnp.bfloat16


def _actor_kernel(BB, T, L, H, A, D,
                  s_ref, w1p_ref, b1p_ref, whh0_ref, wcomb_ref, brest_ref,
                  h0_ref, c0_ref, w2_ref, b2_ref,
                  out_ref, hn_ref, cn_ref, pre_ref):
    """Fused Actor forward for one batch block of BB rows.

    s_ref    : (T, BB, D)       time-major input block (f32)
    w1p_ref  : (D, 4H)          fc1 folded into layer-0 gate projection (bf16)
    b1p_ref  : (1, 4H)          folded layer-0 bias (f32)
    whh0_ref : (H, 4H)          layer-0 recurrent weights, gates [i,f,o,g] (bf16)
    wcomb_ref: (L-1, 2H, 4H)    stacked [wih_l ; whh_l] for layers >= 1 (bf16)
    brest_ref: (L-1, 1, 4H)     combined biases for layers >= 1 (f32)
    h0_ref   : (L, BB, H)       initial hidden, c0_ref: (L, BB, H) (f32)
    w2_ref   : (H, A)           Actor "last" weight (bf16), b2_ref: (1, A) (f32)
    out_ref  : (BB, A)          softmax probabilities (f32)
    hn_ref   : (L, BB, H)       final hidden, cn_ref: (L, BB, H) (f32)
    pre_ref  : (T, BB, 4H)      scratch: hoisted layer-0 gate pre-activations
    """
    f32 = jnp.float32
    cdt = w1p_ref.dtype          # matmul operand dtype (bf16 by default)

    # ---- hoisted, loop-invariant layer-0 input projection (fc1 folded in) ----
    xs = s_ref[...].reshape(T * BB, D).astype(cdt)
    pre = jnp.dot(xs, w1p_ref[...], preferred_element_type=f32) + b1p_ref[...]
    pre_ref[...] = pre.reshape(T, BB, 4 * H)

    whh0 = whh0_ref[...]                                   # (H, 4H), resident
    # TODO(synk): explicit MXU weight staging of whh0/wcomb across the time
    # loop (pltpu.matmul_push_rhs / matmul_acc_lhs / matmul_pop) was skipped
    # for lowering robustness; plain jnp.dot is used instead.

    def cell(gates, c_prev):
        # gate columns are pre-permuted to [i | f | o | g]:
        # one sigmoid over 3H columns, one tanh over H (2 EUP dispatches).
        sig = jax.nn.sigmoid(gates[:, 0:3 * H])
        i_g = sig[:, 0 * H:1 * H]
        f_g = sig[:, 1 * H:2 * H]
        o_g = sig[:, 2 * H:3 * H]
        g_g = jnp.tanh(gates[:, 3 * H:4 * H])
        c_new = f_g * c_prev + i_g * g_g
        h_new = o_g * jnp.tanh(c_new)
        return h_new, c_new

    h = [h0_ref[l] for l in range(L)]
    c = [c0_ref[l] for l in range(L)]

    # ---- wavefront schedule: outer step st runs layer l at time t = st - l ----
    # Layers are visited in reverse order so layer l reads layer l-1's hidden
    # from the previous wavefront step before layer l-1 overwrites it.
    for st in range(T + L - 1):
        for l in reversed(range(L)):
            t = st - l
            if not (0 <= t < T):
                continue
            if l == 0:
                gates = pre_ref[t] + jnp.dot(
                    h[0].astype(cdt), whh0, preferred_element_type=f32)
            else:
                # combined K=2H dot: [x_t | h_{t-1}] @ [wih_l ; whh_l] + b_l
                xin = jnp.concatenate([h[l - 1], h[l]], axis=-1).astype(cdt)
                gates = jnp.dot(xin, wcomb_ref[l - 1],
                                preferred_element_type=f32) + brest_ref[l - 1]
            h[l], c[l] = cell(gates, c[l])

    for l in range(L):
        hn_ref[l] = h[l]
        cn_ref[l] = c[l]

    # ---- Actor head: last Linear + softmax over actions (f32 normalization) ----
    logits = (jnp.dot(h[L - 1].astype(cdt), w2_ref[...],
                      preferred_element_type=f32) + b2_ref[...])     # (BB, A)
    m = jnp.max(logits, axis=-1, keepdims=True)
    e = jnp.exp(logits - m)
    out_ref[...] = e / jnp.sum(e, axis=-1, keepdims=True)


def prepare_params(params):
    """One-time parameter preparation (do NOT call per forward step).

    Permutes gate columns to [i, f, o, g], folds fc1 into the layer-0 gate
    projection (exact: no activation between fc1 and the LSTM), stacks the
    layer>=1 input/recurrent weights for the combined K=2H dot, and casts the
    matmul weights to MATMUL_DTYPE (biases stay f32).
    """
    H = HIDDEN

    def permute_gates(w):
        # PyTorch gate order [i, f, g, o] -> kernel order [i, f, o, g]
        i = w[..., 0 * H:1 * H]
        f = w[..., 1 * H:2 * H]
        g = w[..., 2 * H:3 * H]
        o = w[..., 3 * H:4 * H]
        return jnp.concatenate([i, f, o, g], axis=-1)

    wih = permute_gates(params['wih'])          # (L, H, 4H)
    whh = permute_gates(params['whh'])          # (L, H, 4H)
    blstm = permute_gates(params['blstm'])      # (L, 1, 4H)
    L = wih.shape[0]

    # fc1 fold (computed in f32, then weight cast).
    w1p = (params['w1'] @ wih[0]).astype(MATMUL_DTYPE)                 # (D, 4H)
    b1p = (params['b1'] @ wih[0] + blstm[0]).astype(jnp.float32)       # (1, 4H)
    whh0 = whh[0].astype(MATMUL_DTYPE)                                 # (H, 4H)

    if L > 1:
        wcomb = jnp.concatenate([wih[1:], whh[1:]], axis=1).astype(MATMUL_DTYPE)
        brest = blstm[1:].astype(jnp.float32)                          # (L-1,1,4H)
    else:   # keep shapes non-degenerate; never read when L == 1
        wcomb = jnp.zeros((1, 2 * H, 4 * H), MATMUL_DTYPE)
        brest = jnp.zeros((1, 1, 4 * H), jnp.float32)

    return dict(w1p=w1p, b1p=b1p, whh0=whh0, wcomb=wcomb, brest=brest,
                w2=params['w2'].astype(MATMUL_DTYPE),
                b2=params['b2'].astype(jnp.float32),
                num_layers=L)


def actor_forward(s, prep, state=None):
    """Pallas-backed equivalent of Actor.forward.

    s: (B, D) or (B, T, D) float32.  `prep` comes from prepare_params().
    Returns (probs (B, A), {'h': (B, L, H), 'c': (B, L, H)}).
    """
    s = jnp.asarray(s, jnp.float32)
    if s.ndim == 2:
        s = s[:, None, :]                        # sequence length = 1
    B, T, D = s.shape
    L, H, A = prep['num_layers'], HIDDEN, ACTION_DIM

    # Batch blocking: one block of up to 128 rows per grid step (the serial
    # T-loop cost is ~independent of batch up to M~128); blocks run in
    # parallel across TensorCores on v7x.
    if B <= 128:
        BB = ((B + 7) // 8) * 8                  # pad to the f32 sublane tile
        BP = BB
    else:
        BB = 128
        BP = ((B + 127) // 128) * 128
    nb = BP // BB

    # time-major + batch-padded so every (BB, .) timestep slab is tile aligned
    s_tm = jnp.transpose(s, (1, 0, 2))           # (T, B, D)
    if BP != B:
        s_tm = jnp.pad(s_tm, ((0, 0), (0, BP - B), (0, 0)))

    if state is None:
        h0 = jnp.zeros((L, BP, H), jnp.float32)
        c0 = jnp.zeros((L, BP, H), jnp.float32)
    else:
        # module stores state batch-first (B, L, H); LSTM wants (L, B, H)
        h0 = jnp.transpose(state['h'], (1, 0, 2)).astype(jnp.float32)
        c0 = jnp.transpose(state['c'], (1, 0, 2)).astype(jnp.float32)
        if BP != B:
            h0 = jnp.pad(h0, ((0, 0), (0, BP - B), (0, 0)))
            c0 = jnp.pad(c0, ((0, 0), (0, BP - B), (0, 0)))

    kernel = functools.partial(_actor_kernel, BB, T, L, H, A, D)

    grid_spec = pltpu.PrefetchScalarGridSpec(
        num_scalar_prefetch=0,
        grid=(nb,),
        in_specs=[
            pl.BlockSpec((T, BB, D), lambda i: (0, i, 0)),               # s
            pl.BlockSpec((D, 4 * H), lambda i: (0, 0)),                  # w1p
            pl.BlockSpec((1, 4 * H), lambda i: (0, 0)),                  # b1p
            pl.BlockSpec((H, 4 * H), lambda i: (0, 0)),                  # whh0
            pl.BlockSpec(prep['wcomb'].shape, lambda i: (0, 0, 0)),      # wcomb
            pl.BlockSpec(prep['brest'].shape, lambda i: (0, 0, 0)),      # brest
            pl.BlockSpec((L, BB, H), lambda i: (0, i, 0)),               # h0
            pl.BlockSpec((L, BB, H), lambda i: (0, i, 0)),               # c0
            pl.BlockSpec((H, A), lambda i: (0, 0)),                      # w2
            pl.BlockSpec((1, A), lambda i: (0, 0)),                      # b2
        ],
        out_specs=(
            pl.BlockSpec((BB, A), lambda i: (i, 0)),                     # probs
            pl.BlockSpec((L, BB, H), lambda i: (0, i, 0)),               # h_n
            pl.BlockSpec((L, BB, H), lambda i: (0, i, 0)),               # c_n
        ),
        scratch_shapes=[pltpu.VMEM((T, BB, 4 * H), jnp.float32)],        # pre_ref
    )

    probs, h_n, c_n = pl.pallas_call(
        kernel,
        out_shape=(
            jax.ShapeDtypeStruct((BP, A), jnp.float32),
            jax.ShapeDtypeStruct((L, BP, H), jnp.float32),
            jax.ShapeDtypeStruct((L, BP, H), jnp.float32),
        ),
        grid_spec=grid_spec,
        compiler_params=pltpu.CompilerParams(
            dimension_semantics=("parallel",)),
    )(s_tm, prep['w1p'], prep['b1p'], prep['whh0'], prep['wcomb'],
      prep['brest'], h0, c0, prep['w2'], prep['b2'])

    probs = probs[:B]
    h_n = jnp.transpose(h_n[:, :B], (1, 0, 2))
    c_n = jnp.transpose(c_n[:, :B], (1, 0, 2))
    return probs, {'h': h_n, 'c': c_n}


def init_params(key):
    """Deterministic synthetic parameters (PyTorch-default-style uniform init).

    Stored in standard PyTorch layout: gate order [i, f, g, o], weights
    pre-transposed to (in, out).
    """
    D, H, A, L = STATE_DIM, HIDDEN, ACTION_DIM, LAYER_NUM
    ks = jax.random.split(key, 8)

    def u(k, shape, fan_in):
        bound = 1.0 / np.sqrt(fan_in)
        return jax.random.uniform(k, shape, jnp.float32, -bound, bound)

    w1 = u(ks[0], (D, H), D)                 # fc1: Linear(D -> H)
    b1 = u(ks[1], (1, H), D)
    wih = u(ks[2], (L, H, 4 * H), H)         # LSTM (all layers have input size H)
    whh = u(ks[3], (L, H, 4 * H), H)
    b_ih = u(ks[4], (L, 1, 4 * H), H)
    b_hh = u(ks[5], (L, 1, 4 * H), H)
    blstm = b_ih + b_hh                      # PyTorch adds both biases
    w2 = u(ks[6], (H, A), H)                 # Actor "last": Linear(H -> A)
    b2 = u(ks[7], (1, A), H)
    return dict(w1=w1, b1=b1, wih=wih, whh=whh, blstm=blstm, w2=w2, b2=b2)


def ref_forward(s, params, state=None):
    """Pure-JAX f32 reference for verification (standard PyTorch gate order)."""
    s = s.astype(jnp.float32)
    if s.ndim == 2:
        s = s[:, None, :]
    B, T, D = s.shape
    L, H = LAYER_NUM, HIDDEN
    x = s.reshape(B * T, D) @ params['w1'] + params['b1'][0]
    x = x.reshape(B, T, H)
    if state is None:
        h0 = jnp.zeros((L, B, H), jnp.float32)
        c0 = jnp.zeros((L, B, H), jnp.float32)
    else:
        h0 = jnp.transpose(state['h'], (1, 0, 2))
        c0 = jnp.transpose(state['c'], (1, 0, 2))
    h_fin, c_fin = [], []
    for l in range(L):
        h, c = h0[l], c0[l]
        outs = []
        for t in range(T):
            gates = x[:, t] @ params['wih'][l] + h @ params['whh'][l] + params['blstm'][l, 0]
            i_g = jax.nn.sigmoid(gates[:, 0 * H:1 * H])
            f_g = jax.nn.sigmoid(gates[:, 1 * H:2 * H])
            g_g = jnp.tanh(gates[:, 2 * H:3 * H])
            o_g = jax.nn.sigmoid(gates[:, 3 * H:4 * H])
            c = f_g * c + i_g * g_g
            h = o_g * jnp.tanh(c)
            outs.append(h)
        x = jnp.stack(outs, axis=1)
        h_fin.append(h)
        c_fin.append(c)
    logits = x[:, -1] @ params['w2'] + params['b2'][0]
    probs = jax.nn.softmax(logits, axis=-1)
    return probs, {'h': jnp.stack(h_fin, 1), 'c': jnp.stack(c_fin, 1)}


if __name__ == "__main__":
    key = jax.random.PRNGKey(0)
    k_param, k_s = jax.random.split(key)
    params = init_params(k_param)
    prep = prepare_params(params)            # one-time prep, reused every call

    B, T = 2, 8
    s = jax.random.normal(k_s, (B, T, STATE_DIM), jnp.float32)

    probs, new_state = actor_forward(s, prep, state=None)
    probs = jax.block_until_ready(probs)
    new_state = jax.tree_util.tree_map(jax.block_until_ready, new_state)

    # sanity check against the pure-JAX f32 reference (bf16 matmuls -> ~1e-2)
    probs_ref, st_ref = ref_forward(s, params, state=None)
    assert probs.shape == (B, ACTION_DIM)
    assert new_state['h'].shape == (B, LAYER_NUM, HIDDEN)
    assert new_state['c'].shape == (B, LAYER_NUM, HIDDEN)
    assert np.allclose(np.asarray(probs), np.asarray(probs_ref), atol=4e-2, rtol=4e-2)
    assert np.allclose(np.asarray(new_state['h']), np.asarray(st_ref['h']), atol=4e-2, rtol=4e-2)
    assert np.allclose(np.asarray(new_state['c']), np.asarray(st_ref['c']), atol=4e-2, rtol=4e-2)
    assert np.allclose(np.asarray(probs).sum(-1), 1.0, atol=1e-5)

    # also exercise the state-carrying path once
    probs2, _ = actor_forward(s, prep, state=new_state)
    probs2 = jax.block_until_ready(probs2)
    probs2_ref, _ = ref_forward(s, params, state=st_ref)
    assert np.allclose(np.asarray(probs2), np.asarray(probs2_ref), atol=5e-2, rtol=5e-2)
    assert np.allclose(np.asarray(probs2).sum(-1), 1.0, atol=1e-5)

    print("KERNEL_OK")
</pallas_src>

<mosaic_0001>
module attributes {stable_mosaic.version = 11 : i64} {
  func.func @_actor_kernel(%arg0: i32, %arg1: memref<8x8x16xf32, #tpu.memory_space<vmem>>, %arg2: memref<16x512xbf16, #tpu.memory_space<vmem>>, %arg3: memref<1x512xf32, #tpu.memory_space<vmem>>, %arg4: memref<128x512xbf16, #tpu.memory_space<vmem>>, %arg5: memref<1x256x512xbf16, #tpu.memory_space<vmem>>, %arg6: memref<1x1x512xf32, #tpu.memory_space<vmem>>, %arg7: memref<2x8x128xf32, #tpu.memory_space<vmem>>, %arg8: memref<2x8x128xf32, #tpu.memory_space<vmem>>, %arg9: memref<128x4xbf16, #tpu.memory_space<vmem>>, %arg10: memref<1x4xf32, #tpu.memory_space<vmem>>, %arg11: memref<8x4xf32, #tpu.memory_space<vmem>>, %arg12: memref<2x8x128xf32, #tpu.memory_space<vmem>>, %arg13: memref<2x8x128xf32, #tpu.memory_space<vmem>>, %arg14: memref<8x8x512xf32, #tpu.memory_space<vmem>>) attributes {dimension_semantics = [#tpu.dimension_semantics<parallel>], iteration_bounds = array<i64: 1>, scalar_prefetch = 0 : i64, scratch_operands = 1 : i64, tpu.core_type = #tpu.core_type<tc>, window_params = [{transform_indices = @transform_0, window_bounds = array<i64: 8, 8, 16>}, {pipeline_mode = #tpu.pipeline_mode<synchronous>, transform_indices = @transform_1, window_bounds = array<i64: 16, 512>}, {pipeline_mode = #tpu.pipeline_mode<synchronous>, transform_indices = @transform_2, window_bounds = array<i64: 1, 512>}, {pipeline_mode = #tpu.pipeline_mode<synchronous>, transform_indices = @transform_3, window_bounds = array<i64: 128, 512>}, {pipeline_mode = #tpu.pipeline_mode<synchronous>, transform_indices = @transform_4, window_bounds = array<i64: 1, 256, 512>}, {pipeline_mode = #tpu.pipeline_mode<synchronous>, transform_indices = @transform_5, window_bounds = array<i64: 1, 1, 512>}, {transform_indices = @transform_6, window_bounds = array<i64: 2, 8, 128>}, {transform_indices = @transform_7, window_bounds = array<i64: 2, 8, 128>}, {pipeline_mode = #tpu.pipeline_mode<synchronous>, transform_indices = @transform_8, window_bounds = array<i64: 128, 4>}, {pipeline_mode = #tpu.pipeline_mode<synchronous>, transform_indices = @transform_9, window_bounds = array<i64: 1, 4>}, {transform_indices = @transform_10, window_bounds = array<i64: 8, 4>}, {transform_indices = @transform_11, window_bounds = array<i64: 2, 8, 128>}, {transform_indices = @transform_12, window_bounds = array<i64: 2, 8, 128>}]} {
    %c0 = arith.constant 0 : index
    %c0_0 = arith.constant 0 : index
    %c0_1 = arith.constant 0 : index
    %0 = vector.load %arg1[%c0, %c0_0, %c0_1] : memref<8x8x16xf32, #tpu.memory_space<vmem>>, vector<8x8x16xf32>
    %1 = vector.shape_cast %0 : vector<8x8x16xf32> to vector<64x16xf32>
    %2 = arith.truncf %1 : vector<64x16xf32> to vector<64x16xbf16>
    %c0_2 = arith.constant 0 : index
    %c0_3 = arith.constant 0 : index
    %3 = vector.load %arg2[%c0_2, %c0_3] : memref<16x512xbf16, #tpu.memory_space<vmem>>, vector<16x512xbf16>
    %cst = arith.constant dense<0.000000e+00> : vector<64x512xf32>
    %4 = tpu.matmul %2, %3, %cst {dimension_numbers = #tpu.dot_dimension_numbers<[1], [0], [0], [1], [0, 0, 1, 1], [], []>} : vector<64x16xbf16>, vector<16x512xbf16>, vector<64x512xf32> -> vector<64x512xf32>
    %c0_4 = arith.constant 0 : index
    %c0_5 = arith.constant 0 : index
    %5 = vector.load %arg3[%c0_4, %c0_5] : memref<1x512xf32, #tpu.memory_space<vmem>>, vector<1x512xf32>
    %6 = vector.broadcast %5 : vector<1x512xf32> to vector<64x512xf32>
    %7 = arith.addf %4, %6 : vector<64x512xf32>
    %8 = vector.shape_cast %7 : vector<64x512xf32> to vector<8x8x512xf32>
    %c0_6 = arith.constant 0 : index
    %c0_7 = arith.constant 0 : index
    %c0_8 = arith.constant 0 : index
    %9 = vector.load %arg14[%c0_6, %c0_7, %c0_8] : memref<8x8x512xf32, #tpu.memory_space<vmem>>, vector<8x8x512xf32>
    tpu.vector_store %arg14[%c0_6, %c0_7, %c0_8], %8 {strides = array<i32>} : memref<8x8x512xf32, #tpu.memory_space<vmem>>, vector<8x8x512xf32>,
    %c0_9 = arith.constant 0 : index
    %c0_10 = arith.constant 0 : index
    %10 = vector.load %arg4[%c0_9, %c0_10] : memref<128x512xbf16, #tpu.memory_space<vmem>>, vector<128x512xbf16>
    %c0_11 = arith.constant 0 : index
    %c0_12 = arith.constant 0 : index
    %c0_13 = arith.constant 0 : index
    %11 = vector.load %arg7[%c0_11, %c0_12, %c0_13] : memref<2x8x128xf32, #tpu.memory_space<vmem>>, vector<1x8x128xf32>
    %12 = vector.shape_cast %11 : vector<1x8x128xf32> to vector<8x128xf32>
    %c1 = arith.constant 1 : index
    %c0_14 = arith.constant 0 : index
    %c0_15 = arith.constant 0 : index
    %13 = vector.load %arg7[%c1, %c0_14, %c0_15] : memref<2x8x128xf32, #tpu.memory_space<vmem>>, vector<1x8x128xf32>
    %14 = vector.shape_cast %13 : vector<1x8x128xf32> to vector<8x128xf32>
    %c0_16 = arith.constant 0 : index
    %c0_17 = arith.constant 0 : index
    %c0_18 = arith.constant 0 : index
    %15 = vector.load %arg8[%c0_16, %c0_17, %c0_18] : memref<2x8x128xf32, #tpu.memory_space<vmem>>, vector<1x8x128xf32>
    %16 = vector.shape_cast %15 : vector<1x8x128xf32> to vector<8x128xf32>
    %c1_19 = arith.constant 1 : index
    %c0_20 = arith.constant 0 : index
    %c0_21 = arith.constant 0 : index
    %17 = vector.load %arg8[%c1_19, %c0_20, %c0_21] : memref<2x8x128xf32, #tpu.memory_space<vmem>>, vector<1x8x128xf32>
    %18 = vector.shape_cast %17 : vector<1x8x128xf32> to vector<8x128xf32>
    %c0_22 = arith.constant 0 : index
    %c0_23 = arith.constant 0 : index
    %c0_24 = arith.constant 0 : index
    %19 = vector.load %arg14[%c0_22, %c0_23, %c0_24] : memref<8x8x512xf32, #tpu.memory_space<vmem>>, vector<1x8x512xf32>
    %20 = vector.shape_cast %19 : vector<1x8x512xf32> to vector<8x512xf32>
    %21 = arith.truncf %12 : vector<8x128xf32> to vector<8x128xbf16>
    %cst_25 = arith.constant dense<0.000000e+00> : vector<8x512xf32>
    %22 = tpu.matmul %21, %10, %cst_25 {dimension_numbers = #tpu.dot_dimension_numbers<[1], [0], [0], [1], [0, 0, 1, 1], [], []>} : vector<8x128xbf16>, vector<128x512xbf16>, vector<8x512xf32> -> vector<8x512xf32>
    %23 = arith.addf %20, %22 : vector<8x512xf32>
    %24 = vector.extract_strided_slice %23 {offsets = [0, 0], sizes = [8, 384], strides = [1, 1]} : vector<8x512xf32> to vector<8x384xf32>
    %25 = arith.negf %24 : vector<8x384xf32>
    %26 = math.exp %25 : vector<8x384xf32>
    %cst_26 = arith.constant 1.000000e+00 : f32
    %27 = vector.broadcast %cst_26 : f32 to vector<8x384xf32>
    %28 = arith.addf %27, %26 : vector<8x384xf32>
    %29 = arith.divf %27, %28 : vector<8x384xf32>
    %30 = vector.extract_strided_slice %29 {offsets = [0, 0], sizes = [8, 128], strides = [1, 1]} : vector<8x384xf32> to vector<8x128xf32>
    %31 = vector.extract_strided_slice %29 {offsets = [0, 128], sizes = [8, 128], strides = [1, 1]} : vector<8x384xf32> to vector<8x128xf32>
    %32 = vector.extract_strided_slice %29 {offsets = [0, 256], sizes = [8, 128], strides = [1, 1]} : vector<8x384xf32> to vector<8x128xf32>
    %33 = vector.extract_strided_slice %23 {offsets = [0, 384], sizes = [8, 128], strides = [1, 1]} : vector<8x512xf32> to vector<8x128xf32>
    %34 = math.tanh %33 : vector<8x128xf32>
    %35 = arith.mulf %31, %16 : vector<8x128xf32>
    %36 = arith.mulf %30, %34 : vector<8x128xf32>
    %37 = arith.addf %35, %36 : vector<8x128xf32>
    %38 = math.tanh %37 : vector<8x128xf32>
    %39 = arith.mulf %32, %38 : vector<8x128xf32>
    %40 = tpu.concatenate %39, %14 in 1 : vector<8x128xf32>, vector<8x128xf32> -> vector<8x256xf32>
    %41 = arith.truncf %40 : vector<8x256xf32> to vector<8x256xbf16>
    %c0_27 = arith.constant 0 : index
    %c0_28 = arith.constant 0 : index
    %c0_29 = arith.constant 0 : index
    %42 = vector.load %arg5[%c0_27, %c0_28, %c0_29] : memref<1x256x512xbf16, #tpu.memory_space<vmem>>, vector<1x256x512xbf16>
    %43 = vector.shape_cast %42 : vector<1x256x512xbf16> to vector<256x512xbf16>
    %cst_30 = arith.constant dense<0.000000e+00> : vector<8x512xf32>
    %44 = tpu.matmul %41, %43, %cst_30 {dimension_numbers = #tpu.dot_dimension_numbers<[1], [0], [0], [1], [0, 0, 1, 1], [], []>} : vector<8x256xbf16>, vector<256x512xbf16>, vector<8x512xf32> -> vector<8x512xf32>
    %c0_31 = arith.constant 0 : index
    %c0_32 = arith.constant 0 : index
    %c0_33 = arith.constant 0 : index
    %45 = vector.load %arg6[%c0_31, %c0_32, %c0_33] : memref<1x1x512xf32, #tpu.memory_space<vmem>>, vector<1x1x512xf32>
    %46 = vector.shape_cast %45 : vector<1x1x512xf32> to vector<1x512xf32>
    %47 = vector.broadcast %46 : vector<1x512xf32> to vector<8x512xf32>
    %48 = arith.addf %44, %47 : vector<8x512xf32>
    %49 = vector.extract_strided_slice %48 {offsets = [0, 0], sizes = [8, 384], strides = [1, 1]} : vector<8x512xf32> to vector<8x384xf32>
    %50 = arith.negf %49 : vector<8x384xf32>
    %51 = math.exp %50 : vector<8x384xf32>
    %cst_34 = arith.constant 1.000000e+00 : f32
    %52 = vector.broadcast %cst_34 : f32 to vector<8x384xf32>
    %53 = arith.addf %52, %51 : vector<8x384xf32>
    %54 = arith.divf %52, %53 : vector<8x384xf32>
    %55 = vector.extract_strided_slice %54 {offsets = [0, 0], sizes = [8, 128], strides = [1, 1]} : vector<8x384xf32> to vector<8x128xf32>
    %56 = vector.extract_strided_slice %54 {offsets = [0, 128], sizes = [8, 128], strides = [1, 1]} : vector<8x384xf32> to vector<8x128xf32>
    %57 = vector.extract_strided_slice %54 {offsets = [0, 256], sizes = [8, 128], strides = [1, 1]} : vector<8x384xf32> to vector<8x128xf32>
    %58 = vector.extract_strided_slice %48 {offsets = [0, 384], sizes = [8, 128], strides = [1, 1]} : vector<8x512xf32> to vector<8x128xf32>
    %59 = math.tanh %58 : vector<8x128xf32>
    %60 = arith.mulf %56, %18 : vector<8x128xf32>
    %61 = arith.mulf %55, %59 : vector<8x128xf32>
    %62 = arith.addf %60, %61 : vector<8x128xf32>
    %63 = math.tanh %62 : vector<8x128xf32>
    %64 = arith.mulf %57, %63 : vector<8x128xf32>
    %c1_35 = arith.constant 1 : index
    %c0_36 = arith.constant 0 : index
    %c0_37 = arith.constant 0 : index
    %65 = vector.load %arg14[%c1_35, %c0_36, %c0_37] : memref<8x8x512xf32, #tpu.memory_space<vmem>>, vector<1x8x512xf32>
    %66 = vector.shape_cast %65 : vector<1x8x512xf32> to vector<8x512xf32>
    %67 = arith.truncf %39 : vector<8x128xf32> to vector<8x128xbf16>
    %cst_38 = arith.constant dense<0.000000e+00> : vector<8x512xf32>
    %68 = tpu.matmul %67, %10, %cst_38 {dimension_numbers = #tpu.dot_dimension_numbers<[1], [0], [0], [1], [0, 0, 1, 1], [], []>} : vector<8x128xbf16>, vector<128x512xbf16>, vector<8x512xf32> -> vector<8x512xf32>
    %69 = arith.addf %66, %68 : vector<8x512xf32>
    %70 = vector.extract_strided_slice %69 {offsets = [0, 0], sizes = [8, 384], strides = [1, 1]} : vector<8x512xf32> to vector<8x384xf32>
    %71 = arith.negf %70 : vector<8x384xf32>
    %72 = math.exp %71 : vector<8x384xf32>
    %cst_39 = arith.constant 1.000000e+00 : f32
    %73 = vector.broadcast %cst_39 : f32 to vector<8x384xf32>
    %74 = arith.addf %73, %72 : vector<8x384xf32>
    %75 = arith.divf %73, %74 : vector<8x384xf32>
    %76 = vector.extract_strided_slice %75 {offsets = [0, 0], sizes = [8, 128], strides = [1, 1]} : vector<8x384xf32> to vector<8x128xf32>
    %77 = vector.extract_strided_slice %75 {offsets = [0, 128], sizes = [8, 128], strides = [1, 1]} : vector<8x384xf32> to vector<8x128xf32>
    %78 = vector.extract_strided_slice %75 {offsets = [0, 256], sizes = [8, 128], strides = [1, 1]} : vector<8x384xf32> to vector<8x128xf32>
    %79 = vector.extract_strided_slice %69 {offsets = [0, 384], sizes = [8, 128], strides = [1, 1]} : vector<8x512xf32> to vector<8x128xf32>
    %80 = math.tanh %79 : vector<8x128xf32>
    %81 = arith.mulf %77, %37 : vector<8x128xf32>
    %82 = arith.mulf %76, %80 : vector<8x128xf32>
    %83 = arith.addf %81, %82 : vector<8x128xf32>
    %84 = math.tanh %83 : vector<8x128xf32>
    %85 = arith.mulf %78, %84 : vector<8x128xf32>
    %86 = tpu.concatenate %85, %64 in 1 : vector<8x128xf32>, vector<8x128xf32> -> vector<8x256xf32>
    %87 = arith.truncf %86 : vector<8x256xf32> to vector<8x256xbf16>
    %c0_40 = arith.constant 0 : index
    %c0_41 = arith.constant 0 : index
    %c0_42 = arith.constant 0 : index
    %88 = vector.load %arg5[%c0_40, %c0_41, %c0_42] : memref<1x256x512xbf16, #tpu.memory_space<vmem>>, vector<1x256x512xbf16>
    %89 = vector.shape_cast %88 : vector<1x256x512xbf16> to vector<256x512xbf16>
    %cst_43 = arith.constant dense<0.000000e+00> : vector<8x512xf32>
    %90 = tpu.matmul %87, %89, %cst_43 {dimension_numbers = #tpu.dot_dimension_numbers<[1], [0], [0], [1], [0, 0, 1, 1], [], []>} : vector<8x256xbf16>, vector<256x512xbf16>, vector<8x512xf32> -> vector<8x512xf32>
    %c0_44 = arith.constant 0 : index
    %c0_45 = arith.constant 0 : index
    %c0_46 = arith.constant 0 : index
    %91 = vector.load %arg6[%c0_44, %c0_45, %c0_46] : memref<1x1x512xf32, #tpu.memory_space<vmem>>, vector<1x1x512xf32>
    %92 = vector.shape_cast %91 : vector<1x1x512xf32> to vector<1x512xf32>
    %93 = vector.broadcast %92 : vector<1x512xf32> to vector<8x512xf32>
    %94 = arith.addf %90, %93 : vector<8x512xf32>
    %95 = vector.extract_strided_slice %94 {offsets = [0, 0], sizes = [8, 384], strides = [1, 1]} : vector<8x512xf32> to vector<8x384xf32>
    %96 = arith.negf %95 : vector<8x384xf32>
    %97 = math.exp %96 : vector<8x384xf32>
    %cst_47 = arith.constant 1.000000e+00 : f32
    %98 = vector.broadcast %cst_47 : f32 to vector<8x384xf32>
    %99 = arith.addf %98, %97 : vector<8x384xf32>
    %100 = arith.divf %98, %99 : vector<8x384xf32>
    %101 = vector.extract_strided_slice %100 {offsets = [0, 0], sizes = [8, 128], strides = [1, 1]} : vector<8x384xf32> to vector<8x128xf32>
    %102 = vector.extract_strided_slice %100 {offsets = [0, 128], sizes = [8, 128], strides = [1, 1]} : vector<8x384xf32> to vector<8x128xf32>
    %103 = vector.extract_strided_slice %100 {offsets = [0, 256], sizes = [8, 128], strides = [1, 1]} : vector<8x384xf32> to vector<8x128xf32>
    %104 = vector.extract_strided_slice %94 {offsets = [0, 384], sizes = [8, 128], strides = [1, 1]} : vector<8x512xf32> to vector<8x128xf32>
    %105 = math.tanh %104 : vector<8x128xf32>
    %106 = arith.mulf %102, %62 : vector<8x128xf32>
    %107 = arith.mulf %101, %105 : vector<8x128xf32>
    %108 = arith.addf %106, %107 : vector<8x128xf32>
    %109 = math.tanh %108 : vector<8x128xf32>
    %110 = arith.mulf %103, %109 : vector<8x128xf32>
    %c2 = arith.constant 2 : index
    %c0_48 = arith.constant 0 : index
    %c0_49 = arith.constant 0 : index
    %111 = vector.load %arg14[%c2, %c0_48, %c0_49] : memref<8x8x512xf32, #tpu.memory_space<vmem>>, vector<1x8x512xf32>
    %112 = vector.shape_cast %111 : vector<1x8x512xf32> to vector<8x512xf32>
    %113 = arith.truncf %85 : vector<8x128xf32> to vector<8x128xbf16>
    %cst_50 = arith.constant dense<0.000000e+00> : vector<8x512xf32>
    %114 = tpu.matmul %113, %10, %cst_50 {dimension_numbers = #tpu.dot_dimension_numbers<[1], [0], [0], [1], [0, 0, 1, 1], [], []>} : vector<8x128xbf16>, vector<128x512xbf16>, vector<8x512xf32> -> vector<8x512xf32>
    %115 = arith.addf %112, %114 : vector<8x512xf32>
    %116 = vector.extract_strided_slice %115 {offsets = [0, 0], sizes = [8, 384], strides = [1, 1]} : vector<8x512xf32> to vector<8x384xf32>
    %117 = arith.negf %116 : vector<8x384xf32>
    %118 = math.exp %117 : vector<8x384xf32>
    %cst_51 = arith.constant 1.000000e+00 : f32
    %119 = vector.broadcast %cst_51 : f32 to vector<8x384xf32>
    %120 = arith.addf %119, %118 : vector<8x384xf32>
    %121 = arith.divf %119, %120 : vector<8x384xf32>
    %122 = vector.extract_strided_slice %121 {offsets = [0, 0], sizes = [8, 128], strides = [1, 1]} : vector<8x384xf32> to vector<8x128xf32>
    %123 = vector.extract_strided_slice %121 {offsets = [0, 128], sizes = [8, 128], strides = [1, 1]} : vector<8x384xf32> to vector<8x128xf32>
    %124 = vector.extract_strided_slice %121 {offsets = [0, 256], sizes = [8, 128], strides = [1, 1]} : vector<8x384xf32> to vector<8x128xf32>
    %125 = vector.extract_strided_slice %115 {offsets = [0, 384], sizes = [8, 128], strides = [1, 1]} : vector<8x512xf32> to vector<8x128xf32>
    %126 = math.tanh %125 : vector<8x128xf32>
    %127 = arith.mulf %123, %83 : vector<8x128xf32>
    %128 = arith.mulf %122, %126 : vector<8x128xf32>
    %129 = arith.addf %127, %128 : vector<8x128xf32>
    %130 = math.tanh %129 : vector<8x128xf32>
    %131 = arith.mulf %124, %130 : vector<8x128xf32>
    %132 = tpu.concatenate %131, %110 in 1 : vector<8x128xf32>, vector<8x128xf32> -> vector<8x256xf32>
    %133 = arith.truncf %132 : vector<8x256xf32> to vector<8x256xbf16>
    %c0_52 = arith.constant 0 : index
    %c0_53 = arith.constant 0 : index
    %c0_54 = arith.constant 0 : index
    %134 = vector.load %arg5[%c0_52, %c0_53, %c0_54] : memref<1x256x512xbf16, #tpu.memory_space<vmem>>, vector<1x256x512xbf16>
    %135 = vector.shape_cast %134 : vector<1x256x512xbf16> to vector<256x512xbf16>
    %cst_55 = arith.constant dense<0.000000e+00> : vector<8x512xf32>
    %136 = tpu.matmul %133, %135, %cst_55 {dimension_numbers = #tpu.dot_dimension_numbers<[1], [0], [0], [1], [0, 0, 1, 1], [], []>} : vector<8x256xbf16>, vector<256x512xbf16>, vector<8x512xf32> -> vector<8x512xf32>
    %c0_56 = arith.constant 0 : index
    %c0_57 = arith.constant 0 : index
    %c0_58 = arith.constant 0 : index
    %137 = vector.load %arg6[%c0_56, %c0_57, %c0_58] : memref<1x1x512xf32, #tpu.memory_space<vmem>>, vector<1x1x512xf32>
    %138 = vector.shape_cast %137 : vector<1x1x512xf32> to vector<1x512xf32>
    %139 = vector.broadcast %138 : vector<1x512xf32> to vector<8x512xf32>
    %140 = arith.addf %136, %139 : vector<8x512xf32>
    %141 = vector.extract_strided_slice %140 {offsets = [0, 0], sizes = [8, 384], strides = [1, 1]} : vector<8x512xf32> to vector<8x384xf32>
    %142 = arith.negf %141 : vector<8x384xf32>
    %143 = math.exp %142 : vector<8x384xf32>
    %cst_59 = arith.constant 1.000000e+00 : f32
    %144 = vector.broadcast %cst_59 : f32 to vector<8x384xf32>
    %145 = arith.addf %144, %143 : vector<8x384xf32>
    %146 = arith.divf %144, %145 : vector<8x384xf32>
    %147 = vector.extract_strided_slice %146 {offsets = [0, 0], sizes = [8, 128], strides = [1, 1]} : vector<8x384xf32> to vector<8x128xf32>
    %148 = vector.extract_strided_slice %146 {offsets = [0, 128], sizes = [8, 128], strides = [1, 1]} : vector<8x384xf32> to vector<8x128xf32>
    %149 = vector.extract_strided_slice %146 {offsets = [0, 256], sizes = [8, 128], strides = [1, 1]} : vector<8x384xf32> to vector<8x128xf32>
    %150 = vector.extract_strided_slice %140 {offsets = [0, 384], sizes = [8, 128], strides = [1, 1]} : vector<8x512xf32> to vector<8x128xf32>
    %151 = math.tanh %150 : vector<8x128xf32>
    %152 = arith.mulf %148, %108 : vector<8x128xf32>
    %153 = arith.mulf %147, %151 : vector<8x128xf32>
    %154 = arith.addf %152, %153 : vector<8x128xf32>
    %155 = math.tanh %154 : vector<8x128xf32>
    %156 = arith.mulf %149, %155 : vector<8x128xf32>
    %c3 = arith.constant 3 : index
    %c0_60 = arith.constant 0 : index
    %c0_61 = arith.constant 0 : index
    %157 = vector.load %arg14[%c3, %c0_60, %c0_61] : memref<8x8x512xf32, #tpu.memory_space<vmem>>, vector<1x8x512xf32>
    %158 = vector.shape_cast %157 : vector<1x8x512xf32> to vector<8x512xf32>
    %159 = arith.truncf %131 : vector<8x128xf32> to vector<8x128xbf16>
    %cst_62 = arith.constant dense<0.000000e+00> : vector<8x512xf32>
    %160 = tpu.matmul %159, %10, %cst_62 {dimension_numbers = #tpu.dot_dimension_numbers<[1], [0], [0], [1], [0, 0, 1, 1], [], []>} : vector<8x128xbf16>, vector<128x512xbf16>, vector<8x512xf32> -> vector<8x512xf32>
    %161 = arith.addf %158, %160 : vector<8x512xf32>
    %162 = vector.extract_strided_slice %161 {offsets = [0, 0], sizes = [8, 384], strides = [1, 1]} : vector<8x512xf32> to vector<8x384xf32>
    %163 = arith.negf %162 : vector<8x384xf32>
    %164 = math.exp %163 : vector<8x384xf32>
    %cst_63 = arith.constant 1.000000e+00 : f32
    %165 = vector.broadcast %cst_63 : f32 to vector<8x384xf32>
    %166 = arith.addf %165, %164 : vector<8x384xf32>
    %167 = arith.divf %165, %166 : vector<8x384xf32>
    %168 = vector.extract_strided_slice %167 {offsets = [0, 0], sizes = [8, 128], strides = [1, 1]} : vector<8x384xf32> to vector<8x128xf32>
    %169 = vector.extract_strided_slice %167 {offsets = [0, 128], sizes = [8, 128], strides = [1, 1]} : vector<8x384xf32> to vector<8x128xf32>
    %170 = vector.extract_strided_slice %167 {offsets = [0, 256], sizes = [8, 128], strides = [1, 1]} : vector<8x384xf32> to vector<8x128xf32>
    %171 = vector.extract_strided_slice %161 {offsets = [0, 384], sizes = [8, 128], strides = [1, 1]} : vector<8x512xf32> to vector<8x128xf32>
    %172 = math.tanh %171 : vector<8x128xf32>
    %173 = arith.mulf %169, %129 : vector<8x128xf32>
    %174 = arith.mulf %168, %172 : vector<8x128xf32>
    %175 = arith.addf %173, %174 : vector<8x128xf32>
    %176 = math.tanh %175 : vector<8x128xf32>
    %177 = arith.mulf %170, %176 : vector<8x128xf32>
    %178 = tpu.concatenate %177, %156 in 1 : vector<8x128xf32>, vector<8x128xf32> -> vector<8x256xf32>
    %179 = arith.truncf %178 : vector<8x256xf32> to vector<8x256xbf16>
    %c0_64 = arith.constant 0 : index
    %c0_65 = arith.constant 0 : index
    %c0_66 = arith.constant 0 : index
    %180 = vector.load %arg5[%c0_64, %c0_65, %c0_66] : memref<1x256x512xbf16, #tpu.memory_space<vmem>>, vector<1x256x512xbf16>
    %181 = vector.shape_cast %180 : vector<1x256x512xbf16> to vector<256x512xbf16>
    %cst_67 = arith.constant dense<0.000000e+00> : vector<8x512xf32>
    %182 = tpu.matmul %179, %181, %cst_67 {dimension_numbers = #tpu.dot_dimension_numbers<[1], [0], [0], [1], [0, 0, 1, 1], [], []>} : vector<8x256xbf16>, vector<256x512xbf16>, vector<8x512xf32> -> vector<8x512xf32>
    %c0_68 = arith.constant 0 : index
    %c0_69 = arith.constant 0 : index
    %c0_70 = arith.constant 0 : index
    %183 = vector.load %arg6[%c0_68, %c0_69, %c0_70] : memref<1x1x512xf32, #tpu.memory_space<vmem>>, vector<1x1x512xf32>
    %184 = vector.shape_cast %183 : vector<1x1x512xf32> to vector<1x512xf32>
    %185 = vector.broadcast %184 : vector<1x512xf32> to vector<8x512xf32>
    %186 = arith.addf %182, %185 : vector<8x512xf32>
    %187 = vector.extract_strided_slice %186 {offsets = [0, 0], sizes = [8, 384], strides = [1, 1]} : vector<8x512xf32> to vector<8x384xf32>
    %188 = arith.negf %187 : vector<8x384xf32>
    %189 = math.exp %188 : vector<8x384xf32>
    %cst_71 = arith.constant 1.000000e+00 : f32
    %190 = vector.broadcast %cst_71 : f32 to vector<8x384xf32>
    %191 = arith.addf %190, %189 : vector<8x384xf32>
    %192 = arith.divf %190, %191 : vector<8x384xf32>
    %193 = vector.extract_strided_slice %192 {offsets = [0, 0], sizes = [8, 128], strides = [1, 1]} : vector<8x384xf32> to vector<8x128xf32>
    %194 = vector.extract_strided_slice %192 {offsets = [0, 128], sizes = [8, 128], strides = [1, 1]} : vector<8x384xf32> to vector<8x128xf32>
    %195 = vector.extract_strided_slice %192 {offsets = [0, 256], sizes = [8, 128], strides = [1, 1]} : vector<8x384xf32> to vector<8x128xf32>
    %196 = vector.extract_strided_slice %186 {offsets = [0, 384], sizes = [8, 128], strides = [1, 1]} : vector<8x512xf32> to vector<8x128xf32>
    %197 = math.tanh %196 : vector<8x128xf32>
    %198 = arith.mulf %194, %154 : vector<8x128xf32>
    %199 = arith.mulf %193, %197 : vector<8x128xf32>
    %200 = arith.addf %198, %199 : vector<8x128xf32>
    %201 = math.tanh %200 : vector<8x128xf32>
    %202 = arith.mulf %195, %201 : vector<8x128xf32>
    %c4 = arith.constant 4 : index
    %c0_72 = arith.constant 0 : index
    %c0_73 = arith.constant 0 : index
    %203 = vector.load %arg14[%c4, %c0_72, %c0_73] : memref<8x8x512xf32, #tpu.memory_space<vmem>>, vector<1x8x512xf32>
    %204 = vector.shape_cast %203 : vector<1x8x512xf32> to vector<8x512xf32>
    %205 = arith.truncf %177 : vector<8x128xf32> to vector<8x128xbf16>
    %cst_74 = arith.constant dense<0.000000e+00> : vector<8x512xf32>
    %206 = tpu.matmul %205, %10, %cst_74 {dimension_numbers = #tpu.dot_dimension_numbers<[1], [0], [0], [1], [0, 0, 1, 1], [], []>} : vector<8x128xbf16>, vector<128x512xbf16>, vector<8x512xf32> -> vector<8x512xf32>
    %207 = arith.addf %204, %206 : vector<8x512xf32>
    %208 = vector.extract_strided_slice %207 {offsets = [0, 0], sizes = [8, 384], strides = [1, 1]} : vector<8x512xf32> to vector<8x384xf32>
    %209 = arith.negf %208 : vector<8x384xf32>
    %210 = math.exp %209 : vector<8x384xf32>
    %cst_75 = arith.constant 1.000000e+00 : f32
    %211 = vector.broadcast %cst_75 : f32 to vector<8x384xf32>
    %212 = arith.addf %211, %210 : vector<8x384xf32>
    %213 = arith.divf %211, %212 : vector<8x384xf32>
    %214 = vector.extract_strided_slice %213 {offsets = [0, 0], sizes = [8, 128], strides = [1, 1]} : vector<8x384xf32> to vector<8x128xf32>
    %215 = vector.extract_strided_slice %213 {offsets = [0, 128], sizes = [8, 128], strides = [1, 1]} : vector<8x384xf32> to vector<8x128xf32>
    %216 = vector.extract_strided_slice %213 {offsets = [0, 256], sizes = [8, 128], strides = [1, 1]} : vector<8x384xf32> to vector<8x128xf32>
    %217 = vector.extract_strided_slice %207 {offsets = [0, 384], sizes = [8, 128], strides = [1, 1]} : vector<8x512xf32> to vector<8x128xf32>
    %218 = math.tanh %217 : vector<8x128xf32>
    %219 = arith.mulf %215, %175 : vector<8x128xf32>
    %220 = arith.mulf %214, %218 : vector<8x128xf32>
    %221 = arith.addf %219, %220 : vector<8x128xf32>
    %222 = math.tanh %221 : vector<8x128xf32>
    %223 = arith.mulf %216, %222 : vector<8x128xf32>
    %224 = tpu.concatenate %223, %202 in 1 : vector<8x128xf32>, vector<8x128xf32> -> vector<8x256xf32>
    %225 = arith.truncf %224 : vector<8x256xf32> to vector<8x256xbf16>
    %c0_76 = arith.constant 0 : index
    %c0_77 = arith.constant 0 : index
    %c0_78 = arith.constant 0 : index
    %226 = vector.load %arg5[%c0_76, %c0_77, %c0_78] : memref<1x256x512xbf16, #tpu.memory_space<vmem>>, vector<1x256x512xbf16>
    %227 = vector.shape_cast %226 : vector<1x256x512xbf16> to vector<256x512xbf16>
    %cst_79 = arith.constant dense<0.000000e+00> : vector<8x512xf32>
    %228 = tpu.matmul %225, %227, %cst_79 {dimension_numbers = #tpu.dot_dimension_numbers<[1], [0], [0], [1], [0, 0, 1, 1], [], []>} : vector<8x256xbf16>, vector<256x512xbf16>, vector<8x512xf32> -> vector<8x512xf32>
    %c0_80 = arith.constant 0 : index
    %c0_81 = arith.constant 0 : index
    %c0_82 = arith.constant 0 : index
    %229 = vector.load %arg6[%c0_80, %c0_81, %c0_82] : memref<1x1x512xf32, #tpu.memory_space<vmem>>, vector<1x1x512xf32>
    %230 = vector.shape_cast %229 : vector<1x1x512xf32> to vector<1x512xf32>
    %231 = vector.broadcast %230 : vector<1x512xf32> to vector<8x512xf32>
    %232 = arith.addf %228, %231 : vector<8x512xf32>
    %233 = vector.extract_strided_slice %232 {offsets = [0, 0], sizes = [8, 384], strides = [1, 1]} : vector<8x512xf32> to vector<8x384xf32>
    %234 = arith.negf %233 : vector<8x384xf32>
    %235 = math.exp %234 : vector<8x384xf32>
    %cst_83 = arith.constant 1.000000e+00 : f32
    %236 = vector.broadcast %cst_83 : f32 to vector<8x384xf32>
    %237 = arith.addf %236, %235 : vector<8x384xf32>
    %238 = arith.divf %236, %237 : vector<8x384xf32>
    %239 = vector.extract_strided_slice %238 {offsets = [0, 0], sizes = [8, 128], strides = [1, 1]} : vector<8x384xf32> to vector<8x128xf32>
    %240 = vector.extract_strided_slice %238 {offsets = [0, 128], sizes = [8, 128], strides = [1, 1]} : vector<8x384xf32> to vector<8x128xf32>
    %241 = vector.extract_strided_slice %238 {offsets = [0, 256], sizes = [8, 128], strides = [1, 1]} : vector<8x384xf32> to vector<8x128xf32>
    %242 = vector.extract_strided_slice %232 {offsets = [0, 384], sizes = [8, 128], strides = [1, 1]} : vector<8x512xf32> to vector<8x128xf32>
    %243 = math.tanh %242 : vector<8x128xf32>
    %244 = arith.mulf %240, %200 : vector<8x128xf32>
    %245 = arith.mulf %239, %243 : vector<8x128xf32>
    %246 = arith.addf %244, %245 : vector<8x128xf32>
    %247 = math.tanh %246 : vector<8x128xf32>
    %248 = arith.mulf %241, %247 : vector<8x128xf32>
    %c5 = arith.constant 5 : index
    %c0_84 = arith.constant 0 : index
    %c0_85 = arith.constant 0 : index
    %249 = vector.load %arg14[%c5, %c0_84, %c0_85] : memref<8x8x512xf32, #tpu.memory_space<vmem>>, vector<1x8x512xf32>
    %250 = vector.shape_cast %249 : vector<1x8x512xf32> to vector<8x512xf32>
    %251 = arith.truncf %223 : vector<8x128xf32> to vector<8x128xbf16>
    %cst_86 = arith.constant dense<0.000000e+00> : vector<8x512xf32>
    %252 = tpu.matmul %251, %10, %cst_86 {dimension_numbers = #tpu.dot_dimension_numbers<[1], [0], [0], [1], [0, 0, 1, 1], [], []>} : vector<8x128xbf16>, vector<128x512xbf16>, vector<8x512xf32> -> vector<8x512xf32>
    %253 = arith.addf %250, %252 : vector<8x512xf32>
    %254 = vector.extract_strided_slice %253 {offsets = [0, 0], sizes = [8, 384], strides = [1, 1]} : vector<8x512xf32> to vector<8x384xf32>
    %255 = arith.negf %254 : vector<8x384xf32>
    %256 = math.exp %255 : vector<8x384xf32>
    %cst_87 = arith.constant 1.000000e+00 : f32
    %257 = vector.broadcast %cst_87 : f32 to vector<8x384xf32>
    %258 = arith.addf %257, %256 : vector<8x384xf32>
    %259 = arith.divf %257, %258 : vector<8x384xf32>
    %260 = vector.extract_strided_slice %259 {offsets = [0, 0], sizes = [8, 128], strides = [1, 1]} : vector<8x384xf32> to vector<8x128xf32>
    %261 = vector.extract_strided_slice %259 {offsets = [0, 128], sizes = [8, 128], strides = [1, 1]} : vector<8x384xf32> to vector<8x128xf32>
    %262 = vector.extract_strided_slice %259 {offsets = [0, 256], sizes = [8, 128], strides = [1, 1]} : vector<8x384xf32> to vector<8x128xf32>
    %263 = vector.extract_strided_slice %253 {offsets = [0, 384], sizes = [8, 128], strides = [1, 1]} : vector<8x512xf32> to vector<8x128xf32>
    %264 = math.tanh %263 : vector<8x128xf32>
    %265 = arith.mulf %261, %221 : vector<8x128xf32>
    %266 = arith.mulf %260, %264 : vector<8x128xf32>
    %267 = arith.addf %265, %266 : vector<8x128xf32>
    %268 = math.tanh %267 : vector<8x128xf32>
    %269 = arith.mulf %262, %268 : vector<8x128xf32>
    %270 = tpu.concatenate %269, %248 in 1 : vector<8x128xf32>, vector<8x128xf32> -> vector<8x256xf32>
    %271 = arith.truncf %270 : vector<8x256xf32> to vector<8x256xbf16>
    %c0_88 = arith.constant 0 : index
    %c0_89 = arith.constant 0 : index
    %c0_90 = arith.constant 0 : index
    %272 = vector.load %arg5[%c0_88, %c0_89, %c0_90] : memref<1x256x512xbf16, #tpu.memory_space<vmem>>, vector<1x256x512xbf16>
    %273 = vector.shape_cast %272 : vector<1x256x512xbf16> to vector<256x512xbf16>
    %cst_91 = arith.constant dense<0.000000e+00> : vector<8x512xf32>
    %274 = tpu.matmul %271, %273, %cst_91 {dimension_numbers = #tpu.dot_dimension_numbers<[1], [0], [0], [1], [0, 0, 1, 1], [], []>} : vector<8x256xbf16>, vector<256x512xbf16>, vector<8x512xf32> -> vector<8x512xf32>
    %c0_92 = arith.constant 0 : index
    %c0_93 = arith.constant 0 : index
    %c0_94 = arith.constant 0 : index
    %275 = vector.load %arg6[%c0_92, %c0_93, %c0_94] : memref<1x1x512xf32, #tpu.memory_space<vmem>>, vector<1x1x512xf32>
    %276 = vector.shape_cast %275 : vector<1x1x512xf32> to vector<1x512xf32>
    %277 = vector.broadcast %276 : vector<1x512xf32> to vector<8x512xf32>
    %278 = arith.addf %274, %277 : vector<8x512xf32>
    %279 = vector.extract_strided_slice %278 {offsets = [0, 0], sizes = [8, 384], strides = [1, 1]} : vector<8x512xf32> to vector<8x384xf32>
    %280 = arith.negf %279 : vector<8x384xf32>
    %281 = math.exp %280 : vector<8x384xf32>
    %cst_95 = arith.constant 1.000000e+00 : f32
    %282 = vector.broadcast %cst_95 : f32 to vector<8x384xf32>
    %283 = arith.addf %282, %281 : vector<8x384xf32>
    %284 = arith.divf %282, %283 : vector<8x384xf32>
    %285 = vector.extract_strided_slice %284 {offsets = [0, 0], sizes = [8, 128], strides = [1, 1]} : vector<8x384xf32> to vector<8x128xf32>
    %286 = vector.extract_strided_slice %284 {offsets = [0, 128], sizes = [8, 128], strides = [1, 1]} : vector<8x384xf32> to vector<8x128xf32>
    %287 = vector.extract_strided_slice %284 {offsets = [0, 256], sizes = [8, 128], strides = [1, 1]} : vector<8x384xf32> to vector<8x128xf32>
    %288 = vector.extract_strided_slice %278 {offsets = [0, 384], sizes = [8, 128], strides = [1, 1]} : vector<8x512xf32> to vector<8x128xf32>
    %289 = math.tanh %288 : vector<8x128xf32>
    %290 = arith.mulf %286, %246 : vector<8x128xf32>
    %291 = arith.mulf %285, %289 : vector<8x128xf32>
    %292 = arith.addf %290, %291 : vector<8x128xf32>
    %293 = math.tanh %292 : vector<8x128xf32>
    %294 = arith.mulf %287, %293 : vector<8x128xf32>
    %c6 = arith.constant 6 : index
    %c0_96 = arith.constant 0 : index
    %c0_97 = arith.constant 0 : index
    %295 = vector.load %arg14[%c6, %c0_96, %c0_97] : memref<8x8x512xf32, #tpu.memory_space<vmem>>, vector<1x8x512xf32>
    %296 = vector.shape_cast %295 : vector<1x8x512xf32> to vector<8x512xf32>
    %297 = arith.truncf %269 : vector<8x128xf32> to vector<8x128xbf16>
    %cst_98 = arith.constant dense<0.000000e+00> : vector<8x512xf32>
    %298 = tpu.matmul %297, %10, %cst_98 {dimension_numbers = #tpu.dot_dimension_numbers<[1], [0], [0], [1], [0, 0, 1, 1], [], []>} : vector<8x128xbf16>, vector<128x512xbf16>, vector<8x512xf32> -> vector<8x512xf32>
    %299 = arith.addf %296, %298 : vector<8x512xf32>
    %300 = vector.extract_strided_slice %299 {offsets = [0, 0], sizes = [8, 384], strides = [1, 1]} : vector<8x512xf32> to vector<8x384xf32>
    %301 = arith.negf %300 : vector<8x384xf32>
    %302 = math.exp %301 : vector<8x384xf32>
    %cst_99 = arith.constant 1.000000e+00 : f32
    %303 = vector.broadcast %cst_99 : f32 to vector<8x384xf32>
    %304 = arith.addf %303, %302 : vector<8x384xf32>
    %305 = arith.divf %303, %304 : vector<8x384xf32>
    %306 = vector.extract_strided_slice %305 {offsets = [0, 0], sizes = [8, 128], strides = [1, 1]} : vector<8x384xf32> to vector<8x128xf32>
    %307 = vector.extract_strided_slice %305 {offsets = [0, 128], sizes = [8, 128], strides = [1, 1]} : vector<8x384xf32> to vector<8x128xf32>
    %308 = vector.extract_strided_slice %305 {offsets = [0, 256], sizes = [8, 128], strides = [1, 1]} : vector<8x384xf32> to vector<8x128xf32>
    %309 = vector.extract_strided_slice %299 {offsets = [0, 384], sizes = [8, 128], strides = [1, 1]} : vector<8x512xf32> to vector<8x128xf32>
    %310 = math.tanh %309 : vector<8x128xf32>
    %311 = arith.mulf %307, %267 : vector<8x128xf32>
    %312 = arith.mulf %306, %310 : vector<8x128xf32>
    %313 = arith.addf %311, %312 : vector<8x128xf32>
    %314 = math.tanh %313 : vector<8x128xf32>
    %315 = arith.mulf %308, %314 : vector<8x128xf32>
    %316 = tpu.concatenate %315, %294 in 1 : vector<8x128xf32>, vector<8x128xf32> -> vector<8x256xf32>
    %317 = arith.truncf %316 : vector<8x256xf32> to vector<8x256xbf16>
    %c0_100 = arith.constant 0 : index
    %c0_101 = arith.constant 0 : index
    %c0_102 = arith.constant 0 : index
    %318 = vector.load %arg5[%c0_100, %c0_101, %c0_102] : memref<1x256x512xbf16, #tpu.memory_space<vmem>>, vector<1x256x512xbf16>
    %319 = vector.shape_cast %318 : vector<1x256x512xbf16> to vector<256x512xbf16>
    %cst_103 = arith.constant dense<0.000000e+00> : vector<8x512xf32>
    %320 = tpu.matmul %317, %319, %cst_103 {dimension_numbers = #tpu.dot_dimension_numbers<[1], [0], [0], [1], [0, 0, 1, 1], [], []>} : vector<8x256xbf16>, vector<256x512xbf16>, vector<8x512xf32> -> vector<8x512xf32>
    %c0_104 = arith.constant 0 : index
    %c0_105 = arith.constant 0 : index
    %c0_106 = arith.constant 0 : index
    %321 = vector.load %arg6[%c0_104, %c0_105, %c0_106] : memref<1x1x512xf32, #tpu.memory_space<vmem>>, vector<1x1x512xf32>
    %322 = vector.shape_cast %321 : vector<1x1x512xf32> to vector<1x512xf32>
    %323 = vector.broadcast %322 : vector<1x512xf32> to vector<8x512xf32>
    %324 = arith.addf %320, %323 : vector<8x512xf32>
    %325 = vector.extract_strided_slice %324 {offsets = [0, 0], sizes = [8, 384], strides = [1, 1]} : vector<8x512xf32> to vector<8x384xf32>
    %326 = arith.negf %325 : vector<8x384xf32>
    %327 = math.exp %326 : vector<8x384xf32>
    %cst_107 = arith.constant 1.000000e+00 : f32
    %328 = vector.broadcast %cst_107 : f32 to vector<8x384xf32>
    %329 = arith.addf %328, %327 : vector<8x384xf32>
    %330 = arith.divf %328, %329 : vector<8x384xf32>
    %331 = vector.extract_strided_slice %330 {offsets = [0, 0], sizes = [8, 128], strides = [1, 1]} : vector<8x384xf32> to vector<8x128xf32>
    %332 = vector.extract_strided_slice %330 {offsets = [0, 128], sizes = [8, 128], strides = [1, 1]} : vector<8x384xf32> to vector<8x128xf32>
    %333 = vector.extract_strided_slice %330 {offsets = [0, 256], sizes = [8, 128], strides = [1, 1]} : vector<8x384xf32> to vector<8x128xf32>
    %334 = vector.extract_strided_slice %324 {offsets = [0, 384], sizes = [8, 128], strides = [1, 1]} : vector<8x512xf32> to vector<8x128xf32>
    %335 = math.tanh %334 : vector<8x128xf32>
    %336 = arith.mulf %332, %292 : vector<8x128xf32>
    %337 = arith.mulf %331, %335 : vector<8x128xf32>
    %338 = arith.addf %336, %337 : vector<8x128xf32>
    %339 = math.tanh %338 : vector<8x128xf32>
    %340 = arith.mulf %333, %339 : vector<8x128xf32>
    %c7 = arith.constant 7 : index
    %c0_108 = arith.constant 0 : index
    %c0_109 = arith.constant 0 : index
    %341 = vector.load %arg14[%c7, %c0_108, %c0_109] : memref<8x8x512xf32, #tpu.memory_space<vmem>>, vector<1x8x512xf32>
    %342 = vector.shape_cast %341 : vector<1x8x512xf32> to vector<8x512xf32>
    %343 = arith.truncf %315 : vector<8x128xf32> to vector<8x128xbf16>
    %cst_110 = arith.constant dense<0.000000e+00> : vector<8x512xf32>
    %344 = tpu.matmul %343, %10, %cst_110 {dimension_numbers = #tpu.dot_dimension_numbers<[1], [0], [0], [1], [0, 0, 1, 1], [], []>} : vector<8x128xbf16>, vector<128x512xbf16>, vector<8x512xf32> -> vector<8x512xf32>
    %345 = arith.addf %342, %344 : vector<8x512xf32>
    %346 = vector.extract_strided_slice %345 {offsets = [0, 0], sizes = [8, 384], strides = [1, 1]} : vector<8x512xf32> to vector<8x384xf32>
    %347 = arith.negf %346 : vector<8x384xf32>
    %348 = math.exp %347 : vector<8x384xf32>
    %cst_111 = arith.constant 1.000000e+00 : f32
    %349 = vector.broadcast %cst_111 : f32 to vector<8x384xf32>
    %350 = arith.addf %349, %348 : vector<8x384xf32>
    %351 = arith.divf %349, %350 : vector<8x384xf32>
    %352 = vector.extract_strided_slice %351 {offsets = [0, 0], sizes = [8, 128], strides = [1, 1]} : vector<8x384xf32> to vector<8x128xf32>
    %353 = vector.extract_strided_slice %351 {offsets = [0, 128], sizes = [8, 128], strides = [1, 1]} : vector<8x384xf32> to vector<8x128xf32>
    %354 = vector.extract_strided_slice %351 {offsets = [0, 256], sizes = [8, 128], strides = [1, 1]} : vector<8x384xf32> to vector<8x128xf32>
    %355 = vector.extract_strided_slice %345 {offsets = [0, 384], sizes = [8, 128], strides = [1, 1]} : vector<8x512xf32> to vector<8x128xf32>
    %356 = math.tanh %355 : vector<8x128xf32>
    %357 = arith.mulf %353, %313 : vector<8x128xf32>
    %358 = arith.mulf %352, %356 : vector<8x128xf32>
    %359 = arith.addf %357, %358 : vector<8x128xf32>
    %360 = math.tanh %359 : vector<8x128xf32>
    %361 = arith.mulf %354, %360 : vector<8x128xf32>
    %362 = tpu.concatenate %361, %340 in 1 : vector<8x128xf32>, vector<8x128xf32> -> vector<8x256xf32>
    %363 = arith.truncf %362 : vector<8x256xf32> to vector<8x256xbf16>
    %c0_112 = arith.constant 0 : index
    %c0_113 = arith.constant 0 : index
    %c0_114 = arith.constant 0 : index
    %364 = vector.load %arg5[%c0_112, %c0_113, %c0_114] : memref<1x256x512xbf16, #tpu.memory_space<vmem>>, vector<1x256x512xbf16>
    %365 = vector.shape_cast %364 : vector<1x256x512xbf16> to vector<256x512xbf16>
    %cst_115 = arith.constant dense<0.000000e+00> : vector<8x512xf32>
    %366 = tpu.matmul %363, %365, %cst_115 {dimension_numbers = #tpu.dot_dimension_numbers<[1], [0], [0], [1], [0, 0, 1, 1], [], []>} : vector<8x256xbf16>, vector<256x512xbf16>, vector<8x512xf32> -> vector<8x512xf32>
    %c0_116 = arith.constant 0 : index
    %c0_117 = arith.constant 0 : index
    %c0_118 = arith.constant 0 : index
    %367 = vector.load %arg6[%c0_116, %c0_117, %c0_118] : memref<1x1x512xf32, #tpu.memory_space<vmem>>, vector<1x1x512xf32>
    %368 = vector.shape_cast %367 : vector<1x1x512xf32> to vector<1x512xf32>
    %369 = vector.broadcast %368 : vector<1x512xf32> to vector<8x512xf32>
    %370 = arith.addf %366, %369 : vector<8x512xf32>
    %371 = vector.extract_strided_slice %370 {offsets = [0, 0], sizes = [8, 384], strides = [1, 1]} : vector<8x512xf32> to vector<8x384xf32>
    %372 = arith.negf %371 : vector<8x384xf32>
    %373 = math.exp %372 : vector<8x384xf32>
    %cst_119 = arith.constant 1.000000e+00 : f32
    %374 = vector.broadcast %cst_119 : f32 to vector<8x384xf32>
    %375 = arith.addf %374, %373 : vector<8x384xf32>
    %376 = arith.divf %374, %375 : vector<8x384xf32>
    %377 = vector.extract_strided_slice %376 {offsets = [0, 0], sizes = [8, 128], strides = [1, 1]} : vector<8x384xf32> to vector<8x128xf32>
    %378 = vector.extract_strided_slice %376 {offsets = [0, 128], sizes = [8, 128], strides = [1, 1]} : vector<8x384xf32> to vector<8x128xf32>
    %379 = vector.extract_strided_slice %376 {offsets = [0, 256], sizes = [8, 128], strides = [1, 1]} : vector<8x384xf32> to vector<8x128xf32>
    %380 = vector.extract_strided_slice %370 {offsets = [0, 384], sizes = [8, 128], strides = [1, 1]} : vector<8x512xf32> to vector<8x128xf32>
    %381 = math.tanh %380 : vector<8x128xf32>
    %382 = arith.mulf %378, %338 : vector<8x128xf32>
    %383 = arith.mulf %377, %381 : vector<8x128xf32>
    %384 = arith.addf %382, %383 : vector<8x128xf32>
    %385 = math.tanh %384 : vector<8x128xf32>
    %386 = arith.mulf %379, %385 : vector<8x128xf32>
    %c0_120 = arith.constant 0 : index
    %c0_121 = arith.constant 0 : index
    %c0_122 = arith.constant 0 : index
    %387 = vector.load %arg12[%c0_120, %c0_121, %c0_122] : memref<2x8x128xf32, #tpu.memory_space<vmem>>, vector<1x8x128xf32>
    %388 = vector.shape_cast %387 : vector<1x8x128xf32> to vector<8x128xf32>
    %389 = vector.shape_cast %361 : vector<8x128xf32> to vector<1x8x128xf32>
    tpu.vector_store %arg12[%c0_120, %c0_121, %c0_122], %389 {strides = array<i32>} : memref<2x8x128xf32, #tpu.memory_space<vmem>>, vector<1x8x128xf32>,
    %c0_123 = arith.constant 0 : index
    %c0_124 = arith.constant 0 : index
    %c0_125 = arith.constant 0 : index
    %390 = vector.load %arg13[%c0_123, %c0_124, %c0_125] : memref<2x8x128xf32, #tpu.memory_space<vmem>>, vector<1x8x128xf32>
    %391 = vector.shape_cast %390 : vector<1x8x128xf32> to vector<8x128xf32>
    %392 = vector.shape_cast %359 : vector<8x128xf32> to vector<1x8x128xf32>
    tpu.vector_store %arg13[%c0_123, %c0_124, %c0_125], %392 {strides = array<i32>} : memref<2x8x128xf32, #tpu.memory_space<vmem>>, vector<1x8x128xf32>,
    %c1_126 = arith.constant 1 : index
    %c0_127 = arith.constant 0 : index
    %c0_128 = arith.constant 0 : index
    %393 = vector.load %arg12[%c1_126, %c0_127, %c0_128] : memref<2x8x128xf32, #tpu.memory_space<vmem>>, vector<1x8x128xf32>
    %394 = vector.shape_cast %393 : vector<1x8x128xf32> to vector<8x128xf32>
    %395 = vector.shape_cast %386 : vector<8x128xf32> to vector<1x8x128xf32>
    tpu.vector_store %arg12[%c1_126, %c0_127, %c0_128], %395 {strides = array<i32>} : memref<2x8x128xf32, #tpu.memory_space<vmem>>, vector<1x8x128xf32>,
    %c1_129 = arith.constant 1 : index
    %c0_130 = arith.constant 0 : index
    %c0_131 = arith.constant 0 : index
    %396 = vector.load %arg13[%c1_129, %c0_130, %c0_131] : memref<2x8x128xf32, #tpu.memory_space<vmem>>, vector<1x8x128xf32>
    %397 = vector.shape_cast %396 : vector<1x8x128xf32> to vector<8x128xf32>
    %398 = vector.shape_cast %384 : vector<8x128xf32> to vector<1x8x128xf32>
    tpu.vector_store %arg13[%c1_129, %c0_130, %c0_131], %398 {strides = array<i32>} : memref<2x8x128xf32, #tpu.memory_space<vmem>>, vector<1x8x128xf32>,
    %399 = arith.truncf %386 : vector<8x128xf32> to vector<8x128xbf16>
    %c0_132 = arith.constant 0 : index
    %c0_133 = arith.constant 0 : index
    %400 = vector.load %arg9[%c0_132, %c0_133] : memref<128x4xbf16, #tpu.memory_space<vmem>>, vector<128x4xbf16>
    %cst_134 = arith.constant dense<0.000000e+00> : vector<8x4xf32>
    %401 = tpu.matmul %399, %400, %cst_134 {dimension_numbers = #tpu.dot_dimension_numbers<[1], [0], [0], [1], [0, 0, 1, 1], [], []>} : vector<8x128xbf16>, vector<128x4xbf16>, vector<8x4xf32> -> vector<8x4xf32>
    %c0_135 = arith.constant 0 : index
    %c0_136 = arith.constant 0 : index
    %402 = vector.load %arg10[%c0_135, %c0_136] : memref<1x4xf32, #tpu.memory_space<vmem>>, vector<1x4xf32>
    %403 = vector.broadcast %402 : vector<1x4xf32> to vector<8x4xf32>
    %404 = arith.addf %401, %403 : vector<8x4xf32>
    %cst_137 = arith.constant dense<0xFF800000> : vector<8xf32>
    %405 = vector.multi_reduction <maximumf>, %404, %cst_137 [1] : vector<8x4xf32> to vector<8xf32>
    %406 = vector.shape_cast %405 : vector<8xf32> to vector<8x1xf32>
    %407 = vector.broadcast %406 : vector<8x1xf32> to vector<8x4xf32>
    %408 = arith.subf %404, %407 : vector<8x4xf32>
    %409 = math.exp %408 : vector<8x4xf32>
    %cst_138 = arith.constant dense<0.000000e+00> : vector<8xf32>
    %410 = vector.multi_reduction <add>, %409, %cst_138 [1] : vector<8x4xf32> to vector<8xf32>
    %411 = vector.shape_cast %410 : vector<8xf32> to vector<8x1xf32>
    %412 = vector.broadcast %411 : vector<8x1xf32> to vector<8x4xf32>
    %413 = arith.divf %409, %412 : vector<8x4xf32>
    %c0_139 = arith.constant 0 : index
    %c0_140 = arith.constant 0 : index
    %414 = vector.load %arg11[%c0_139, %c0_140] : memref<8x4xf32, #tpu.memory_space<vmem>>, vector<8x4xf32>
    tpu.vector_store %arg11[%c0_139, %c0_140], %413 {strides = array<i32>} : memref<8x4xf32, #tpu.memory_space<vmem>>, vector<8x4xf32>,
    return
  }
  func.func @transform_0(%arg0: i32) -> (i32, i32, i32) {
    %c0_i32 = arith.constant 0 : i32
    %c0_i32_0 = arith.constant 0 : i32
    %c0_i32_1 = arith.constant 0 : i32
    return %c0_i32, %arg0, %c0_i32_0 : i32, i32, i32
  }
  func.func @transform_1(%arg0: i32) -> (i32, i32) {
    %c0_i32 = arith.constant 0 : i32
    %c0_i32_0 = arith.constant 0 : i32
    %c0_i32_1 = arith.constant 0 : i32
    return %c0_i32, %c0_i32_0 : i32, i32
  }
  func.func @transform_2(%arg0: i32) -> (i32, i32) {
    %c0_i32 = arith.constant 0 : i32
    %c0_i32_0 = arith.constant 0 : i32
    %c0_i32_1 = arith.constant 0 : i32
    return %c0_i32, %c0_i32_0 : i32, i32
  }
  func.func @transform_3(%arg0: i32) -> (i32, i32) {
    %c0_i32 = arith.constant 0 : i32
    %c0_i32_0 = arith.constant 0 : i32
    %c0_i32_1 = arith.constant 0 : i32
    return %c0_i32, %c0_i32_0 : i32, i32
  }
  func.func @transform_4(%arg0: i32) -> (i32, i32, i32) {
    %c0_i32 = arith.constant 0 : i32
    %c0_i32_0 = arith.constant 0 : i32
    %c0_i32_1 = arith.constant 0 : i32
    %c0_i32_2 = arith.constant 0 : i32
    return %c0_i32, %c0_i32_0, %c0_i32_1 : i32, i32, i32
  }
  func.func @transform_5(%arg0: i32) -> (i32, i32, i32) {
    %c0_i32 = arith.constant 0 : i32
    %c0_i32_0 = arith.constant 0 : i32
    %c0_i32_1 = arith.constant 0 : i32
    %c0_i32_2 = arith.constant 0 : i32
    return %c0_i32, %c0_i32_0, %c0_i32_1 : i32, i32, i32
  }
  func.func @transform_6(%arg0: i32) -> (i32, i32, i32) {
    %c0_i32 = arith.constant 0 : i32
    %c0_i32_0 = arith.constant 0 : i32
    %c0_i32_1 = arith.constant 0 : i32
    return %c0_i32, %arg0, %c0_i32_0 : i32, i32, i32
  }
  func.func @transform_7(%arg0: i32) -> (i32, i32, i32) {
    %c0_i32 = arith.constant 0 : i32
    %c0_i32_0 = arith.constant 0 : i32
    %c0_i32_1 = arith.constant 0 : i32
    return %c0_i32, %arg0, %c0_i32_0 : i32, i32, i32
  }
  func.func @transform_8(%arg0: i32) -> (i32, i32) {
    %c0_i32 = arith.constant 0 : i32
    %c0_i32_0 = arith.constant 0 : i32
    %c0_i32_1 = arith.constant 0 : i32
    return %c0_i32, %c0_i32_0 : i32, i32
  }
  func.func @transform_9(%arg0: i32) -> (i32, i32) {
    %c0_i32 = arith.constant 0 : i32
    %c0_i32_0 = arith.constant 0 : i32
    %c0_i32_1 = arith.constant 0 : i32
    return %c0_i32, %c0_i32_0 : i32, i32
  }
  func.func @transform_10(%arg0: i32) -> (i32, i32) {
    %c0_i32 = arith.constant 0 : i32
    %c0_i32_0 = arith.constant 0 : i32
    return %arg0, %c0_i32 : i32, i32
  }
  func.func @transform_11(%arg0: i32) -> (i32, i32, i32) {
    %c0_i32 = arith.constant 0 : i32
    %c0_i32_0 = arith.constant 0 : i32
    %c0_i32_1 = arith.constant 0 : i32
    return %c0_i32, %arg0, %c0_i32_0 : i32, i32, i32
  }
  func.func @transform_12(%arg0: i32) -> (i32, i32, i32) {
    %c0_i32 = arith.constant 0 : i32
    %c0_i32_0 = arith.constant 0 : i32
    %c0_i32_1 = arith.constant 0 : i32
    return %c0_i32, %arg0, %c0_i32_0 : i32, i32, i32
  }
}

</mosaic_0001>

<bundles_post_ra>
// kernel: tpu_custom_call.1
= control target key start
LH: loop header
LB: loop body
LE: loop exit
PB: predicated region body
PF: predicated region fallthrough
CT: control target
= control target key end

     0   :  { %18 = vsyncpa [#allocation4], 0  ;;  %s5767_s0 = inlined_call_operand.vmem [shape: f32[8,8,16], index: 0, kind: input, shape index: {}]   ;;  %s5768_s1 = inlined_call_operand.hbm [shape: bf16[16,512], index: 1, kind: input, shape index: {}]   ;;  %s5769_s2 = inlined_call_operand.hbm [shape: f32[1,512], index: 2, kind: input, shape index: {}]   ;;  %s5770_s3 = inlined_call_operand.hbm [shape: bf16[128,512], index: 3, kind: input, shape index: {}]   ;;  %s5771_s4 = inlined_call_operand.hbm [shape: bf16[1,256,512], index: 4, kind: input, shape index: {}]   ;;  %s5772_s5 = inlined_call_operand.vmem [shape: f32[1,1,512], index: 5, kind: input, shape index: {}]   ;;  %s5773_s6 = inlined_call_operand.vmem [shape: f32[2,8,128], index: 6, kind: input, shape index: {}]   ;;  %s5774_s7 = inlined_call_operand.hbm [shape: f32[2,8,128], index: 7, kind: input, shape index: {}]   ;;  %s5775_s8 = inlined_call_operand.vmem [shape: bf16[128,4], index: 8, kind: input, shape index: {}]   ;;  %s5776_s9 = inlined_call_operand.vmem [shape: f32[1,4], index: 9, kind: input, shape index: {}]   ;;  %s5777_s10 = inlined_call_operand.vmem [shape: f32[8,4], index: 10, kind: output, shape index: {0}]   ;;  %s5778_s11 = inlined_call_operand.hbm [shape: f32[2,8,128], index: 11, kind: output, shape index: {1}]   ;;  %s5779_s12 = inlined_call_operand.hbm [shape: f32[2,8,128], index: 12, kind: output, shape index: {2}]  }
   0x1   :  { %19 = vsyncpa [#allocation7], 0 }
   0x2   :  { %20 = vsyncpa [#allocation10], 0 }
   0x3   :  { %21 = vsyncpa [#allocation5], 0 }
   0x4   :  { %22 = vsyncpa [#allocation14], 0  ;;  %s3897_s21 = smov [#allocation6]   ;;  %s3733_s25 = scalar_lea.hbm %s5769_s2, 64 }
   0x5   :  { %s43_s22 = sshll.u32 %s3897_s21, 4  ;;  %p3734_p0 = scmp.ne.s32.totalorder %s5769_s2, %s3733_s25  ;;  %s44_s22 = int_to_ptr.vmem [resolvable:$true] %s43_s22 }
   0x6   :  { %p3737_p1 = scmp.lt.u32.totalorder %s3733_s25, %s5769_s2 }
   0x8   :  { %p3739_p2 = pnand %p3737_p1, %p3734_p0 }
   0xa   :  { %3742 = shalt.err (!%p3739_p2)
}
   0xb   :  { %s3743_s30 = scalar_lea.vmem %s44_s22, 64  ;;  %p3748_p4 = scmp.lt.s32.totalorder %s44_s22, %s44_s22 }
   0xc   :  { %p3744_p3 = scmp.ne.s32.totalorder %s44_s22, %s3743_s30  ;;  %p3749_p5 = scmp.lt.s32.totalorder %s3743_s30, %s3743_s30 }
   0xe   :  { %p3750_p6 = por %p3749_p5, %p3748_p4 }
  0x10   :  { %p3751_p7 = pnand %p3750_p6, %p3744_p3 }
  0x12   :  { %3754 = shalt.err (!%p3751_p7)
}
  0x13   :  { %46 = dma.hbm_to_vmem [thread:$0]  %s5769_s2, 64, %s44_s22, [#allocation7]  }
  0x14   :  { %s3898_s15 = smov [#allocation9]   ;;  %s3899_s17 = smov [#allocation3]  }
  0x15   :  { %s64_s16 = sshll.u32 %s3898_s15, 4  ;;  %s30_s18 = sshll.u32 %s3899_s17, 4  ;;  %s65_s16 = int_to_ptr.vmem [resolvable:$true] %s64_s16  ;;  %s31_s18 = int_to_ptr.vmem [resolvable:$true] %s30_s18 }
  0x16   :  { %s3755_s21 = scalar_lea.hbm %s5771_s4, 8192 }
  0x17   :  { %p3756_p8 = scmp.ne.s32.totalorder %s5771_s4, %s3755_s21  ;;  %p3759_p9 = scmp.lt.u32.totalorder %s3755_s21, %s5771_s4 }
  0x19   :  { %p3761_p10 = pnand %p3759_p9, %p3756_p8 }
  0x1b   :  { %3764 = shalt.err (!%p3761_p10)
}
  0x1c   :  { %s3765_s2 = scalar_lea.vmem %s65_s16, 8192  ;;  %p3770_p12 = scmp.lt.s32.totalorder %s65_s16, %s65_s16 }
  0x1d   :  { %p3766_p11 = scmp.ne.s32.totalorder %s65_s16, %s3765_s2  ;;  %p3771_p13 = scmp.lt.s32.totalorder %s3765_s2, %s3765_s2 }
  0x1f   :  { %p3772_p0 = por %p3771_p13, %p3770_p12 }
  0x21   :  { %p3773_p1 = pnand %p3772_p0, %p3766_p11 }
  0x23   :  { %3776 = shalt.err (!%p3773_p1)
}
  0x24   :  { %s3900_s22 = smov 256   ;;  %s3901_s27 = smov 16  }
  0x25   :  { %70 = dma.hbm_to_vmem [thread:$0]  %s5771_s4, 8192, %s65_s16, [#allocation10], %s3900_s22, %s3900_s22, %s3901_s27  }
  0x26   :  { %s3777_s14 = scalar_lea.hbm %s5768_s1, 512 }
  0x27   :  { %p3778_p2 = scmp.ne.s32.totalorder %s5768_s1, %s3777_s14  ;;  %p3781_p3 = scmp.lt.u32.totalorder %s3777_s14, %s5768_s1 }
  0x29   :  { %p3783_p4 = pnand %p3781_p3, %p3778_p2 }
  0x2b   :  { %3786 = shalt.err (!%p3783_p4)
}
  0x2c   :  { %s3787_s21 = scalar_lea.vmem %s31_s18, 512  ;;  %p3792_p6 = scmp.lt.s32.totalorder %s31_s18, %s31_s18 }
  0x2d   :  { %p3788_p5 = scmp.ne.s32.totalorder %s31_s18, %s3787_s21  ;;  %p3793_p7 = scmp.lt.s32.totalorder %s3787_s21, %s3787_s21 }
  0x2f   :  { %p3794_p8 = por %p3793_p7, %p3792_p6 }
  0x31   :  { %p3795_p9 = pnand %p3794_p8, %p3788_p5 }
  0x33   :  { %3798 = shalt.err (!%p3795_p9)
}
  0x34   :  { %36 = dma.hbm_to_vmem [thread:$0]  %s5768_s1, 512, %s31_s18, [#allocation4], %s3900_s22, %s3900_s22, %s3901_s27  }
  0x35   :  { %s3902_s23 = smov [#allocation8]   ;;  %s3903_s25 = smov [#allocation11]  }
  0x36   :  { %s52_s24 = sshll.u32 %s3902_s23, 4  ;;  %s80_s26 = sshll.u32 %s3903_s25, 4  ;;  %s53_s24 = int_to_ptr.vmem [resolvable:$true] %s52_s24  ;;  %s81_s26 = int_to_ptr.vmem [resolvable:$true] %s80_s26 }
  0x37   :  { %s3799_s29 = scalar_lea.hbm %s5770_s3, 4096 }
  0x38   :  { %p3800_p10 = scmp.ne.s32.totalorder %s5770_s3, %s3799_s29  ;;  %p3803_p11 = scmp.lt.u32.totalorder %s3799_s29, %s5770_s3 }
  0x3a   :  { %p3805_p12 = pnand %p3803_p11, %p3800_p10 }
  0x3c   :  { %3808 = shalt.err (!%p3805_p12)
}
  0x3d   :  { %s3809_s1 = scalar_lea.vmem %s53_s24, 4096  ;;  %p3814_p0 = scmp.lt.s32.totalorder %s53_s24, %s53_s24 }
  0x3e   :  { %p3810_p13 = scmp.ne.s32.totalorder %s53_s24, %s3809_s1  ;;  %p3815_p1 = scmp.lt.s32.totalorder %s3809_s1, %s3809_s1 }
  0x40   :  { %p3816_p2 = por %p3815_p1, %p3814_p0 }
  0x42   :  { %p3817_p3 = pnand %p3816_p2, %p3810_p13 }
  0x44   :  { %3820 = shalt.err (!%p3817_p3)
}
  0x45   :  { %58 = dma.hbm_to_vmem [thread:$0]  %s5770_s3, 4096, %s53_s24, [#allocation7], %s3900_s22, %s3900_s22, %s3901_s27  }
  0x46   :  { %s3821_s21 = scalar_lea.hbm %s5774_s7, 256 }
  0x47   :  { %p3822_p4 = scmp.ne.s32.totalorder %s5774_s7, %s3821_s21  ;;  %p3825_p5 = scmp.lt.u32.totalorder %s3821_s21, %s5774_s7 }
  0x49   :  { %p3827_p6 = pnand %p3825_p5, %p3822_p4 }
  0x4b   :  { %3830 = shalt.err (!%p3827_p6)
}
  0x4c   :  { %s3831_s2 = scalar_lea.vmem %s81_s26, 256  ;;  %p3836_p8 = scmp.lt.s32.totalorder %s81_s26, %s81_s26 }
  0x4d   :  { %p3832_p7 = scmp.ne.s32.totalorder %s81_s26, %s3831_s2  ;;  %p3837_p9 = scmp.lt.s32.totalorder %s3831_s2, %s3831_s2 }
  0x4f   :  { %p3838_p10 = por %p3837_p9, %p3836_p8 }
  0x51   :  { %p3839_p11 = pnand %p3838_p10, %p3832_p7 }
  0x53   :  { %3842 = shalt.err (!%p3839_p11)
}
  0x54   :  { %s3904_s3 = smov 128   ;;  %s3905_s22 = smov 8  }
  0x55   :  { %86 = dma.hbm_to_vmem [thread:$0]  %s5774_s7, 256, %s81_s26, [#allocation10], %s3904_s3, %s3904_s3, %s3905_s22  }
  0x56   :  { %3887 = dma.done.wait [#allocation4], 512  }
  0x57   :  { %3888 = vsyncadd [#allocation4], 4294966784 }
  0x58   :  { %3889 = dma.done.wait [#allocation7], 4160  }
  0x59   :  { %3890 = vsyncadd [#allocation7], 4294963136 }
  0x5a   :  { %3891 = dma.done.wait [#allocation10], 8448  }
  0x5b   :  { %3892 = vsyncadd [#allocation10], 4294958848  ;;  %v5780_v0 = vmov 0   ;;  %v3123_v1 = vld [vmem:[#allocation3 + $0x4] ss:$16 sps:$4 sm:$0xff]   ;;  %v108_v6 = vld [vmem:[%s5767_s0 + $0x8] sm:$0xff] }
  0x5c   :  { %210 = vmatprep.mubr.bf16.mxu0 %v5780_v0  ;;  %283 = vmatprep.mubr.bf16.mxu1 %v5780_v0  ;;  %v3125_v2 = vld [vmem:[#allocation3 + $0xc] ss:$16 sps:$4 sm:$0xff]   ;;  %v3127_v3 = vld [vmem:[#allocation3] ss:$16 sps:$4 sm:$0xff]   ;;  %v3128_v4 = vld [vmem:[#allocation3 + $0x8] ss:$16 sps:$4 sm:$0xff]  }
  0x5d   :  { %178 = vmatprep.subr.bf16.mxu0 %v3123_v1  ;;  %v107_v5 = vld [vmem:[%s5767_s0] sm:$0xff]  ;;  %251 = vmatprep.subr.bf16.mxu1 %v3125_v2  ;;  %vm165_vm0 = vcmask 130048   ;;  %v4056_v8 = vld [vmem:[#allocation8 + $0x4] ss:$16 sps:$4 sm:$0xff]   ;;  %v4062_v11 = vld [vmem:[#allocation8 + $0x8] ss:$16 sps:$4 sm:$0xff]  }
  0x5e   :  { %179 = vmatpush1.bf16.msra.mxu0 %v3127_v3  ;;  %252 = vmatpush1.bf16.msra.mxu1 %v3128_v4  ;;  %v115_v7 = vpack.c.bf16 %v108_v6, %v107_v5  ;;  %v4058_v9 = vld [vmem:[#allocation8 + $0xc] ss:$16 sps:$4 sm:$0xff]   ;;  %v4060_v10 = vld [vmem:[#allocation8] ss:$16 sps:$4 sm:$0xff]   ;;  %v4065_v12 = vld [vmem:[#allocation8 + $0x24] ss:$16 sps:$4 sm:$0xff]  }
  0x5f   :  { %559 = vmatprep.subr.bf16.mxu0 %v4056_v8  ;;  %v4069_v13 = vld [vmem:[#allocation8 + $0x2c] ss:$16 sps:$4 sm:$0xff]   ;;  %600 = vmatprep.subr.bf16.mxu1 %v4058_v9  ;;  %v4073_v14 = vld [vmem:[#allocation8 + $0x20] ss:$16 sps:$4 sm:$0xff]   ;;  %v4075_v15 = vld [vmem:[#allocation8 + $0x28] ss:$16 sps:$4 sm:$0xff]  }
  0x60   :  { %v109_v16 = vld [vmem:[%s5767_s0 + $0x10] sm:$0xff]  ;;  %v110_v17 = vld [vmem:[%s5767_s0 + $0x18] sm:$0xff]  ;;  %v111_v26 = vld [vmem:[%s5767_s0 + $0x20] sm:$0xff]  ;;  %vm3908_vm1 = vmmov 0   ;;  %vm2862_vm2 = vcmask 31744   ;;  %s3909_s16 = smov [#allocation12]  }
  0x61   :  { %2918 = vmatmul.mubr.msk.bf16.vlgmr.msra.gmra.mrb[0].mxu0 %vm165_vm0, %v115_v7  ;;  %2922 = vmatmul.mubr.msk.bf16.vlgmr.msra.gmra.mrb[0].mxu1 %vm165_vm0, %v115_v7  ;;  %v4087_v18 = vld [vmem:[#allocation8 + $0x44] ss:$16 sps:$4 sm:$0xff]   ;;  %v116_v19 = vpack.c.bf16 %v110_v17, %v109_v16  ;;  %v4090_v20 = vld [vmem:[#allocation8 + $0x4c] ss:$16 sps:$4 sm:$0xff]   ;;  %v4092_v21 = vld [vmem:[#allocation8 + $0x40] ss:$16 sps:$4 sm:$0xff]  }
  0x62   :  { %560 = vmatpush1.bf16.msra.mxu0 %v4060_v10  ;;  %601 = vmatpush1.bf16.msra.mxu1 %v4062_v11  ;;  %v4095_v22 = vld [vmem:[#allocation8 + $0x48] ss:$16 sps:$4 sm:$0xff]   ;;  %v4099_v23 = vld [vmem:[#allocation8 + $0x64] ss:$16 sps:$4 sm:$0xff]   ;;  %v4102_v24 = vld [vmem:[#allocation8 + $0x6c] ss:$16 sps:$4 sm:$0xff]  }
  0x63   :  { %561 = vmatprep.subr.bf16.mxu0 %v4065_v12  ;;  %602 = vmatprep.subr.bf16.mxu1 %v4069_v13  ;;  %v4104_v25 = vld [vmem:[#allocation8 + $0x60] ss:$16 sps:$4 sm:$0xff]   ;;  %v112_v27 = vld [vmem:[%s5767_s0 + $0x28] sm:$0xff]  ;;  %v4124_v30 = vld [vmem:[#allocation8 + $0x8c] ss:$16 sps:$4 sm:$0xff]  }
  0x64   :  { %220 = vmatprep.mubr.bf16.mxu0 %v5780_v0  ;;  %293 = vmatprep.mubr.bf16.mxu1 %v5780_v0  ;;  %v4118_v28 = vld [vmem:[#allocation8 + $0x68] ss:$16 sps:$4 sm:$0xff]   ;;  %v4120_v29 = vld [vmem:[#allocation8 + $0x84] ss:$16 sps:$4 sm:$0xff]   ;;  %v117_v31 = vpack.c.bf16 %v112_v27, %v111_v26  ;;  %v4127_v32 = vld [vmem:[#allocation8 + $0x80] ss:$16 sps:$4 sm:$0xff]  }
  0x65   :  { %v4129_v33 = vld [vmem:[#allocation8 + $0x88] ss:$16 sps:$4 sm:$0xff]   ;;  %v4133_v34 = vld [vmem:[#allocation8 + $0xa4] ss:$16 sps:$4 sm:$0xff]   ;;  %v4136_v35 = vld [vmem:[#allocation8 + $0xac] ss:$16 sps:$4 sm:$0xff]  }
  0x66   :  { %562 = vmatpush1.bf16.msra.mxu0 %v4073_v14  ;;  %603 = vmatpush1.bf16.msra.mxu1 %v4075_v15  ;;  %v4140_v36 = vld [vmem:[#allocation8 + $0xa0] ss:$16 sps:$4 sm:$0xff]   ;;  %v4142_v37 = vld [vmem:[#allocation8 + $0xa8] ss:$16 sps:$4 sm:$0xff]   ;;  %v4154_v40 = vld [vmem:[#allocation8 + $0xc4] ss:$16 sps:$4 sm:$0xff]  }
  0x67   :  { %563 = vmatprep.subr.bf16.mxu0 %v4087_v18  ;;  %604 = vmatprep.subr.bf16.mxu1 %v4090_v20  ;;  %v113_v38 = vld [vmem:[%s5767_s0 + $0x30] sm:$0xff]  ;;  %v114_v39 = vld [vmem:[%s5767_s0 + $0x38] sm:$0xff]  ;;  %v388_v48 = vld [vmem:[%s5773_s6] sm:$0xff]  ;;  %s2882_s0 = sshll.u32 %s3909_s16, 4  ;;  %s2883_s0 = int_to_ptr.vmem [resolvable:$true] %s2882_s0 }
  0x68   :  { %v4158_v41 = vld [vmem:[#allocation8 + $0xcc] ss:$16 sps:$4 sm:$0xff]   ;;  %v4160_v42 = vld [vmem:[#allocation8 + $0xc0] ss:$16 sps:$4 sm:$0xff]   ;;  %v118_v43 = vpack.c.bf16 %v114_v39, %v113_v38  ;;  %v4162_v44 = vld [vmem:[#allocation8 + $0xc8] ss:$16 sps:$4 sm:$0xff]   ;;  %v398_v50 = vpack.c.bf16 %v388_v48, %v388_v48  ;;  %p3848_p13 = scmp.lt.s32.totalorder %s2883_s0, %s2883_s0 }
  0x69   :  { %2919 = vmatmul.mubr.msk.bf16.gmra.mrb[4].mxu0 %vm165_vm0, %v116_v19  ;;  %2923 = vmatmul.mubr.msk.bf16.gmra.mrb[4].mxu1 %vm165_vm0, %v116_v19  ;;  %v4164_v45 = vld [vmem:[#allocation8 + $0xe4] ss:$16 sps:$4 sm:$0xff]   ;;  %v4167_v46 = vld [vmem:[#allocation8 + $0xec] ss:$16 sps:$4 sm:$0xff]   ;;  %v4172_v47 = vld [vmem:[#allocation8 + $0xe0] ss:$16 sps:$4 sm:$0xff]  }
  0x6a   :  { %564 = vmatpush1.bf16.msra.mxu0 %v4092_v21  ;;  %230 = vmatprep.mubr.bf16.mxu0 %v5780_v0  ;;  %v4179_v49 = vld [vmem:[#allocation8 + $0xe8] ss:$16 sps:$4 sm:$0xff]   ;;  %v4189_v51 = vld [vmem:[#allocation9 + $0x4] ss:$16 sps:$4 sm:$0xff]   ;;  %v4191_v52 = vld [vmem:[#allocation9 + $0xc] ss:$16 sps:$4 sm:$0xff]  }
  0x6b   :  { %605 = vmatpush1.bf16.msra.mxu1 %v4095_v22  ;;  %565 = vmatprep.subr.bf16.mxu0 %v4099_v23  ;;  %v4193_v53 = vld [vmem:[#allocation9] ss:$16 sps:$4 sm:$0xff]   ;;  %v4195_v54 = vld [vmem:[#allocation9 + $0x8] ss:$16 sps:$4 sm:$0xff]   ;;  %v4201_v55 = vld [vmem:[#allocation9 + $0x24] ss:$16 sps:$4 sm:$0xff]  }
  0x6c   :  { %606 = vmatprep.subr.bf16.mxu1 %v4102_v24  ;;  %303 = vmatprep.mubr.bf16.mxu1 %v5780_v0  ;;  %v4203_v56 = vld [vmem:[#allocation9 + $0x2c] ss:$16 sps:$4 sm:$0xff]   ;;  %v4205_v57 = vld [vmem:[#allocation9 + $0x20] ss:$16 sps:$4 sm:$0xff]   ;;  %v4207_v58 = vld [vmem:[#allocation9 + $0x28] ss:$16 sps:$4 sm:$0xff]  }
  0x6d   :  { %v4213_v59 = vld [vmem:[#allocation9 + $0x44] ss:$16 sps:$4 sm:$0xff]   ;;  %v4215_v60 = vld [vmem:[#allocation9 + $0x4c] ss:$16 sps:$4 sm:$0xff]   ;;  %v4217_v61 = vld [vmem:[#allocation9 + $0x40] ss:$16 sps:$4 sm:$0xff]  }
  0x6e   :  { %566 = vmatpush1.bf16.msra.mxu0 %v4104_v25  ;;  %6124 = vst [vmem:[#allocation20_spill] sm:$0xff] %v4215_v60  ;;  %6125 = vst [vmem:[#allocation21_spill] sm:$0xff] %v4217_v61  ;;  %v4219_v62 = vld [vmem:[#allocation9 + $0x48] ss:$16 sps:$4 sm:$0xff]   ;;  %v4225_v63 = vld [vmem:[#allocation9 + $0x64] ss:$16 sps:$4 sm:$0xff]  }
  0x6f   :  { %607 = vmatpush1.bf16.msra.mxu1 %v4118_v28  ;;  %567 = vmatprep.subr.bf16.mxu0 %v4120_v29  ;;  %6126 = vst [vmem:[#allocation22_spill] sm:$0xff] %v4219_v62  ;;  %6127 = vst [vmem:[#allocation23_spill] sm:$0xff] %v4225_v63  ;;  %v4227_v1 = vld [vmem:[#allocation9 + $0x6c] ss:$16 sps:$4 sm:$0xff]   ;;  %v4229_v2 = vld [vmem:[#allocation9 + $0x60] ss:$16 sps:$4 sm:$0xff]  }
  0x70   :  { %608 = vmatprep.subr.bf16.mxu1 %v4124_v30  ;;  %6128 = vst [vmem:[#allocation24_spill] sm:$0xff] %v4227_v1  ;;  %6129 = vst [vmem:[#allocation25_spill] sm:$0xff] %v4229_v2  ;;  %v4231_v3 = vld [vmem:[#allocation9 + $0x68] ss:$16 sps:$4 sm:$0xff]   ;;  %v4237_v4 = vld [vmem:[#allocation9 + $0x84] ss:$16 sps:$4 sm:$0xff]  }
  0x71   :  { %2920 = vmatmul.mubr.msk.bf16.gmra.mrb[8].mxu0 %vm165_vm0, %v117_v31  ;;  %2924 = vmatmul.mubr.msk.bf16.gmra.mrb[8].mxu1 %vm165_vm0, %v117_v31  ;;  %6130 = vst [vmem:[#allocation26_spill] sm:$0xff] %v4231_v3  ;;  %6131 = vst [vmem:[#allocation27_spill] sm:$0xff] %v4237_v4  ;;  %v4239_v5 = vld [vmem:[#allocation9 + $0x8c] ss:$16 sps:$4 sm:$0xff]   ;;  %v4243_v6 = vld [vmem:[#allocation9 + $0x80] ss:$16 sps:$4 sm:$0xff]  }
  0x72   :  { %568 = vmatpush1.bf16.msra.mxu0 %v4127_v32  ;;  %240 = vmatprep.mubr.bf16.mxu0 %v5780_v0  ;;  %6132 = vst [vmem:[#allocation28_spill] sm:$0xff] %v4239_v5  ;;  %6133 = vst [vmem:[#allocation29_spill] sm:$0xff] %v4243_v6  ;;  %v4245_v7 = vld [vmem:[#allocation9 + $0x88] ss:$16 sps:$4 sm:$0xff]   ;;  %v4249_v16 = vld [vmem:[#allocation9 + $0xa4] ss:$16 sps:$4 sm:$0xff]  }
  0x73   :  { %609 = vmatpush1.bf16.msra.mxu1 %v4129_v33  ;;  %569 = vmatprep.subr.bf16.mxu0 %v4133_v34  ;;  %6134 = vst [vmem:[#allocation30_spill] sm:$0xff] %v4245_v7  ;;  %6135 = vst [vmem:[#allocation31_spill] sm:$0xff] %v4249_v16  ;;  %v4251_v17 = vld [vmem:[#allocation9 + $0xac] ss:$16 sps:$4 sm:$0xff]   ;;  %v4253_v19 = vld [vmem:[#allocation9 + $0xa0] ss:$16 sps:$4 sm:$0xff]  }
  0x74   :  { %610 = vmatprep.subr.bf16.mxu1 %v4136_v35  ;;  %313 = vmatprep.mubr.bf16.mxu1 %v5780_v0  ;;  %6136 = vst [vmem:[#allocation32_spill] sm:$0xff] %v4251_v17  ;;  %6137 = vst [vmem:[#allocation33_spill] sm:$0xff] %v4253_v19  ;;  %v4255_v26 = vld [vmem:[#allocation9 + $0xa8] ss:$16 sps:$4 sm:$0xff]   ;;  %v4261_v27 = vld [vmem:[#allocation9 + $0xc4] ss:$16 sps:$4 sm:$0xff]  }
  0x75   :  { %6138 = vst [vmem:[#allocation34_spill] sm:$0xff] %v4255_v26  ;;  %6139 = vst [vmem:[#allocation35_spill] sm:$0xff] %v4261_v27  ;;  %v4263_v31 = vld [vmem:[#allocation9 + $0xcc] ss:$16 sps:$4 sm:$0xff]   ;;  %v4265_v38 = vld [vmem:[#allocation9 + $0xc0] ss:$16 sps:$4 sm:$0xff]  }
  0x76   :  { %570 = vmatpush1.bf16.msra.mxu0 %v4140_v36  ;;  %6140 = vst [vmem:[#allocation36_spill] sm:$0xff] %v4263_v31  ;;  %6141 = vst [vmem:[#allocation37_spill] sm:$0xff] %v4265_v38  ;;  %v4267_v39 = vld [vmem:[#allocation9 + $0xc8] ss:$16 sps:$4 sm:$0xff]   ;;  %v4275_v48 = vld [vmem:[#allocation9 + $0xec] ss:$16 sps:$4 sm:$0xff]  }
  0x77   :  { %611 = vmatpush1.bf16.msra.mxu1 %v4142_v37  ;;  %571 = vmatprep.subr.bf16.mxu0 %v4154_v40  ;;  %6142 = vst [vmem:[#allocation38_spill] sm:$0xff] %v4267_v39  ;;  %6144 = vst [vmem:[#allocation40_spill] sm:$0xff] %v4275_v48  ;;  %s3843_s25 = scalar_lea.vmem %s2883_s0, 256 }
  0x78   :  { %612 = vmatprep.subr.bf16.mxu1 %v4158_v41  ;;  %p3844_p12 = scmp.ne.s32.totalorder %s2883_s0, %s3843_s25  ;;  %p3849_p0 = scmp.lt.s32.totalorder %s3843_s25, %s3843_s25 }
  0x79   :  { %2921 = vmatmul.mubr.msk.bf16.gmra.mrb[12].mxu0 %vm165_vm0, %v118_v43  ;;  %2925 = vmatmul.mubr.msk.bf16.gmra.mrb[12].mxu1 %vm165_vm0, %v118_v43  ;;  %v4273_v43 = vld [vmem:[#allocation9 + $0xe4] ss:$16 sps:$4 sm:$0xff]  }
  0x7a   :  { %572 = vmatpush1.bf16.msra.mxu0 %v4160_v42  ;;  %591 = vmatprep.mubr.bf16.mxu0 %v5780_v0  ;;  %6143 = vst [vmem:[#allocation39_spill] sm:$0xff] %v4273_v43  ;;  %p3850_p1 = por %p3849_p0, %p3848_p13 }
  0x7b   :  { %613 = vmatpush1.bf16.msra.mxu1 %v4162_v44  ;;  %573 = vmatprep.subr.bf16.mxu0 %v4164_v45 }
  0x7c   :  { %614 = vmatprep.subr.bf16.mxu1 %v4167_v46  ;;  %632 = vmatprep.mubr.bf16.mxu1 %v5780_v0  ;;  %v4279_v0 = vld [vmem:[#allocation9 + $0xe8] ss:$16 sps:$4 sm:$0xff]   ;;  %p3851_p2 = pnand %p3850_p1, %p3844_p12 }
  0x7d   :  { %6146 = vst [vmem:[#allocation42_spill] sm:$0xff] %v4279_v0 }
  0x7e   :  { %574 = vmatpush1.bf16.msra.mxu0 %v4172_v47 }
  0x7f   :  { %615 = vmatpush1.bf16.msra.mxu1 %v4179_v49  ;;  %1077 = vmatprep.subr.bf16.mxu0 %v4189_v51 }
  0x80   :  { %1118 = vmatprep.subr.bf16.mxu1 %v4191_v52 }
  0x81   :  { %592 = vmatmul.mubr.bf16.vlgmr.msra.gmra.mrb[16].mxu0 %v398_v50 }
  0x82   :  { %633 = vmatmul.mubr.bf16.vlgmr.msra.gmra.mrb[16].mxu1 %v398_v50  ;;  %1078 = vmatpush1.bf16.msra.mxu0 %v4193_v53  ;;  %v4277_v50 = vld [vmem:[#allocation9 + $0xe0] ss:$16 sps:$4 sm:$0xff]  }
  0x83   :  { %1119 = vmatpush1.bf16.msra.mxu1 %v4195_v54  ;;  %1079 = vmatprep.subr.bf16.mxu0 %v4201_v55  ;;  %6145 = vst [vmem:[#allocation41_spill] sm:$0xff] %v4277_v50 }
  0x84   :  { %1120 = vmatprep.subr.bf16.mxu1 %v4203_v56 }
  0x86   :  { %1080 = vmatpush1.bf16.msra.mxu0 %v4205_v57 }
  0x87   :  { %1121 = vmatpush1.bf16.msra.mxu1 %v4207_v58  ;;  %1081 = vmatprep.subr.bf16.mxu0 %v4213_v59 }
  0x88   :  { %1122 = vmatprep.subr.bf16.mxu1 %v4215_v60 }
  0x8a   :  { %1082 = vmatpush1.bf16.msra.mxu0 %v4217_v61 }
  0x8b   :  { %1123 = vmatpush1.bf16.msra.mxu1 %v4219_v62  ;;  %1083 = vmatprep.subr.bf16.mxu0 %v4225_v63 }
  0x8c   :  { %1124 = vmatprep.subr.bf16.mxu1 %v4227_v1 }
  0x8e   :  { %1084 = vmatpush1.bf16.msra.mxu0 %v4229_v2 }
  0x8f   :  { %1125 = vmatpush1.bf16.msra.mxu1 %v4231_v3  ;;  %1085 = vmatprep.subr.bf16.mxu0 %v4237_v4 }
  0x90   :  { %1126 = vmatprep.subr.bf16.mxu1 %v4239_v5 }
  0x92   :  { %1086 = vmatpush1.bf16.msra.mxu0 %v4243_v6 }
  0x93   :  { %1127 = vmatpush1.bf16.msra.mxu1 %v4245_v7  ;;  %1087 = vmatprep.subr.bf16.mxu0 %v4249_v16 }
  0x94   :  { %1128 = vmatprep.subr.bf16.mxu1 %v4251_v17 }
  0x96   :  { %1088 = vmatpush1.bf16.msra.mxu0 %v4253_v19  ;;  %v4357_v19 = vld [vmem:[#allocation9 + $0x1cc] ss:$16 sps:$4 sm:$0xff]  }
  0x97   :  { %1129 = vmatpush1.bf16.msra.mxu1 %v4255_v26  ;;  %1089 = vmatprep.subr.bf16.mxu0 %v4261_v27  ;;  %v4291_v27 = vld [vmem:[#allocation9 + $0x108] ss:$16 sps:$4 sm:$0xff]   ;;  %v4341_v26 = vld [vmem:[#allocation9 + $0x1a4] ss:$16 sps:$4 sm:$0xff]   ;;  %6172 = vst [vmem:[#allocation68_spill] sm:$0xff] %v4357_v19 }
  0x98   :  { %1130 = vmatprep.subr.bf16.mxu1 %v4263_v31  ;;  %v4285_v31 = vld [vmem:[#allocation9 + $0x104] ss:$16 sps:$4 sm:$0xff]   ;;  %6150 = vst [vmem:[#allocation46_spill] sm:$0xff] %v4291_v27  ;;  %6167 = vst [vmem:[#allocation63_spill] sm:$0xff] %v4341_v26 }
  0x99   :  { %6147 = vst [vmem:[#allocation43_spill] sm:$0xff] %v4285_v31 }
  0x9a   :  { %1090 = vmatpush1.bf16.msra.mxu0 %v4265_v38  ;;  %v4287_v38 = vld [vmem:[#allocation9 + $0x10c] ss:$16 sps:$4 sm:$0xff]  }
  0x9b   :  { %1131 = vmatpush1.bf16.msra.mxu1 %v4267_v39  ;;  %1091 = vmatprep.subr.bf16.mxu0 %v4273_v43  ;;  %6148 = vst [vmem:[#allocation44_spill] sm:$0xff] %v4287_v38  ;;  %v4289_v39 = vld [vmem:[#allocation9 + $0x100] ss:$16 sps:$4 sm:$0xff]   ;;  %v4303_v43 = vld [vmem:[#allocation9 + $0x128] ss:$16 sps:$4 sm:$0xff]  }
  0x9c   :  { %1132 = vmatprep.subr.bf16.mxu1 %v4275_v48  ;;  %6149 = vst [vmem:[#allocation45_spill] sm:$0xff] %v4289_v39  ;;  %v4297_v48 = vld [vmem:[#allocation9 + $0x124] ss:$16 sps:$4 sm:$0xff]   ;;  %6154 = vst [vmem:[#allocation50_spill] sm:$0xff] %v4303_v43 }
  0x9d   :  { %6151 = vst [vmem:[#allocation47_spill] sm:$0xff] %v4297_v48 }
  0x9e   :  { %1092 = vmatpush1.bf16.msra.mxu0 %v4277_v50  ;;  %v4299_v50 = vld [vmem:[#allocation9 + $0x12c] ss:$16 sps:$4 sm:$0xff]  }
  0x9f   :  { %1133 = vmatpush1.bf16.msra.mxu1 %v4279_v0  ;;  %1093 = vmatprep.subr.bf16.mxu0 %v4285_v31  ;;  %6152 = vst [vmem:[#allocation48_spill] sm:$0xff] %v4299_v50  ;;  %v4301_v0 = vld [vmem:[#allocation9 + $0x120] ss:$16 sps:$4 sm:$0xff]   ;;  %v4315_v31 = vld [vmem:[#allocation9 + $0x148] ss:$16 sps:$4 sm:$0xff]  }
  0xa0   :  { %1134 = vmatprep.subr.bf16.mxu1 %v4287_v38  ;;  %6153 = vst [vmem:[#allocation49_spill] sm:$0xff] %v4301_v0  ;;  %v4309_v38 = vld [vmem:[#allocation9 + $0x144] ss:$16 sps:$4 sm:$0xff]   ;;  %6158 = vst [vmem:[#allocation54_spill] sm:$0xff] %v4315_v31 }
  0xa1   :  { %6155 = vst [vmem:[#allocation51_spill] sm:$0xff] %v4309_v38 }
  0xa2   :  { %1094 = vmatpush1.bf16.msra.mxu0 %v4289_v39  ;;  %v4311_v39 = vld [vmem:[#allocation9 + $0x14c] ss:$16 sps:$4 sm:$0xff]  }
  0xa3   :  { %1135 = vmatpush1.bf16.msra.mxu1 %v4291_v27  ;;  %1095 = vmatprep.subr.bf16.mxu0 %v4297_v48  ;;  %6156 = vst [vmem:[#allocation52_spill] sm:$0xff] %v4311_v39  ;;  %v4313_v27 = vld [vmem:[#allocation9 + $0x140] ss:$16 sps:$4 sm:$0xff]   ;;  %v4327_v48 = vld [vmem:[#allocation9 + $0x168] ss:$16 sps:$4 sm:$0xff]  }
  0xa4   :  { %1136 = vmatprep.subr.bf16.mxu1 %v4299_v50  ;;  %6157 = vst [vmem:[#allocation53_spill] sm:$0xff] %v4313_v27  ;;  %v4321_v50 = vld [vmem:[#allocation9 + $0x164] ss:$16 sps:$4 sm:$0xff]   ;;  %6162 = vst [vmem:[#allocation58_spill] sm:$0xff] %v4327_v48 }
  0xa5   :  { %6159 = vst [vmem:[#allocation55_spill] sm:$0xff] %v4321_v50 }
  0xa6   :  { %1096 = vmatpush1.bf16.msra.mxu0 %v4301_v0  ;;  %v4323_v0 = vld [vmem:[#allocation9 + $0x16c] ss:$16 sps:$4 sm:$0xff]  }
  0xa7   :  { %1137 = vmatpush1.bf16.msra.mxu1 %v4303_v43  ;;  %1097 = vmatprep.subr.bf16.mxu0 %v4309_v38  ;;  %6160 = vst [vmem:[#allocation56_spill] sm:$0xff] %v4323_v0  ;;  %v4325_v43 = vld [vmem:[#allocation9 + $0x160] ss:$16 sps:$4 sm:$0xff]   ;;  %v4339_v38 = vld [vmem:[#allocation9 + $0x188] ss:$16 sps:$4 sm:$0xff]  }
  0xa8   :  { %1138 = vmatprep.subr.bf16.mxu1 %v4311_v39  ;;  %6161 = vst [vmem:[#allocation57_spill] sm:$0xff] %v4325_v43  ;;  %v4333_v39 = vld [vmem:[#allocation9 + $0x184] ss:$16 sps:$4 sm:$0xff]   ;;  %6166 = vst [vmem:[#allocation62_spill] sm:$0xff] %v4339_v38 }
  0xa9   :  { %6163 = vst [vmem:[#allocation59_spill] sm:$0xff] %v4333_v39 }
  0xaa   :  { %1098 = vmatpush1.bf16.msra.mxu0 %v4313_v27  ;;  %v4335_v27 = vld [vmem:[#allocation9 + $0x18c] ss:$16 sps:$4 sm:$0xff]  }
  0xab   :  { %1139 = vmatpush1.bf16.msra.mxu1 %v4315_v31  ;;  %1099 = vmatprep.subr.bf16.mxu0 %v4321_v50  ;;  %6164 = vst [vmem:[#allocation60_spill] sm:$0xff] %v4335_v27  ;;  %v4337_v31 = vld [vmem:[#allocation9 + $0x180] ss:$16 sps:$4 sm:$0xff]   ;;  %v4345_v50 = vld [vmem:[#allocation9 + $0x1ac] ss:$16 sps:$4 sm:$0xff]  }
  0xac   :  { %1140 = vmatprep.subr.bf16.mxu1 %v4323_v0  ;;  %6165 = vst [vmem:[#allocation61_spill] sm:$0xff] %v4337_v31  ;;  %6168 = vst [vmem:[#allocation64_spill] sm:$0xff] %v4345_v50  ;;  %v4355_v0 = vld [vmem:[#allocation9 + $0x1c4] ss:$16 sps:$4 sm:$0xff]  }
  0xad   :  { %6171 = vst [vmem:[#allocation67_spill] sm:$0xff] %v4355_v0 }
  0xae   :  { %1100 = vmatpush1.bf16.msra.mxu0 %v4325_v43  ;;  %v4351_v43 = vld [vmem:[#allocation9 + $0x1a8] ss:$16 sps:$4 sm:$0xff]  }
  0xaf   :  { %1141 = vmatpush1.bf16.msra.mxu1 %v4327_v48  ;;  %1101 = vmatprep.subr.bf16.mxu0 %v4333_v39  ;;  %v4349_v48 = vld [vmem:[#allocation9 + $0x1a0] ss:$16 sps:$4 sm:$0xff]   ;;  %6170 = vst [vmem:[#allocation66_spill] sm:$0xff] %v4351_v43 }
  0xb0   :  { %1142 = vmatprep.subr.bf16.mxu1 %v4335_v27  ;;  %6169 = vst [vmem:[#allocation65_spill] sm:$0xff] %v4349_v48  ;;  %v2926_v27 = vld [vmem:[%s5773_s6 + $0x8] sm:$0xff] }
  0xb1   :  { %v670_v39 = vpack.c.bf16 %v2926_v27, %v2926_v27  ;;  %v4376_v27 = vld [vmem:[#allocation9 + $0x1e0] ss:$16 sps:$4 sm:$0xff]  }
  0xb2   :  { %1102 = vmatpush1.bf16.msra.mxu0 %v4337_v31  ;;  %v4366_v31 = vld [vmem:[#allocation9 + $0x1c8] ss:$16 sps:$4 sm:$0xff]   ;;  %6177 = vst [vmem:[#allocation73_spill] sm:$0xff] %v4376_v27 }
  0xb3   :  { %1143 = vmatpush1.bf16.msra.mxu1 %v4339_v38  ;;  %1103 = vmatprep.subr.bf16.mxu0 %v4341_v26  ;;  %v4364_v38 = vld [vmem:[#allocation9 + $0x1c0] ss:$16 sps:$4 sm:$0xff]   ;;  %6174 = vst [vmem:[#allocation70_spill] sm:$0xff] %v4366_v31  ;;  %v4372_v26 = vld [vmem:[#allocation9 + $0x1ec] ss:$16 sps:$4 sm:$0xff]  }
  0xb4   :  { %1144 = vmatprep.subr.bf16.mxu1 %v4345_v50  ;;  %6173 = vst [vmem:[#allocation69_spill] sm:$0xff] %v4364_v38  ;;  %v4370_v50 = vld [vmem:[#allocation9 + $0x1e4] ss:$16 sps:$4 sm:$0xff]   ;;  %6176 = vst [vmem:[#allocation72_spill] sm:$0xff] %v4372_v26  ;;  %1109 = vmatprep.mubr.bf16.mxu0 %v670_v39 }
  0xb5   :  { %6175 = vst [vmem:[#allocation71_spill] sm:$0xff] %v4370_v50  ;;  %1150 = vmatprep.mubr.bf16.mxu1 %v670_v39  ;;  %v125_v39 = vlaneseq }
  0xb6   :  { %1104 = vmatpush1.bf16.msra.mxu0 %v4349_v48 }
  0xb7   :  { %1145 = vmatpush1.bf16.msra.mxu1 %v4351_v43  ;;  %1105 = vmatprep.subr.bf16.mxu0 %v4355_v0  ;;  %v4378_v43 = vld [vmem:[#allocation9 + $0x1e8] ss:$16 sps:$4 sm:$0xff]  }
  0xb8   :  { %1146 = vmatprep.subr.bf16.mxu1 %v4357_v19  ;;  %6178 = vst [vmem:[#allocation74_spill] sm:$0xff] %v4378_v43 }
  0xba   :  { %1106 = vmatpush1.bf16.msra.mxu0 %v4364_v38  ;;  %v4386_v38 = vshrl.u32 %v125_v39, 7 }
  0xbb   :  { %1147 = vmatpush1.bf16.msra.mxu1 %v4366_v31  ;;  %1107 = vmatprep.subr.bf16.mxu0 %v4370_v50  ;;  %v123_v50 = vld [vmem:[#allocation6] sm:$0xf] }
  0xbc   :  { %1148 = vmatprep.subr.bf16.mxu1 %v4372_v26  ;;  %6179 = vst [vmem:[#allocation75_spill] sm:$0xff] %v4386_v38  ;;  %v5874_v31 = vsub.s32 2, %v4386_v38  ;;  %v5883_v19 = vsub.s32 3, %v4386_v38  ;;  %v5884_v0 = vsub.s32 0, %v4386_v38  ;;  %v5891_v26 = vsub.s32 1, %v4386_v38 }
  0xbe   :  { %1108 = vmatpush1.bf16.msra.mxu0 %v4376_v27  ;;  %v4394_v27 = vrot.slane %v123_v50, %v5874_v31  ;;  %v128_v39 = vrot.slane %v123_v50, %v5884_v0  ;;  %v132_v16 = vrot.slane %v123_v50, %v5891_v26 }
  0xbf   :  { %1149 = vmatpush1.bf16.msra.mxu1 %v4378_v43  ;;  %1188 = vmatprep.subr.bf16.mxu0 %v4056_v8 }
  0xc0   :  { %1229 = vmatprep.subr.bf16.mxu1 %v4058_v9  ;;  %v4402_v9 = vrot.slane %v123_v50, %v5883_v19 }
 0x134   :  { %v4396_v43 = vpop.f32.mrb[0].mxu0  ;;  %v4398_v8 = vpop.f32.mrb[0].mxu1 }
 0x135   :  { %v214_v48 = vpop.f32.mrb[1].mxu0  ;;  %v287_v17 = vpop.f32.mrb[1].mxu1 }
 0x136   :  { %v216_v7 = vpop.f32.mrb[2].mxu0  ;;  %v289_v6 = vpop.f32.mrb[2].mxu1 }
 0x137   :  { %v4408_v31 = vadd.f32 %v216_v7, %v128_v39  ;;  %v218_v5 = vpop.f32.mrb[3].mxu0  ;;  %v4411_v4 = vadd.f32 %v289_v6, %v4394_v27  ;;  %v291_v3 = vpop.f32.mrb[3].mxu1 }
 0x138   :  { %v4413_v2 = vadd.f32 %v218_v5, %v132_v16  ;;  %v4416_v19 = vadd.f32 %v291_v3, %v4402_v9 }
 0x139   :  { %6180 = vst [vmem:[#allocation76_spill] sm:$0xff] %v4408_v31  ;;  %6181 = vst [vmem:[#allocation77_spill] sm:$0xff] %v4411_v4 }
 0x13a   :  { %6182 = vst [vmem:[#allocation78_spill] sm:$0xff] %v4413_v2  ;;  %6183 = vst [vmem:[#allocation79_spill] sm:$0xff] %v4416_v19 }
 0x13c   :  { %v222_v0 = vpop.f32.mrb[4].mxu0  ;;  %v295_v1 = vpop.f32.mrb[4].mxu1 }
 0x13d   :  { %v4418_v63 = vadd.f32 %v222_v0, %v128_v39  ;;  %v224_v38 = vpop.f32.mrb[5].mxu0  ;;  %v4421_v50 = vadd.f32 %v295_v1, %v4394_v27  ;;  %v297_v7 = vpop.f32.mrb[5].mxu1 }
 0x13e   :  { %v4423_v26 = vadd.f32 %v224_v38, %v132_v16  ;;  %v226_v31 = vpop.f32.mrb[6].mxu0  ;;  %v4426_v6 = vadd.f32 %v297_v7, %v4402_v9  ;;  %v299_v5 = vpop.f32.mrb[6].mxu1 }
 0x13f   :  { %6184 = vst [vmem:[#allocation80_spill] sm:$0xff] %v4418_v63  ;;  %6185 = vst [vmem:[#allocation81_spill] sm:$0xff] %v4421_v50  ;;  %v4428_v2 = vadd.f32 %v226_v31, %v128_v39  ;;  %v228_v3 = vpop.f32.mrb[7].mxu0  ;;  %v4431_v19 = vadd.f32 %v299_v5, %v4394_v27  ;;  %v301_v0 = vpop.f32.mrb[7].mxu1 }
 0x140   :  { %6186 = vst [vmem:[#allocation82_spill] sm:$0xff] %v4423_v26  ;;  %6187 = vst [vmem:[#allocation83_spill] sm:$0xff] %v4426_v6  ;;  %v4433_v63 = vadd.f32 %v228_v3, %v132_v16  ;;  %v4436_v1 = vadd.f32 %v301_v0, %v4402_v9 }
 0x141   :  { %6188 = vst [vmem:[#allocation84_spill] sm:$0xff] %v4428_v2  ;;  %6189 = vst [vmem:[#allocation85_spill] sm:$0xff] %v4431_v19 }
 0x142   :  { %6190 = vst [vmem:[#allocation86_spill] sm:$0xff] %v4433_v63  ;;  %6191 = vst [vmem:[#allocation87_spill] sm:$0xff] %v4436_v1 }
 0x144   :  { %v232_v50 = vpop.f32.mrb[8].mxu0  ;;  %v305_v38 = vpop.f32.mrb[8].mxu1 }
 0x145   :  { %v4438_v26 = vadd.f32 %v232_v50, %v128_v39  ;;  %v234_v4 = vpop.f32.mrb[9].mxu0  ;;  %v4441_v7 = vadd.f32 %v305_v38, %v4394_v27  ;;  %v307_v31 = vpop.f32.mrb[9].mxu1 }
 0x146   :  { %v4443_v2 = vadd.f32 %v234_v4, %v132_v16  ;;  %v236_v6 = vpop.f32.mrb[10].mxu0  ;;  %v4446_v5 = vadd.f32 %v307_v31, %v4402_v9  ;;  %v309_v3 = vpop.f32.mrb[10].mxu1 }
 0x147   :  { %6192 = vst [vmem:[#allocation88_spill] sm:$0xff] %v4438_v26  ;;  %6193 = vst [vmem:[#allocation89_spill] sm:$0xff] %v4441_v7  ;;  %v4448_v63 = vadd.f32 %v236_v6, %v128_v39  ;;  %v238_v0 = vpop.f32.mrb[11].mxu0  ;;  %v4451_v1 = vadd.f32 %v309_v3, %v4394_v27  ;;  %v311_v50 = vpop.f32.mrb[11].mxu1 }
 0x148   :  { %6194 = vst [vmem:[#allocation90_spill] sm:$0xff] %v4443_v2  ;;  %6195 = vst [vmem:[#allocation91_spill] sm:$0xff] %v4446_v5  ;;  %v4453_v26 = vadd.f32 %v238_v0, %v132_v16  ;;  %v4456_v38 = vadd.f32 %v311_v50, %v4402_v9 }
 0x149   :  { %6196 = vst [vmem:[#allocation92_spill] sm:$0xff] %v4448_v63  ;;  %6197 = vst [vmem:[#allocation93_spill] sm:$0xff] %v4451_v1 }
 0x14a   :  { %6198 = vst [vmem:[#allocation94_spill] sm:$0xff] %v4453_v26  ;;  %6199 = vst [vmem:[#allocation95_spill] sm:$0xff] %v4456_v38 }
 0x14c   :  { %v242_v7 = vpop.f32.mrb[12].mxu0  ;;  %v315_v4 = vpop.f32.mrb[12].mxu1 }
 0x14d   :  { %v4458_v2 = vadd.f32 %v242_v7, %v128_v39  ;;  %v244_v19 = vpop.f32.mrb[13].mxu0  ;;  %v4461_v31 = vadd.f32 %v315_v4, %v4394_v27  ;;  %v317_v6 = vpop.f32.mrb[13].mxu1 }
 0x14e   :  { %v4463_v63 = vadd.f32 %v244_v19, %v132_v16  ;;  %v246_v5 = vpop.f32.mrb[14].mxu0  ;;  %v4466_v3 = vadd.f32 %v317_v6, %v4402_v9  ;;  %v319_v0 = vpop.f32.mrb[14].mxu1  ;;  %v213_v19 = vadd.f32 %v4396_v43, %v128_v39  ;;  %v286_v6 = vadd.f32 %v4398_v8, %v4394_v27 }
 0x14f   :  { %6200 = vst [vmem:[#allocation96_spill] sm:$0xff] %v4458_v2  ;;  %6201 = vst [vmem:[#allocation97_spill] sm:$0xff] %v4461_v31  ;;  %v4468_v26 = vadd.f32 %v246_v5, %v128_v39  ;;  %v248_v50 = vpop.f32.mrb[15].mxu0  ;;  %v4471_v38 = vadd.f32 %v319_v0, %v4394_v27  ;;  %v321_v7 = vpop.f32.mrb[15].mxu1  ;;  %v288_v5 = vadd.f32 %v287_v17, %v4402_v9 }
 0x150   :  { %6202 = vst [vmem:[#allocation98_spill] sm:$0xff] %v4463_v63  ;;  %6203 = vst [vmem:[#allocation99_spill] sm:$0xff] %v4466_v3  ;;  %v4473_v2 = vadd.f32 %v248_v50, %v132_v16  ;;  %v4476_v4 = vadd.f32 %v321_v7, %v4402_v9  ;;  %v215_v63 = vadd.f32 %v214_v48, %v132_v16 }
 0x151   :  { %6204 = vst [vmem:[#allocation100_spill] sm:$0xff] %v4468_v26  ;;  %6205 = vst [vmem:[#allocation101_spill] sm:$0xff] %v4471_v38 }
 0x152   :  { %6206 = vst [vmem:[#allocation102_spill] sm:$0xff] %v4473_v2  ;;  %6207 = vst [vmem:[#allocation103_spill] sm:$0xff] %v4476_v4 }
 0x154   :  { %v593_v3 = vpop.f32.mrb[16].mxu0 }
 0x155   :  { %v641_v26 = vadd.f32 %v593_v3, %v213_v19  ;;  %v634_v31 = vpop.f32.mrb[16].mxu1  ;;  %v595_v1 = vpop.f32.mrb[17].mxu0  ;;  %v6208_v19 = vmov 0  }
 0x156   :  { %v643_v0 = vadd.f32 %v634_v31, %v286_v6  ;;  %v642_v38 = vadd.f32 %v595_v1, %v215_v63  ;;  %v636_v62 = vpop.f32.mrb[17].mxu1  ;;  %v597_v50 = vpop.f32.mrb[18].mxu0  ;;  %v6239_v6 = vld [vmem:[#allocation50_spill] sm:$0xff] }
 0x157   :  { %v2959_v2 = vmul.f32 -1.442695, %v641_v26  ;;  %v644_v61 = vadd.f32 %v636_v62, %v288_v5  ;;  %v598_v7 = vpop.f32.mrb[19].mxu0  ;;  %v638_v4 = vpop.f32.mrb[18].mxu1  ;;  %v391_v26 = vld [vmem:[#allocation11] sm:$0xff]  ;;  %v6240_v5 = vld [vmem:[#allocation51_spill] sm:$0xff] }
 0x158   :  { %v2960_v60 = vmul.f32 -1.442695, %v642_v38  ;;  %v639_v43 = vpop.f32.mrb[19].mxu1  ;;  %v2961_v16 = vmul.f32 -1.442695, %v643_v0  ;;  %v6241_v0 = vld [vmem:[#allocation52_spill] sm:$0xff] }
 0x159   :  { %3281 = vpow2.f32 %v2959_v2  ;;  %v6242_v50 = vld [vmem:[#allocation53_spill] sm:$0xff]  ;;  %v6243_v7 = vld [vmem:[#allocation54_spill] sm:$0xff]  ;;  %v6244_v43 = vld [vmem:[#allocation55_spill] sm:$0xff] }
 0x15a   :  { %3283 = vpow2.f32 %v2960_v60 }
 0x15b   :  { %3285 = vpow2.f32 %v2961_v16  ;;  %v6245_v16 = vld [vmem:[#allocation56_spill] sm:$0xff] }
 0x15c   :  { %3287 = vtanh.f32 %v644_v61 }
 0x163   :  { %v3282_v48 = vpop.eup %3281 }
 0x164   :  { %v654_v27 = vadd.f32 1.0, %v3282_v48  ;;  %v3284_v17 = vpop.eup %3283  ;;  %v6246_v48 = vld [vmem:[#allocation57_spill] sm:$0xff] }
 0x165   :  { %v655_v8 = vadd.f32 1.0, %v3284_v17  ;;  %v3286_v63 = vpop.eup %3285  ;;  %v6248_v17 = vld [vmem:[#allocation59_spill] sm:$0xff] }
 0x166   :  { %3289 = vrcp.f32 %v654_v27  ;;  %v3288_v9 = vpop.eup %3287  ;;  %v656_v31 = vadd.f32 1.0, %v3286_v63  ;;  %v6247_v27 = vld [vmem:[#allocation58_spill] sm:$0xff]  ;;  %v6250_v63 = vld [vmem:[#allocation61_spill] sm:$0xff] }
 0x167   :  { %3291 = vrcp.f32 %v655_v8  ;;  %v6249_v8 = vld [vmem:[#allocation60_spill] sm:$0xff] }
 0x168   :  { %3293 = vrcp.f32 %v656_v31  ;;  %v6256_v31 = vld [vmem:[#allocation67_spill] sm:$0xff] }
 0x170   :  { %v3290_v39 = vpop.eup %3289 }
 0x171   :  { %v665_v62 = vmul.f32 %v3290_v39, %v3288_v9  ;;  %v3292_v1 = vpop.eup %3291  ;;  %v6251_v9 = vld [vmem:[#allocation62_spill] sm:$0xff]  ;;  %v6252_v39 = vld [vmem:[#allocation63_spill] sm:$0xff] }
 0x172   :  { %v664_v38 = vmul.f32 %v3292_v1, %v391_v26  ;;  %v3294_v60 = vpop.eup %3293  ;;  %v6253_v26 = vld [vmem:[#allocation64_spill] sm:$0xff]  ;;  %v6255_v1 = vld [vmem:[#allocation66_spill] sm:$0xff] }
 0x174   :  { %v4482_v3 = vadd.f32 %v665_v62, %v664_v38  ;;  %v6254_v62 = vld [vmem:[#allocation65_spill] sm:$0xff]  ;;  %v6257_v38 = vld [vmem:[#allocation68_spill] sm:$0xff] }
 0x176   :  { %3295 = vtanh.f32 %v4482_v3 }
 0x180   :  { %v3296_v2 = vpop.eup %3295 }
 0x181   :  { %v668_v4 = vmul.f32 %v3296_v2, %v3294_v60  ;;  %v6258_v60 = vld [vmem:[#allocation69_spill] sm:$0xff]  ;;  %v6259_v2 = vld [vmem:[#allocation70_spill] sm:$0xff] }
 0x183   :  { %v669_v61 = vpack.c.bf16 %v668_v4, %v668_v4  ;;  %v6260_v4 = vld [vmem:[#allocation71_spill] sm:$0xff] }
 0x185   :  { %1110 = vmatmul.mubr.bf16.vlgmr.msra.gmra.mrb[20].mxu0 %v669_v61  ;;  %1151 = vmatmul.mubr.bf16.vlgmr.msra.gmra.mrb[20].mxu1 %v669_v61 }
 0x186   :  { %1189 = vmatpush1.bf16.msra.mxu0 %v4060_v10  ;;  %1230 = vmatpush1.bf16.msra.mxu1 %v4062_v11  ;;  %v6209_v10 = vld [vmem:[#allocation20_spill] sm:$0xff]  ;;  %v6210_v11 = vld [vmem:[#allocation21_spill] sm:$0xff] }
 0x187   :  { %1190 = vmatprep.subr.bf16.mxu0 %v4065_v12  ;;  %1231 = vmatprep.subr.bf16.mxu1 %v4069_v13  ;;  %v6211_v12 = vld [vmem:[#allocation22_spill] sm:$0xff]  ;;  %v6212_v13 = vld [vmem:[#allocation23_spill] sm:$0xff] }
 0x188   :  { %1220 = vmatprep.mubr.bf16.mxu0 %v6208_v19  ;;  %1261 = vmatprep.mubr.bf16.mxu1 %v6208_v19 }
 0x18a   :  { %1191 = vmatpush1.bf16.msra.mxu0 %v4073_v14  ;;  %1232 = vmatpush1.bf16.msra.mxu1 %v4075_v15  ;;  %v6213_v14 = vld [vmem:[#allocation24_spill] sm:$0xff]  ;;  %v6214_v15 = vld [vmem:[#allocation25_spill] sm:$0xff] }
 0x18b   :  { %1192 = vmatprep.subr.bf16.mxu0 %v4087_v18  ;;  %1233 = vmatprep.subr.bf16.mxu1 %v4090_v20  ;;  %v6215_v18 = vld [vmem:[#allocation26_spill] sm:$0xff]  ;;  %v6216_v20 = vld [vmem:[#allocation27_spill] sm:$0xff] }
 0x18e   :  { %1193 = vmatpush1.bf16.msra.mxu0 %v4092_v21  ;;  %1234 = vmatpush1.bf16.msra.mxu1 %v4095_v22  ;;  %v6217_v21 = vld [vmem:[#allocation28_spill] sm:$0xff]  ;;  %v6218_v22 = vld [vmem:[#allocation29_spill] sm:$0xff] }
 0x18f   :  { %1194 = vmatprep.subr.bf16.mxu0 %v4099_v23  ;;  %1235 = vmatprep.subr.bf16.mxu1 %v4102_v24  ;;  %v6219_v23 = vld [vmem:[#allocation30_spill] sm:$0xff]  ;;  %v6220_v24 = vld [vmem:[#allocation31_spill] sm:$0xff] }
 0x192   :  { %1195 = vmatpush1.bf16.msra.mxu0 %v4104_v25  ;;  %1236 = vmatpush1.bf16.msra.mxu1 %v4118_v28  ;;  %v6221_v25 = vld [vmem:[#allocation32_spill] sm:$0xff]  ;;  %v6222_v28 = vld [vmem:[#allocation33_spill] sm:$0xff] }
 0x193   :  { %1196 = vmatprep.subr.bf16.mxu0 %v4120_v29  ;;  %1237 = vmatprep.subr.bf16.mxu1 %v4124_v30  ;;  %v6223_v29 = vld [vmem:[#allocation34_spill] sm:$0xff]  ;;  %v6224_v30 = vld [vmem:[#allocation35_spill] sm:$0xff] }
 0x196   :  { %1197 = vmatpush1.bf16.msra.mxu0 %v4127_v32  ;;  %1238 = vmatpush1.bf16.msra.mxu1 %v4129_v33  ;;  %v6225_v32 = vld [vmem:[#allocation36_spill] sm:$0xff]  ;;  %v6226_v33 = vld [vmem:[#allocation37_spill] sm:$0xff] }
 0x197   :  { %1198 = vmatprep.subr.bf16.mxu0 %v4133_v34  ;;  %1239 = vmatprep.subr.bf16.mxu1 %v4136_v35  ;;  %v6227_v34 = vld [vmem:[#allocation38_spill] sm:$0xff]  ;;  %v6228_v35 = vld [vmem:[#allocation39_spill] sm:$0xff] }
 0x19a   :  { %1199 = vmatpush1.bf16.msra.mxu0 %v4140_v36  ;;  %1240 = vmatpush1.bf16.msra.mxu1 %v4142_v37  ;;  %v6229_v36 = vld [vmem:[#allocation40_spill] sm:$0xff]  ;;  %v6230_v37 = vld [vmem:[#allocation41_spill] sm:$0xff] }
 0x19b   :  { %1200 = vmatprep.subr.bf16.mxu0 %v4154_v40  ;;  %1241 = vmatprep.subr.bf16.mxu1 %v4158_v41  ;;  %v6231_v40 = vld [vmem:[#allocation42_spill] sm:$0xff]  ;;  %v6232_v41 = vld [vmem:[#allocation43_spill] sm:$0xff] }
 0x19e   :  { %1201 = vmatpush1.bf16.msra.mxu0 %v4160_v42  ;;  %1242 = vmatpush1.bf16.msra.mxu1 %v4162_v44  ;;  %v6233_v42 = vld [vmem:[#allocation44_spill] sm:$0xff]  ;;  %v6234_v44 = vld [vmem:[#allocation45_spill] sm:$0xff] }
 0x19f   :  { %1202 = vmatprep.subr.bf16.mxu0 %v4164_v45  ;;  %1243 = vmatprep.subr.bf16.mxu1 %v4167_v46  ;;  %v6235_v45 = vld [vmem:[#allocation46_spill] sm:$0xff]  ;;  %v6236_v46 = vld [vmem:[#allocation47_spill] sm:$0xff] }
 0x1a2   :  { %1203 = vmatpush1.bf16.msra.mxu0 %v4172_v47  ;;  %1244 = vmatpush1.bf16.msra.mxu1 %v4179_v49  ;;  %v6237_v47 = vld [vmem:[#allocation48_spill] sm:$0xff]  ;;  %v6238_v49 = vld [vmem:[#allocation49_spill] sm:$0xff] }
 0x1a3   :  { %1300 = vmatprep.subr.bf16.mxu0 %v4189_v51  ;;  %1341 = vmatprep.subr.bf16.mxu1 %v4191_v52 }
 0x1a5   :  { %1221 = vmatmul.mubr.bf16.vlgmr.msra.gmra.mrb[24].mxu0 %v669_v61  ;;  %1262 = vmatmul.mubr.bf16.vlgmr.msra.gmra.mrb[24].mxu1 %v669_v61  ;;  %v6261_v61 = vld [vmem:[#allocation72_spill] sm:$0xff] }
 0x1a6   :  { %1301 = vmatpush1.bf16.msra.mxu0 %v4193_v53  ;;  %1342 = vmatpush1.bf16.msra.mxu1 %v4195_v54 }
 0x1a7   :  { %1302 = vmatprep.subr.bf16.mxu0 %v4201_v55  ;;  %1343 = vmatprep.subr.bf16.mxu1 %v4203_v56 }
 0x1aa   :  { %1303 = vmatpush1.bf16.msra.mxu0 %v4205_v57  ;;  %1344 = vmatpush1.bf16.msra.mxu1 %v4207_v58 }
 0x1ab   :  { %1304 = vmatprep.subr.bf16.mxu0 %v4213_v59  ;;  %1345 = vmatprep.subr.bf16.mxu1 %v6209_v10 }
 0x1ae   :  { %1305 = vmatpush1.bf16.msra.mxu0 %v6210_v11  ;;  %1346 = vmatpush1.bf16.msra.mxu1 %v6211_v12 }
 0x1af   :  { %1306 = vmatprep.subr.bf16.mxu0 %v6212_v13  ;;  %1347 = vmatprep.subr.bf16.mxu1 %v6213_v14 }
 0x1b2   :  { %1307 = vmatpush1.bf16.msra.mxu0 %v6214_v15  ;;  %1348 = vmatpush1.bf16.msra.mxu1 %v6215_v18 }
 0x1b3   :  { %1308 = vmatprep.subr.bf16.mxu0 %v6216_v20  ;;  %1349 = vmatprep.subr.bf16.mxu1 %v6217_v21 }
 0x1b6   :  { %1309 = vmatpush1.bf16.msra.mxu0 %v6218_v22  ;;  %1350 = vmatpush1.bf16.msra.mxu1 %v6219_v23 }
 0x1b7   :  { %1310 = vmatprep.subr.bf16.mxu0 %v6220_v24  ;;  %1351 = vmatprep.subr.bf16.mxu1 %v6221_v25 }
 0x1ba   :  { %1311 = vmatpush1.bf16.msra.mxu0 %v6222_v28  ;;  %1352 = vmatpush1.bf16.msra.mxu1 %v6223_v29 }
 0x1bb   :  { %1312 = vmatprep.subr.bf16.mxu0 %v6224_v30  ;;  %1353 = vmatprep.subr.bf16.mxu1 %v6225_v32 }
 0x1be   :  { %1313 = vmatpush1.bf16.msra.mxu0 %v6226_v33  ;;  %1354 = vmatpush1.bf16.msra.mxu1 %v6227_v34 }
 0x1bf   :  { %1314 = vmatprep.subr.bf16.mxu0 %v6228_v35  ;;  %1355 = vmatprep.subr.bf16.mxu1 %v6229_v36 }
 0x1c2   :  { %1315 = vmatpush1.bf16.msra.mxu0 %v6230_v37  ;;  %1356 = vmatpush1.bf16.msra.mxu1 %v6231_v40 }
 0x1c3   :  { %1316 = vmatprep.subr.bf16.mxu0 %v6232_v41  ;;  %1357 = vmatprep.subr.bf16.mxu1 %v6233_v42 }
 0x1c6   :  { %1317 = vmatpush1.bf16.msra.mxu0 %v6234_v44  ;;  %1358 = vmatpush1.bf16.msra.mxu1 %v6235_v45 }
 0x1c7   :  { %1318 = vmatprep.subr.bf16.mxu0 %v6236_v46  ;;  %1359 = vmatprep.subr.bf16.mxu1 %v6237_v47 }
 0x1ca   :  { %1319 = vmatpush1.bf16.msra.mxu0 %v6238_v49  ;;  %1360 = vmatpush1.bf16.msra.mxu1 %v6239_v6 }
 0x1cb   :  { %1320 = vmatprep.subr.bf16.mxu0 %v6240_v5  ;;  %1361 = vmatprep.subr.bf16.mxu1 %v6241_v0 }
 0x1ce   :  { %1321 = vmatpush1.bf16.msra.mxu0 %v6242_v50  ;;  %1362 = vmatpush1.bf16.msra.mxu1 %v6243_v7 }
 0x1cf   :  { %1322 = vmatprep.subr.bf16.mxu0 %v6244_v43  ;;  %1363 = vmatprep.subr.bf16.mxu1 %v6245_v16 }
 0x1d2   :  { %1323 = vmatpush1.bf16.msra.mxu0 %v6246_v48  ;;  %1364 = vmatpush1.bf16.msra.mxu1 %v6247_v27 }
 0x1d3   :  { %1324 = vmatprep.subr.bf16.mxu0 %v6248_v17  ;;  %1365 = vmatprep.subr.bf16.mxu1 %v6249_v8 }
 0x1d6   :  { %1325 = vmatpush1.bf16.msra.mxu0 %v6250_v63  ;;  %1366 = vmatpush1.bf16.msra.mxu1 %v6251_v9  ;;  %v6262_v9 = vld [vmem:[#allocation73_spill] sm:$0xff] }
 0x1d7   :  { %1326 = vmatprep.subr.bf16.mxu0 %v6252_v39  ;;  %1367 = vmatprep.subr.bf16.mxu1 %v6253_v26  ;;  %v6263_v39 = vld [vmem:[#allocation74_spill] sm:$0xff] }
 0x1d8   :  { %v4581_v26 = vld [vmem:[#allocation8 + $0x4] ss:$16 sps:$4 sm:$0xff]  }
 0x1d9   :  { %6264 = vst [vmem:[#allocation20_spill] sm:$0xff] %v4581_v26 }
 0x1da   :  { %1327 = vmatpush1.bf16.msra.mxu0 %v6254_v62  ;;  %1368 = vmatpush1.bf16.msra.mxu1 %v6255_v1  ;;  %v4584_v1 = vld [vmem:[#allocation8 + $0xc] ss:$16 sps:$4 sm:$0xff]  }
 0x1db   :  { %1328 = vmatprep.subr.bf16.mxu0 %v6256_v31  ;;  %1369 = vmatprep.subr.bf16.mxu1 %v6257_v38  ;;  %6265 = vst [vmem:[#allocation21_spill] sm:$0xff] %v4584_v1 }
 0x1de   :  { %1329 = vmatpush1.bf16.msra.mxu0 %v6258_v60  ;;  %1370 = vmatpush1.bf16.msra.mxu1 %v6259_v2  ;;  %v735_v2 = vld [vmem:[%s5772_s5] sm:$0xf]  ;;  %v6266_v60 = vld [vmem:[#allocation75_spill] sm:$0xff] }
 0x1df   :  { %1330 = vmatprep.subr.bf16.mxu0 %v6260_v4  ;;  %1371 = vmatprep.subr.bf16.mxu1 %v6261_v61  ;;  %v6267_v4 = vsub.s32 0, %v6266_v60 }
 0x1e1   :  { %v4592_v38 = vrot.slane %v735_v2, %v6267_v4  ;;  %v6271_v4 = vsub.s32 2, %v6266_v60 }
 0x1e2   :  { %1331 = vmatpush1.bf16.msra.mxu0 %v6262_v9  ;;  %1372 = vmatpush1.bf16.msra.mxu1 %v6263_v39  ;;  %v6269_v9 = vsub.s32 1, %v6266_v60 }
 0x1e3   :  { %1411 = vmatprep.subr.bf16.mxu0 %v4581_v26  ;;  %1452 = vmatprep.subr.bf16.mxu1 %v4584_v1  ;;  %6268 = vst [vmem:[#allocation22_spill] sm:$0xff] %v4592_v38  ;;  %v4602_v7 = vrot.slane %v735_v2, %v6271_v4  ;;  %v393_v4 = vld [vmem:[#allocation11 + $0x8] sm:$0xff] }
 0x1e4   :  { %v4596_v61 = vrot.slane %v735_v2, %v6269_v9  ;;  %v6273_v9 = vsub.s32 3, %v6266_v60 }
 0x1e5   :  { %6272 = vst [vmem:[#allocation24_spill] sm:$0xff] %v4602_v7 }
 0x1e6   :  { %6270 = vst [vmem:[#allocation23_spill] sm:$0xff] %v4596_v61  ;;  %v4606_v50 = vrot.slane %v735_v2, %v6273_v9 }
 0x1e8   :  { %6274 = vst [vmem:[#allocation25_spill] sm:$0xff] %v4606_v50 }
 0x258   :  { %v1111_v39 = vpop.f32.mrb[20].mxu0  ;;  %v1152_v31 = vpop.f32.mrb[20].mxu1 }
 0x259   :  { %v1112_v26 = vadd.f32 %v1111_v39, %v4592_v38  ;;  %v1113_v62 = vpop.f32.mrb[21].mxu0  ;;  %v1154_v63 = vpop.f32.mrb[21].mxu1  ;;  %v1153_v39 = vadd.f32 %v1152_v31, %v4602_v7  ;;  %v6278_v38 = vld [vmem:[#allocation79_spill] sm:$0xff] }
 0x25a   :  { %v1114_v1 = vadd.f32 %v1113_v62, %v4596_v61  ;;  %v1115_v8 = vpop.f32.mrb[22].mxu0  ;;  %v1156_v17 = vpop.f32.mrb[22].mxu1  ;;  %v1155_v62 = vadd.f32 %v1154_v63, %v4606_v50 }
 0x25b   :  { %v3026_v27 = vmul.f32 -1.442695, %v1112_v26  ;;  %v1116_v48 = vpop.f32.mrb[23].mxu0  ;;  %v1157_v16 = vpop.f32.mrb[23].mxu1  ;;  %v3028_v8 = vmul.f32 -1.442695, %v1153_v39 }
 0x25c   :  { %v3027_v43 = vmul.f32 -1.442695, %v1114_v1  ;;  %v6275_v39 = vld [vmem:[#allocation76_spill] sm:$0xff] }
 0x25d   :  { %3297 = vpow2.f32 %v3026_v27 }
 0x25e   :  { %3299 = vpow2.f32 %v3027_v43 }
 0x25f   :  { %3301 = vtanh.f32 %v1155_v62  ;;  %v6276_v62 = vld [vmem:[#allocation77_spill] sm:$0xff] }
 0x260   :  { %3303 = vpow2.f32 %v3028_v8 }
 0x267   :  { %v3298_v17 = vpop.eup %3297 }
 0x268   :  { %v1168_v26 = vadd.f32 1.0, %v3298_v17  ;;  %v3300_v16 = vpop.eup %3299 }
 0x269   :  { %v1169_v48 = vadd.f32 1.0, %v3300_v16  ;;  %v3302_v27 = vpop.eup %3301  ;;  %v6277_v16 = vld [vmem:[#allocation78_spill] sm:$0xff] }
 0x26a   :  { %3305 = vrcp.f32 %v1168_v26  ;;  %v3304_v1 = vpop.eup %3303 }
 0x26b   :  { %3307 = vrcp.f32 %v1169_v48  ;;  %v1170_v9 = vadd.f32 1.0, %v3304_v1 }
 0x26d   :  { %3309 = vrcp.f32 %v1170_v9 }
 0x274   :  { %v3306_v43 = vpop.eup %3305 }
 0x275   :  { %v1179_v60 = vmul.f32 %v3306_v43, %v3302_v27  ;;  %v3308_v2 = vpop.eup %3307 }
 0x276   :  { %v1178_v61 = vmul.f32 %v3308_v2, %v393_v4 }
 0x278   :  { %v1222_v31 = vpop.f32.mrb[24].mxu0  ;;  %v1263_v7 = vpop.f32.mrb[24].mxu1  ;;  %v4610_v63 = vadd.f32 %v1179_v60, %v1178_v61 }
 0x279   :  { %v1270_v17 = vadd.f32 %v1222_v31, %v6275_v39  ;;  %v1272_v50 = vadd.f32 %v1263_v7, %v6276_v62  ;;  %v1224_v8 = vpop.f32.mrb[25].mxu0  ;;  %v1265_v26 = vpop.f32.mrb[25].mxu1 }
 0x27a   :  { %v1271_v48 = vadd.f32 %v1224_v8, %v6277_v16  ;;  %v1273_v0 = vadd.f32 %v1265_v26, %v6278_v38  ;;  %v1226_v5 = vpop.f32.mrb[26].mxu0  ;;  %v1267_v27 = vpop.f32.mrb[26].mxu1  ;;  %3311 = vtanh.f32 %v4610_v63 }
 0x27b   :  { %v3029_v43 = vmul.f32 -1.442695, %v1270_v17  ;;  %v1227_v1 = vpop.f32.mrb[27].mxu0  ;;  %v1268_v4 = vpop.f32.mrb[27].mxu1  ;;  %v3031_v7 = vmul.f32 -1.442695, %v1272_v50 }
 0x27c   :  { %v3030_v61 = vmul.f32 -1.442695, %v1271_v48  ;;  %v3310_v60 = vpop.eup %3309 }
 0x27d   :  { %3313 = vpow2.f32 %v3029_v43 }
 0x27e   :  { %3315 = vpow2.f32 %v3030_v61 }
 0x27f   :  { %3317 = vtanh.f32 %v1273_v0 }
 0x280   :  { %3319 = vpow2.f32 %v3031_v7  ;;  %v4634_v7 = vld [vmem:[#allocation8 + $0x2c] ss:$16 sps:$4 sm:$0xff]  }
 0x284   :  { %v3312_v2 = vpop.eup %3311 }
 0x285   :  { %v1182_v31 = vmul.f32 %v3312_v2, %v3310_v60  ;;  %v4625_v60 = vld [vmem:[#allocation8] ss:$16 sps:$4 sm:$0xff]   ;;  %v4628_v2 = vld [vmem:[#allocation8 + $0x8] ss:$16 sps:$4 sm:$0xff]  }
 0x287   :  { %v3314_v39 = vpop.eup %3313  ;;  %v1299_v62 = vpack.c.bf16 %v1182_v31, %v1182_v31  ;;  %v4639_v31 = vld [vmem:[#allocation8 + $0x20] ss:$16 sps:$4 sm:$0xff]  }
 0x288   :  { %v1283_v9 = vadd.f32 1.0, %v3314_v39  ;;  %v3316_v8 = vpop.eup %3315  ;;  %v4642_v39 = vld [vmem:[#allocation8 + $0x28] ss:$16 sps:$4 sm:$0xff]  }
 0x289   :  { %v1284_v5 = vadd.f32 1.0, %v3316_v8  ;;  %1332 = vmatprep.mubr.bf16.mxu0 %v1299_v62  ;;  %1373 = vmatprep.mubr.bf16.mxu1 %v1299_v62  ;;  %v3318_v38 = vpop.eup %3317  ;;  %v4648_v62 = vld [vmem:[#allocation8 + $0x4c] ss:$16 sps:$4 sm:$0xff]   ;;  %v4651_v8 = vld [vmem:[#allocation8 + $0x40] ss:$16 sps:$4 sm:$0xff]  }
 0x28a   :  { %3321 = vrcp.f32 %v1283_v9  ;;  %v3320_v17 = vpop.eup %3319  ;;  %v4645_v9 = vld [vmem:[#allocation8 + $0x44] ss:$16 sps:$4 sm:$0xff]  }
 0x28b   :  { %3323 = vrcp.f32 %v1284_v5  ;;  %v1285_v27 = vadd.f32 1.0, %v3320_v17  ;;  %v4654_v5 = vld [vmem:[#allocation8 + $0x48] ss:$16 sps:$4 sm:$0xff]   ;;  %v4660_v17 = vld [vmem:[#allocation8 + $0x6c] ss:$16 sps:$4 sm:$0xff]  }
 0x28d   :  { %3325 = vrcp.f32 %v1285_v27  ;;  %v4672_v27 = vld [vmem:[#allocation8 + $0x8c] ss:$16 sps:$4 sm:$0xff]  }
 0x28e   :  { %6280 = vst [vmem:[#allocation27_spill] sm:$0xff] %v4672_v27 }
 0x294   :  { %v3322_v26 = vpop.eup %3321 }
 0x295   :  { %v1294_v16 = vmul.f32 %v3322_v26, %v3318_v38  ;;  %v3324_v48 = vpop.eup %3323  ;;  %v4657_v38 = vld [vmem:[#allocation8 + $0x64] ss:$16 sps:$4 sm:$0xff]   ;;  %v4663_v26 = vld [vmem:[#allocation8 + $0x60] ss:$16 sps:$4 sm:$0xff]  }
 0x296   :  { %v1293_v50 = vmul.f32 %v3324_v48, %v4482_v3  ;;  %v4631_v3 = vld [vmem:[#allocation8 + $0x24] ss:$16 sps:$4 sm:$0xff]  }
 0x297   :  { %v3326_v0 = vpop.eup %3325  ;;  %v4669_v48 = vld [vmem:[#allocation8 + $0x84] ss:$16 sps:$4 sm:$0xff]  }
 0x298   :  { %v4618_v43 = vadd.f32 %v1294_v16, %v1293_v50  ;;  %v4666_v16 = vld [vmem:[#allocation8 + $0x68] ss:$16 sps:$4 sm:$0xff]   ;;  %6279 = vst [vmem:[#allocation26_spill] sm:$0xff] %v4669_v48  ;;  %v4675_v50 = vld [vmem:[#allocation8 + $0x80] ss:$16 sps:$4 sm:$0xff]  }
 0x299   :  { %6281 = vst [vmem:[#allocation28_spill] sm:$0xff] %v4675_v50 }
 0x29a   :  { %3327 = vtanh.f32 %v4618_v43 }
 0x2a4   :  { %v3328_v1 = vpop.eup %3327 }
 0x2a5   :  { %v1297_v4 = vmul.f32 %v3328_v1, %v3326_v0  ;;  %v4678_v0 = vld [vmem:[#allocation8 + $0x88] ss:$16 sps:$4 sm:$0xff]   ;;  %v4681_v1 = vld [vmem:[#allocation8 + $0xa4] ss:$16 sps:$4 sm:$0xff]  }
 0x2a6   :  { %6282 = vst [vmem:[#allocation29_spill] sm:$0xff] %v4678_v0  ;;  %6283 = vst [vmem:[#allocation30_spill] sm:$0xff] %v4681_v1 }
 0x2a7   :  { %v4621_v61 = vpack.c.bf16 %v1297_v4, %v1297_v4  ;;  %v4684_v4 = vld [vmem:[#allocation8 + $0xac] ss:$16 sps:$4 sm:$0xff]  }
 0x2a8   :  { %6284 = vst [vmem:[#allocation31_spill] sm:$0xff] %v4684_v4 }
 0x2a9   :  { %1333 = vmatmul.mubr.bf16.vlgmr.msra.gmra.mrb[28].mxu0 %v4621_v61  ;;  %1374 = vmatmul.mubr.bf16.vlgmr.msra.gmra.mrb[28].mxu1 %v4621_v61 }
 0x2aa   :  { %1412 = vmatpush1.bf16.msra.mxu0 %v4625_v60  ;;  %1453 = vmatpush1.bf16.msra.mxu1 %v4628_v2 }
 0x2ab   :  { %1413 = vmatprep.subr.bf16.mxu0 %v4631_v3  ;;  %1454 = vmatprep.subr.bf16.mxu1 %v4634_v7 }
 0x2ac   :  { %1443 = vmatprep.mubr.bf16.mxu0 %v6208_v19  ;;  %1484 = vmatprep.mubr.bf16.mxu1 %v6208_v19 }
 0x2ae   :  { %1414 = vmatpush1.bf16.msra.mxu0 %v4639_v31  ;;  %1455 = vmatpush1.bf16.msra.mxu1 %v4642_v39 }
 0x2af   :  { %1415 = vmatprep.subr.bf16.mxu0 %v4645_v9  ;;  %1456 = vmatprep.subr.bf16.mxu1 %v4648_v62 }
 0x2b2   :  { %1416 = vmatpush1.bf16.msra.mxu0 %v4651_v8  ;;  %1457 = vmatpush1.bf16.msra.mxu1 %v4654_v5 }
 0x2b3   :  { %1417 = vmatprep.subr.bf16.mxu0 %v4657_v38  ;;  %1458 = vmatprep.subr.bf16.mxu1 %v4660_v17 }
 0x2b6   :  { %1418 = vmatpush1.bf16.msra.mxu0 %v4663_v26  ;;  %1459 = vmatpush1.bf16.msra.mxu1 %v4666_v16 }
 0x2b7   :  { %1419 = vmatprep.subr.bf16.mxu0 %v4669_v48  ;;  %1460 = vmatprep.subr.bf16.mxu1 %v4672_v27  ;;  %v4687_v48 = vld [vmem:[#allocation8 + $0xa0] ss:$16 sps:$4 sm:$0xff]   ;;  %v4690_v27 = vld [vmem:[#allocation8 + $0xa8] ss:$16 sps:$4 sm:$0xff]  }
 0x2b8   :  { %6285 = vst [vmem:[#allocation32_spill] sm:$0xff] %v4687_v48  ;;  %6286 = vst [vmem:[#allocation33_spill] sm:$0xff] %v4690_v27 }
 0x2ba   :  { %1420 = vmatpush1.bf16.msra.mxu0 %v4675_v50  ;;  %1461 = vmatpush1.bf16.msra.mxu1 %v4678_v0  ;;  %v4693_v50 = vld [vmem:[#allocation8 + $0xc4] ss:$16 sps:$4 sm:$0xff]   ;;  %v4696_v0 = vld [vmem:[#allocation8 + $0xcc] ss:$16 sps:$4 sm:$0xff]  }
 0x2bb   :  { %1421 = vmatprep.subr.bf16.mxu0 %v4681_v1  ;;  %1462 = vmatprep.subr.bf16.mxu1 %v4684_v4  ;;  %6287 = vst [vmem:[#allocation34_spill] sm:$0xff] %v4693_v50  ;;  %6288 = vst [vmem:[#allocation35_spill] sm:$0xff] %v4696_v0  ;;  %v4699_v1 = vld [vmem:[#allocation8 + $0xc0] ss:$16 sps:$4 sm:$0xff]   ;;  %v4702_v4 = vld [vmem:[#allocation8 + $0xc8] ss:$16 sps:$4 sm:$0xff]  }
 0x2be   :  { %1422 = vmatpush1.bf16.msra.mxu0 %v4687_v48  ;;  %1463 = vmatpush1.bf16.msra.mxu1 %v4690_v27  ;;  %v4705_v48 = vld [vmem:[#allocation8 + $0xe4] ss:$16 sps:$4 sm:$0xff]   ;;  %v4708_v27 = vld [vmem:[#allocation8 + $0xec] ss:$16 sps:$4 sm:$0xff]  }
 0x2bf   :  { %1423 = vmatprep.subr.bf16.mxu0 %v4693_v50  ;;  %1464 = vmatprep.subr.bf16.mxu1 %v4696_v0  ;;  %v4711_v50 = vld [vmem:[#allocation8 + $0xe0] ss:$16 sps:$4 sm:$0xff]   ;;  %v4714_v0 = vld [vmem:[#allocation8 + $0xe8] ss:$16 sps:$4 sm:$0xff]  }
 0x2c2   :  { %1424 = vmatpush1.bf16.msra.mxu0 %v4699_v1  ;;  %1465 = vmatpush1.bf16.msra.mxu1 %v4702_v4 }
 0x2c3   :  { %1425 = vmatprep.subr.bf16.mxu0 %v4705_v48  ;;  %1466 = vmatprep.subr.bf16.mxu1 %v4708_v27 }
 0x2c6   :  { %1426 = vmatpush1.bf16.msra.mxu0 %v4711_v50  ;;  %1467 = vmatpush1.bf16.msra.mxu1 %v4714_v0 }
 0x2c7   :  { %1523 = vmatprep.subr.bf16.mxu0 %v4189_v51  ;;  %1564 = vmatprep.subr.bf16.mxu1 %v4191_v52  ;;  %v6289_v51 = vld [vmem:[#allocation51_spill] sm:$0xff]  ;;  %v6290_v52 = vld [vmem:[#allocation52_spill] sm:$0xff] }
 0x2c9   :  { %1444 = vmatmul.mubr.bf16.vlgmr.msra.gmra.mrb[32].mxu0 %v4621_v61  ;;  %1485 = vmatmul.mubr.bf16.vlgmr.msra.gmra.mrb[32].mxu1 %v4621_v61  ;;  %v6317_v61 = vld [vmem:[#allocation24_spill] sm:$0xff] }
 0x2ca   :  { %1524 = vmatpush1.bf16.msra.mxu0 %v4193_v53  ;;  %1565 = vmatpush1.bf16.msra.mxu1 %v4195_v54  ;;  %v6291_v53 = vld [vmem:[#allocation53_spill] sm:$0xff]  ;;  %v6292_v54 = vld [vmem:[#allocation54_spill] sm:$0xff] }
 0x2cb   :  { %1525 = vmatprep.subr.bf16.mxu0 %v4201_v55  ;;  %1566 = vmatprep.subr.bf16.mxu1 %v4203_v56  ;;  %v6293_v55 = vld [vmem:[#allocation55_spill] sm:$0xff]  ;;  %v6294_v56 = vld [vmem:[#allocation56_spill] sm:$0xff] }
 0x2ce   :  { %1526 = vmatpush1.bf16.msra.mxu0 %v4205_v57  ;;  %1567 = vmatpush1.bf16.msra.mxu1 %v4207_v58  ;;  %v6295_v57 = vld [vmem:[#allocation57_spill] sm:$0xff]  ;;  %v6296_v58 = vld [vmem:[#allocation58_spill] sm:$0xff] }
 0x2cf   :  { %1527 = vmatprep.subr.bf16.mxu0 %v4213_v59  ;;  %1568 = vmatprep.subr.bf16.mxu1 %v6209_v10  ;;  %v6297_v59 = vld [vmem:[#allocation59_spill] sm:$0xff]  ;;  %v6298_v10 = vld [vmem:[#allocation60_spill] sm:$0xff] }
 0x2d2   :  { %1528 = vmatpush1.bf16.msra.mxu0 %v6210_v11  ;;  %1569 = vmatpush1.bf16.msra.mxu1 %v6211_v12  ;;  %v6299_v11 = vld [vmem:[#allocation61_spill] sm:$0xff]  ;;  %v6300_v12 = vld [vmem:[#allocation62_spill] sm:$0xff] }
 0x2d3   :  { %1529 = vmatprep.subr.bf16.mxu0 %v6212_v13  ;;  %1570 = vmatprep.subr.bf16.mxu1 %v6213_v14  ;;  %v6301_v13 = vld [vmem:[#allocation63_spill] sm:$0xff]  ;;  %v6302_v14 = vld [vmem:[#allocation64_spill] sm:$0xff] }
 0x2d6   :  { %1530 = vmatpush1.bf16.msra.mxu0 %v6214_v15  ;;  %1571 = vmatpush1.bf16.msra.mxu1 %v6215_v18  ;;  %v6303_v15 = vld [vmem:[#allocation65_spill] sm:$0xff]  ;;  %v6304_v18 = vld [vmem:[#allocation66_spill] sm:$0xff] }
 0x2d7   :  { %1531 = vmatprep.subr.bf16.mxu0 %v6216_v20  ;;  %1572 = vmatprep.subr.bf16.mxu1 %v6217_v21  ;;  %v6305_v20 = vld [vmem:[#allocation67_spill] sm:$0xff]  ;;  %v6306_v21 = vld [vmem:[#allocation68_spill] sm:$0xff] }
 0x2da   :  { %1532 = vmatpush1.bf16.msra.mxu0 %v6218_v22  ;;  %1573 = vmatpush1.bf16.msra.mxu1 %v6219_v23  ;;  %v6307_v22 = vld [vmem:[#allocation69_spill] sm:$0xff]  ;;  %v6308_v23 = vld [vmem:[#allocation70_spill] sm:$0xff] }
 0x2db   :  { %1533 = vmatprep.subr.bf16.mxu0 %v6220_v24  ;;  %1574 = vmatprep.subr.bf16.mxu1 %v6221_v25  ;;  %v6309_v24 = vld [vmem:[#allocation71_spill] sm:$0xff]  ;;  %v6310_v25 = vld [vmem:[#allocation72_spill] sm:$0xff] }
 0x2de   :  { %1534 = vmatpush1.bf16.msra.mxu0 %v6222_v28  ;;  %1575 = vmatpush1.bf16.msra.mxu1 %v6223_v29  ;;  %v6311_v28 = vld [vmem:[#allocation73_spill] sm:$0xff]  ;;  %v6312_v29 = vld [vmem:[#allocation74_spill] sm:$0xff] }
 0x2df   :  { %1535 = vmatprep.subr.bf16.mxu0 %v6224_v30  ;;  %1576 = vmatprep.subr.bf16.mxu1 %v6225_v32  ;;  %v6313_v30 = vld [vmem:[#allocation20_spill] sm:$0xff]  ;;  %v6314_v32 = vld [vmem:[#allocation21_spill] sm:$0xff] }
 0x2e2   :  { %1536 = vmatpush1.bf16.msra.mxu0 %v6226_v33  ;;  %1577 = vmatpush1.bf16.msra.mxu1 %v6227_v34 }
 0x2e3   :  { %1537 = vmatprep.subr.bf16.mxu0 %v6228_v35  ;;  %1578 = vmatprep.subr.bf16.mxu1 %v6229_v36  ;;  %v6315_v35 = vld [vmem:[#allocation22_spill] sm:$0xff] }
 0x2e6   :  { %1538 = vmatpush1.bf16.msra.mxu0 %v6230_v37  ;;  %1579 = vmatpush1.bf16.msra.mxu1 %v6231_v40 }
 0x2e7   :  { %1539 = vmatprep.subr.bf16.mxu0 %v6232_v41  ;;  %1580 = vmatprep.subr.bf16.mxu1 %v6233_v42  ;;  %v6316_v41 = vld [vmem:[#allocation23_spill] sm:$0xff] }
 0x2ea   :  { %1540 = vmatpush1.bf16.msra.mxu0 %v6234_v44  ;;  %1581 = vmatpush1.bf16.msra.mxu1 %v6235_v45 }
 0x2eb   :  { %1541 = vmatprep.subr.bf16.mxu0 %v6236_v46  ;;  %1582 = vmatprep.subr.bf16.mxu1 %v6237_v47 }
 0x2ee   :  { %1542 = vmatpush1.bf16.msra.mxu0 %v6238_v49  ;;  %1583 = vmatpush1.bf16.msra.mxu1 %v6239_v6 }
 0x2ef   :  { %1543 = vmatprep.subr.bf16.mxu0 %v6289_v51  ;;  %1584 = vmatprep.subr.bf16.mxu1 %v6290_v52  ;;  %v6318_v52 = vld [vmem:[#allocation25_spill] sm:$0xff] }
 0x2f2   :  { %1544 = vmatpush1.bf16.msra.mxu0 %v6291_v53  ;;  %1585 = vmatpush1.bf16.msra.mxu1 %v6292_v54 }
 0x2f3   :  { %1545 = vmatprep.subr.bf16.mxu0 %v6293_v55  ;;  %1586 = vmatprep.subr.bf16.mxu1 %v6294_v56 }
 0x2f6   :  { %1546 = vmatpush1.bf16.msra.mxu0 %v6295_v57  ;;  %1587 = vmatpush1.bf16.msra.mxu1 %v6296_v58 }
 0x2f7   :  { %1547 = vmatprep.subr.bf16.mxu0 %v6297_v59  ;;  %1588 = vmatprep.subr.bf16.mxu1 %v6298_v10 }
 0x2fa   :  { %1548 = vmatpush1.bf16.msra.mxu0 %v6299_v11  ;;  %1589 = vmatpush1.bf16.msra.mxu1 %v6300_v12 }
 0x2fb   :  { %1549 = vmatprep.subr.bf16.mxu0 %v6301_v13  ;;  %1590 = vmatprep.subr.bf16.mxu1 %v6302_v14 }
 0x2fe   :  { %1550 = vmatpush1.bf16.msra.mxu0 %v6303_v15  ;;  %1591 = vmatpush1.bf16.msra.mxu1 %v6304_v18 }
 0x2ff   :  { %1551 = vmatprep.subr.bf16.mxu0 %v6305_v20  ;;  %1592 = vmatprep.subr.bf16.mxu1 %v6306_v21 }
 0x302   :  { %1552 = vmatpush1.bf16.msra.mxu0 %v6307_v22  ;;  %1593 = vmatpush1.bf16.msra.mxu1 %v6308_v23  ;;  %v6319_v22 = vld [vmem:[#allocation80_spill] sm:$0xff] }
 0x303   :  { %1553 = vmatprep.subr.bf16.mxu0 %v6309_v24  ;;  %1594 = vmatprep.subr.bf16.mxu1 %v6310_v25  ;;  %v6320_v24 = vld [vmem:[#allocation81_spill] sm:$0xff] }
 0x306   :  { %1554 = vmatpush1.bf16.msra.mxu0 %v6311_v28  ;;  %1595 = vmatpush1.bf16.msra.mxu1 %v6312_v29 }
 0x307   :  { %1634 = vmatprep.subr.bf16.mxu0 %v6313_v30  ;;  %1675 = vmatprep.subr.bf16.mxu1 %v6314_v32 }
 0x37c   :  { %v1334_v33 = vpop.f32.mrb[28].mxu0  ;;  %v1375_v34 = vpop.f32.mrb[28].mxu1 }
 0x37d   :  { %v1335_v36 = vadd.f32 %v1334_v33, %v6315_v35  ;;  %v1336_v37 = vpop.f32.mrb[29].mxu0  ;;  %v1377_v40 = vpop.f32.mrb[29].mxu1  ;;  %v1376_v51 = vadd.f32 %v1375_v34, %v6317_v61  ;;  %v6321_v33 = vld [vmem:[#allocation82_spill] sm:$0xff] }
 0x37e   :  { %v1337_v42 = vadd.f32 %v1336_v37, %v6316_v41  ;;  %v1338_v44 = vpop.f32.mrb[30].mxu0  ;;  %v1379_v45 = vpop.f32.mrb[30].mxu1  ;;  %v1378_v53 = vadd.f32 %v1377_v40, %v6318_v52 }
 0x37f   :  { %v3032_v46 = vmul.f32 -1.442695, %v1335_v36  ;;  %v1339_v47 = vpop.f32.mrb[31].mxu0  ;;  %v1380_v49 = vpop.f32.mrb[31].mxu1  ;;  %v3034_v54 = vmul.f32 -1.442695, %v1376_v51 }
 0x380   :  { %v3033_v6 = vmul.f32 -1.442695, %v1337_v42  ;;  %v6322_v36 = vld [vmem:[#allocation83_spill] sm:$0xff] }
 0x381   :  { %3329 = vpow2.f32 %v3032_v46 }
 0x382   :  { %3331 = vpow2.f32 %v3033_v6 }
 0x383   :  { %3333 = vtanh.f32 %v1378_v53 }
 0x384   :  { %3335 = vpow2.f32 %v3034_v54 }
 0x38b   :  { %v3330_v55 = vpop.eup %3329 }
 0x38c   :  { %v1391_v56 = vadd.f32 1.0, %v3330_v55  ;;  %v3332_v57 = vpop.eup %3331 }
 0x38d   :  { %v1392_v58 = vadd.f32 1.0, %v3332_v57  ;;  %v3334_v59 = vpop.eup %3333 }
 0x38e   :  { %3337 = vrcp.f32 %v1391_v56  ;;  %v3336_v10 = vpop.eup %3335 }
 0x38f   :  { %3339 = vrcp.f32 %v1392_v58  ;;  %v1393_v14 = vadd.f32 1.0, %v3336_v10 }
 0x391   :  { %3341 = vrcp.f32 %v1393_v14 }
 0x398   :  { %v3338_v11 = vpop.eup %3337 }
 0x399   :  { %v1402_v12 = vmul.f32 %v3338_v11, %v3334_v59  ;;  %v3340_v13 = vpop.eup %3339 }
 0x39a   :  { %v1401_v15 = vmul.f32 %v3340_v13, %v4610_v63 }
 0x39b   :  { %v3342_v47 = vpop.eup %3341 }
 0x39c   :  { %v1445_v18 = vpop.f32.mrb[32].mxu0  ;;  %v1486_v20 = vpop.f32.mrb[32].mxu1  ;;  %v4790_v21 = vadd.f32 %v1402_v12, %v1401_v15 }
 0x39d   :  { %v1493_v23 = vadd.f32 %v1445_v18, %v6319_v22  ;;  %v1495_v25 = vadd.f32 %v1486_v20, %v6320_v24  ;;  %v1447_v28 = vpop.f32.mrb[33].mxu0  ;;  %v1488_v29 = vpop.f32.mrb[33].mxu1  ;;  %v6324_v24 = vld [vmem:[#allocation27_spill] sm:$0xff] }
 0x39e   :  { %v1494_v34 = vadd.f32 %v1447_v28, %v6321_v33  ;;  %v1496_v37 = vadd.f32 %v1488_v29, %v6322_v36  ;;  %v1449_v40 = vpop.f32.mrb[34].mxu0  ;;  %v1490_v42 = vpop.f32.mrb[34].mxu1  ;;  %3343 = vtanh.f32 %v4790_v21  ;;  %v6326_v28 = vld [vmem:[#allocation29_spill] sm:$0xff]  ;;  %v6327_v29 = vld [vmem:[#allocation30_spill] sm:$0xff]  ;;  %v6328_v33 = vld [vmem:[#allocation31_spill] sm:$0xff] }
 0x39f   :  { %v3035_v44 = vmul.f32 -1.442695, %v1493_v23  ;;  %v1450_v45 = vpop.f32.mrb[35].mxu0  ;;  %v1491_v63 = vpop.f32.mrb[35].mxu1  ;;  %v3037_v6 = vmul.f32 -1.442695, %v1495_v25 }
 0x3a0   :  { %v3036_v46 = vmul.f32 -1.442695, %v1494_v34  ;;  %v6325_v25 = vld [vmem:[#allocation28_spill] sm:$0xff]  ;;  %v6330_v36 = vld [vmem:[#allocation33_spill] sm:$0xff]  ;;  %v6332_v40 = vld [vmem:[#allocation35_spill] sm:$0xff] }
 0x3a1   :  { %3345 = vpow2.f32 %v3035_v44  ;;  %v6329_v34 = vld [vmem:[#allocation32_spill] sm:$0xff]  ;;  %v4836_v44 = vld [vmem:[#allocation9 + $0xc] ss:$16 sps:$4 sm:$0xff]   ;;  %v4842_v63 = vld [vmem:[#allocation9 + $0x8] ss:$16 sps:$4 sm:$0xff]  }
 0x3a2   :  { %3347 = vpow2.f32 %v3036_v46  ;;  %v4833_v42 = vld [vmem:[#allocation9 + $0x4] ss:$16 sps:$4 sm:$0xff]   ;;  %v4839_v45 = vld [vmem:[#allocation9] ss:$16 sps:$4 sm:$0xff]  }
 0x3a3   :  { %3349 = vtanh.f32 %v1496_v37  ;;  %v6331_v37 = vld [vmem:[#allocation34_spill] sm:$0xff] }
 0x3a4   :  { %3351 = vpow2.f32 %v3037_v6  ;;  %v4845_v46 = vld [vmem:[#allocation9 + $0x24] ss:$16 sps:$4 sm:$0xff]   ;;  %v4854_v6 = vld [vmem:[#allocation9 + $0x28] ss:$16 sps:$4 sm:$0xff]  }
 0x3a8   :  { %v3344_v49 = vpop.eup %3343 }
 0x3a9   :  { %v1405_v51 = vmul.f32 %v3344_v49, %v3342_v47  ;;  %v4848_v47 = vld [vmem:[#allocation9 + $0x2c] ss:$16 sps:$4 sm:$0xff]   ;;  %v4851_v49 = vld [vmem:[#allocation9 + $0x20] ss:$16 sps:$4 sm:$0xff]  }
 0x3ab   :  { %v3346_v53 = vpop.eup %3345  ;;  %v1522_v55 = vpack.c.bf16 %v1405_v51, %v1405_v51  ;;  %v4857_v51 = vld [vmem:[#allocation9 + $0x44] ss:$16 sps:$4 sm:$0xff]  }
 0x3ac   :  { %v1506_v54 = vadd.f32 1.0, %v3346_v53  ;;  %v3348_v56 = vpop.eup %3347  ;;  %v4860_v53 = vld [vmem:[#allocation9 + $0x4c] ss:$16 sps:$4 sm:$0xff]  }
 0x3ad   :  { %v1507_v57 = vadd.f32 1.0, %v3348_v56  ;;  %1555 = vmatprep.mubr.bf16.mxu0 %v1522_v55  ;;  %1596 = vmatprep.mubr.bf16.mxu1 %v1522_v55  ;;  %v3350_v58 = vpop.eup %3349  ;;  %v4866_v55 = vld [vmem:[#allocation9 + $0x48] ss:$16 sps:$4 sm:$0xff]   ;;  %v4869_v56 = vld [vmem:[#allocation9 + $0x64] ss:$16 sps:$4 sm:$0xff]  }
 0x3ae   :  { %3353 = vrcp.f32 %v1506_v54  ;;  %v3352_v59 = vpop.eup %3351  ;;  %v4863_v54 = vld [vmem:[#allocation9 + $0x40] ss:$16 sps:$4 sm:$0xff]   ;;  %6334 = vst [vmem:[#allocation37_spill] sm:$0xff] %v4866_v55  ;;  %6335 = vst [vmem:[#allocation38_spill] sm:$0xff] %v4869_v56 }
 0x3af   :  { %3355 = vrcp.f32 %v1507_v57  ;;  %v1508_v13 = vadd.f32 1.0, %v3352_v59  ;;  %6333 = vst [vmem:[#allocation36_spill] sm:$0xff] %v4863_v54  ;;  %v4872_v57 = vld [vmem:[#allocation9 + $0x6c] ss:$16 sps:$4 sm:$0xff]   ;;  %v4878_v59 = vld [vmem:[#allocation9 + $0x68] ss:$16 sps:$4 sm:$0xff]  }
 0x3b0   :  { %6336 = vst [vmem:[#allocation39_spill] sm:$0xff] %v4872_v57  ;;  %6338 = vst [vmem:[#allocation41_spill] sm:$0xff] %v4878_v59 }
 0x3b1   :  { %3357 = vrcp.f32 %v1508_v13  ;;  %v4890_v13 = vld [vmem:[#allocation9 + $0x88] ss:$16 sps:$4 sm:$0xff]  }
 0x3b2   :  { %6342 = vst [vmem:[#allocation45_spill] sm:$0xff] %v4890_v13 }
 0x3b8   :  { %v3354_v10 = vpop.eup %3353 }
 0x3b9   :  { %v1517_v11 = vmul.f32 %v3354_v10, %v3350_v58  ;;  %v3356_v12 = vpop.eup %3355  ;;  %v4875_v58 = vld [vmem:[#allocation9 + $0x60] ss:$16 sps:$4 sm:$0xff]   ;;  %v4881_v10 = vld [vmem:[#allocation9 + $0x84] ss:$16 sps:$4 sm:$0xff]  }
 0x3ba   :  { %v1516_v14 = vmul.f32 %v3356_v12, %v4618_v43  ;;  %v6323_v43 = vld [vmem:[#allocation26_spill] sm:$0xff]  ;;  %6337 = vst [vmem:[#allocation40_spill] sm:$0xff] %v4875_v58  ;;  %6339 = vst [vmem:[#allocation42_spill] sm:$0xff] %v4881_v10 }
 0x3bb   :  { %v3358_v18 = vpop.eup %3357  ;;  %v4887_v12 = vld [vmem:[#allocation9 + $0x80] ss:$16 sps:$4 sm:$0xff]  }
 0x3bc   :  { %v4798_v15 = vadd.f32 %v1517_v11, %v1516_v14  ;;  %v4884_v11 = vld [vmem:[#allocation9 + $0x8c] ss:$16 sps:$4 sm:$0xff]   ;;  %6341 = vst [vmem:[#allocation44_spill] sm:$0xff] %v4887_v12  ;;  %v4893_v14 = vld [vmem:[#allocation9 + $0xa4] ss:$16 sps:$4 sm:$0xff]  }
 0x3bd   :  { %6340 = vst [vmem:[#allocation43_spill] sm:$0xff] %v4884_v11  ;;  %6343 = vst [vmem:[#allocation46_spill] sm:$0xff] %v4893_v14 }
 0x3be   :  { %3359 = vtanh.f32 %v4798_v15 }
 0x3c8   :  { %v3360_v20 = vpop.eup %3359 }
 0x3c9   :  { %v1520_v22 = vmul.f32 %v3360_v20, %v3358_v18  ;;  %v4896_v18 = vld [vmem:[#allocation9 + $0xac] ss:$16 sps:$4 sm:$0xff]   ;;  %v4899_v20 = vld [vmem:[#allocation9 + $0xa0] ss:$16 sps:$4 sm:$0xff]  }
 0x3ca   :  { %6344 = vst [vmem:[#allocation47_spill] sm:$0xff] %v4896_v18  ;;  %6345 = vst [vmem:[#allocation48_spill] sm:$0xff] %v4899_v20 }
 0x3cb   :  { %v1521_v23 = vpack.c.bf16 %v1520_v22, %v1520_v22  ;;  %v4902_v22 = vld [vmem:[#allocation9 + $0xa8] ss:$16 sps:$4 sm:$0xff]  }
 0x3cc   :  { %6346 = vst [vmem:[#allocation49_spill] sm:$0xff] %v4902_v22 }
 0x3cd   :  { %1556 = vmatmul.mubr.bf16.vlgmr.msra.gmra.mrb[36].mxu0 %v1521_v23  ;;  %1597 = vmatmul.mubr.bf16.vlgmr.msra.gmra.mrb[36].mxu1 %v1521_v23 }
 0x3ce   :  { %1635 = vmatpush1.bf16.msra.mxu0 %v4625_v60  ;;  %1676 = vmatpush1.bf16.msra.mxu1 %v4628_v2 }
 0x3cf   :  { %1636 = vmatprep.subr.bf16.mxu0 %v4631_v3  ;;  %1677 = vmatprep.subr.bf16.mxu1 %v4634_v7 }
 0x3d0   :  { %1666 = vmatprep.mubr.bf16.mxu0 %v6208_v19  ;;  %1707 = vmatprep.mubr.bf16.mxu1 %v6208_v19 }
 0x3d2   :  { %1637 = vmatpush1.bf16.msra.mxu0 %v4639_v31  ;;  %1678 = vmatpush1.bf16.msra.mxu1 %v4642_v39 }
 0x3d3   :  { %1638 = vmatprep.subr.bf16.mxu0 %v4645_v9  ;;  %1679 = vmatprep.subr.bf16.mxu1 %v4648_v62 }
 0x3d6   :  { %1639 = vmatpush1.bf16.msra.mxu0 %v4651_v8  ;;  %1680 = vmatpush1.bf16.msra.mxu1 %v4654_v5 }
 0x3d7   :  { %1640 = vmatprep.subr.bf16.mxu0 %v4657_v38  ;;  %1681 = vmatprep.subr.bf16.mxu1 %v4660_v17 }
 0x3da   :  { %1641 = vmatpush1.bf16.msra.mxu0 %v4663_v26  ;;  %1682 = vmatpush1.bf16.msra.mxu1 %v4666_v16 }
 0x3db   :  { %1642 = vmatprep.subr.bf16.mxu0 %v6323_v43  ;;  %1683 = vmatprep.subr.bf16.mxu1 %v6324_v24 }
 0x3de   :  { %1643 = vmatpush1.bf16.msra.mxu0 %v6325_v25  ;;  %1684 = vmatpush1.bf16.msra.mxu1 %v6326_v28 }
 0x3df   :  { %1644 = vmatprep.subr.bf16.mxu0 %v6327_v29  ;;  %1685 = vmatprep.subr.bf16.mxu1 %v6328_v33 }
 0x3e2   :  { %1645 = vmatpush1.bf16.msra.mxu0 %v6329_v34  ;;  %1686 = vmatpush1.bf16.msra.mxu1 %v6330_v36 }
 0x3e3   :  { %1646 = vmatprep.subr.bf16.mxu0 %v6331_v37  ;;  %1687 = vmatprep.subr.bf16.mxu1 %v6332_v40 }
 0x3e6   :  { %1647 = vmatpush1.bf16.msra.mxu0 %v4699_v1  ;;  %1688 = vmatpush1.bf16.msra.mxu1 %v4702_v4 }
 0x3e7   :  { %1648 = vmatprep.subr.bf16.mxu0 %v4705_v48  ;;  %1689 = vmatprep.subr.bf16.mxu1 %v4708_v27 }
 0x3ea   :  { %1649 = vmatpush1.bf16.msra.mxu0 %v4711_v50  ;;  %1690 = vmatpush1.bf16.msra.mxu1 %v4714_v0 }
 0x3eb   :  { %1746 = vmatprep.subr.bf16.mxu0 %v4833_v42  ;;  %1787 = vmatprep.subr.bf16.mxu1 %v4836_v44 }
 0x3ed   :  { %1667 = vmatmul.mubr.bf16.vlgmr.msra.gmra.mrb[40].mxu0 %v1521_v23  ;;  %1708 = vmatmul.mubr.bf16.vlgmr.msra.gmra.mrb[40].mxu1 %v1521_v23  ;;  %v4905_v23 = vld [vmem:[#allocation9 + $0xc4] ss:$16 sps:$4 sm:$0xff]  }
 0x3ee   :  { %1747 = vmatpush1.bf16.msra.mxu0 %v4839_v45  ;;  %1788 = vmatpush1.bf16.msra.mxu1 %v4842_v63  ;;  %6347 = vst [vmem:[#allocation50_spill] sm:$0xff] %v4905_v23 }
 0x3ef   :  { %1748 = vmatprep.subr.bf16.mxu0 %v4845_v46  ;;  %1789 = vmatprep.subr.bf16.mxu1 %v4848_v47 }
 0x3f2   :  { %1749 = vmatpush1.bf16.msra.mxu0 %v4851_v49  ;;  %1790 = vmatpush1.bf16.msra.mxu1 %v4854_v6 }
 0x3f3   :  { %1750 = vmatprep.subr.bf16.mxu0 %v4857_v51  ;;  %1791 = vmatprep.subr.bf16.mxu1 %v4860_v53 }
 0x3f6   :  { %1751 = vmatpush1.bf16.msra.mxu0 %v4863_v54  ;;  %1792 = vmatpush1.bf16.msra.mxu1 %v4866_v55 }
 0x3f7   :  { %1752 = vmatprep.subr.bf16.mxu0 %v4869_v56  ;;  %1793 = vmatprep.subr.bf16.mxu1 %v4872_v57 }
 0x3fa   :  { %1753 = vmatpush1.bf16.msra.mxu0 %v4875_v58  ;;  %1794 = vmatpush1.bf16.msra.mxu1 %v4878_v59 }
 0x3fb   :  { %1754 = vmatprep.subr.bf16.mxu0 %v4881_v10  ;;  %1795 = vmatprep.subr.bf16.mxu1 %v4884_v11 }
 0x3fe   :  { %1755 = vmatpush1.bf16.msra.mxu0 %v4887_v12  ;;  %1796 = vmatpush1.bf16.msra.mxu1 %v4890_v13  ;;  %v4908_v13 = vld [vmem:[#allocation9 + $0xcc] ss:$16 sps:$4 sm:$0xff]  }
 0x3ff   :  { %1756 = vmatprep.subr.bf16.mxu0 %v4893_v14  ;;  %1797 = vmatprep.subr.bf16.mxu1 %v4896_v18  ;;  %6348 = vst [vmem:[#allocation75_spill] sm:$0xff] %v4908_v13  ;;  %v4911_v14 = vld [vmem:[#allocation9 + $0xc0] ss:$16 sps:$4 sm:$0xff]   ;;  %v4914_v18 = vld [vmem:[#allocation9 + $0xc8] ss:$16 sps:$4 sm:$0xff]  }
 0x400   :  { %6349 = vst [vmem:[#allocation76_spill] sm:$0xff] %v4911_v14  ;;  %6350 = vst [vmem:[#allocation77_spill] sm:$0xff] %v4914_v18 }
 0x402   :  { %1757 = vmatpush1.bf16.msra.mxu0 %v4899_v20  ;;  %1798 = vmatpush1.bf16.msra.mxu1 %v4902_v22  ;;  %v4917_v20 = vld [vmem:[#allocation9 + $0xe4] ss:$16 sps:$4 sm:$0xff]   ;;  %v4920_v22 = vld [vmem:[#allocation9 + $0xec] ss:$16 sps:$4 sm:$0xff]  }
 0x403   :  { %1758 = vmatprep.subr.bf16.mxu0 %v4905_v23  ;;  %1799 = vmatprep.subr.bf16.mxu1 %v4908_v13  ;;  %6351 = vst [vmem:[#allocation78_spill] sm:$0xff] %v4917_v20  ;;  %6352 = vst [vmem:[#allocation79_spill] sm:$0xff] %v4920_v22  ;;  %v4923_v23 = vld [vmem:[#allocation9 + $0xe0] ss:$16 sps:$4 sm:$0xff]   ;;  %v4926_v13 = vld [vmem:[#allocation9 + $0xe8] ss:$16 sps:$4 sm:$0xff]  }
 0x404   :  { %6353 = vst [vmem:[#allocation51_spill] sm:$0xff] %v4923_v23  ;;  %6354 = vst [vmem:[#allocation52_spill] sm:$0xff] %v4926_v13 }
 0x406   :  { %1759 = vmatpush1.bf16.msra.mxu0 %v4911_v14  ;;  %1800 = vmatpush1.bf16.msra.mxu1 %v4914_v18  ;;  %v4929_v14 = vld [vmem:[#allocation9 + $0x104] ss:$16 sps:$4 sm:$0xff]   ;;  %v4932_v18 = vld [vmem:[#allocation9 + $0x10c] ss:$16 sps:$4 sm:$0xff]  }
 0x407   :  { %1760 = vmatprep.subr.bf16.mxu0 %v4917_v20  ;;  %1801 = vmatprep.subr.bf16.mxu1 %v4920_v22  ;;  %6355 = vst [vmem:[#allocation53_spill] sm:$0xff] %v4929_v14  ;;  %6356 = vst [vmem:[#allocation54_spill] sm:$0xff] %v4932_v18  ;;  %v4935_v20 = vld [vmem:[#allocation9 + $0x100] ss:$16 sps:$4 sm:$0xff]   ;;  %v4938_v22 = vld [vmem:[#allocation9 + $0x108] ss:$16 sps:$4 sm:$0xff]  }
 0x408   :  { %6357 = vst [vmem:[#allocation55_spill] sm:$0xff] %v4935_v20  ;;  %6358 = vst [vmem:[#allocation56_spill] sm:$0xff] %v4938_v22 }
 0x40a   :  { %1761 = vmatpush1.bf16.msra.mxu0 %v4923_v23  ;;  %1802 = vmatpush1.bf16.msra.mxu1 %v4926_v13  ;;  %v4941_v23 = vld [vmem:[#allocation9 + $0x124] ss:$16 sps:$4 sm:$0xff]   ;;  %v4944_v13 = vld [vmem:[#allocation9 + $0x12c] ss:$16 sps:$4 sm:$0xff]  }
 0x40b   :  { %1762 = vmatprep.subr.bf16.mxu0 %v4929_v14  ;;  %1803 = vmatprep.subr.bf16.mxu1 %v4932_v18  ;;  %6359 = vst [vmem:[#allocation57_spill] sm:$0xff] %v4941_v23  ;;  %6360 = vst [vmem:[#allocation58_spill] sm:$0xff] %v4944_v13  ;;  %v4947_v14 = vld [vmem:[#allocation9 + $0x120] ss:$16 sps:$4 sm:$0xff]   ;;  %v4950_v18 = vld [vmem:[#allocation9 + $0x128] ss:$16 sps:$4 sm:$0xff]  }
 0x40c   :  { %6361 = vst [vmem:[#allocation59_spill] sm:$0xff] %v4947_v14  ;;  %6362 = vst [vmem:[#allocation60_spill] sm:$0xff] %v4950_v18 }
 0x40e   :  { %1763 = vmatpush1.bf16.msra.mxu0 %v4935_v20  ;;  %1804 = vmatpush1.bf16.msra.mxu1 %v4938_v22  ;;  %v4953_v20 = vld [vmem:[#allocation9 + $0x144] ss:$16 sps:$4 sm:$0xff]   ;;  %v4956_v22 = vld [vmem:[#allocation9 + $0x14c] ss:$16 sps:$4 sm:$0xff]  }
 0x40f   :  { %1764 = vmatprep.subr.bf16.mxu0 %v4941_v23  ;;  %1805 = vmatprep.subr.bf16.mxu1 %v4944_v13  ;;  %6363 = vst [vmem:[#allocation61_spill] sm:$0xff] %v4953_v20  ;;  %6364 = vst [vmem:[#allocation62_spill] sm:$0xff] %v4956_v22  ;;  %v4959_v23 = vld [vmem:[#allocation9 + $0x140] ss:$16 sps:$4 sm:$0xff]   ;;  %v4962_v13 = vld [vmem:[#allocation9 + $0x148] ss:$16 sps:$4 sm:$0xff]  }
 0x410   :  { %6365 = vst [vmem:[#allocation63_spill] sm:$0xff] %v4959_v23  ;;  %6366 = vst [vmem:[#allocation64_spill] sm:$0xff] %v4962_v13 }
 0x412   :  { %1765 = vmatpush1.bf16.msra.mxu0 %v4947_v14  ;;  %1806 = vmatpush1.bf16.msra.mxu1 %v4950_v18  ;;  %v4965_v14 = vld [vmem:[#allocation9 + $0x164] ss:$16 sps:$4 sm:$0xff]   ;;  %v4968_v18 = vld [vmem:[#allocation9 + $0x16c] ss:$16 sps:$4 sm:$0xff]  }
 0x413   :  { %1766 = vmatprep.subr.bf16.mxu0 %v4953_v20  ;;  %1807 = vmatprep.subr.bf16.mxu1 %v4956_v22  ;;  %6367 = vst [vmem:[#allocation65_spill] sm:$0xff] %v4965_v14  ;;  %6368 = vst [vmem:[#allocation66_spill] sm:$0xff] %v4968_v18  ;;  %v4971_v20 = vld [vmem:[#allocation9 + $0x160] ss:$16 sps:$4 sm:$0xff]   ;;  %v4974_v22 = vld [vmem:[#allocation9 + $0x168] ss:$16 sps:$4 sm:$0xff]  }
 0x414   :  { %6369 = vst [vmem:[#allocation67_spill] sm:$0xff] %v4971_v20  ;;  %6370 = vst [vmem:[#allocation68_spill] sm:$0xff] %v4974_v22 }
 0x416   :  { %1767 = vmatpush1.bf16.msra.mxu0 %v4959_v23  ;;  %1808 = vmatpush1.bf16.msra.mxu1 %v4962_v13  ;;  %v4977_v23 = vld [vmem:[#allocation9 + $0x184] ss:$16 sps:$4 sm:$0xff]   ;;  %v4980_v13 = vld [vmem:[#allocation9 + $0x18c] ss:$16 sps:$4 sm:$0xff]  }
 0x417   :  { %1768 = vmatprep.subr.bf16.mxu0 %v4965_v14  ;;  %1809 = vmatprep.subr.bf16.mxu1 %v4968_v18  ;;  %6371 = vst [vmem:[#allocation69_spill] sm:$0xff] %v4977_v23  ;;  %6372 = vst [vmem:[#allocation70_spill] sm:$0xff] %v4980_v13  ;;  %v4983_v14 = vld [vmem:[#allocation9 + $0x180] ss:$16 sps:$4 sm:$0xff]   ;;  %v4986_v18 = vld [vmem:[#allocation9 + $0x188] ss:$16 sps:$4 sm:$0xff]  }
 0x418   :  { %6373 = vst [vmem:[#allocation71_spill] sm:$0xff] %v4983_v14  ;;  %6374 = vst [vmem:[#allocation72_spill] sm:$0xff] %v4986_v18 }
 0x41a   :  { %1769 = vmatpush1.bf16.msra.mxu0 %v4971_v20  ;;  %1810 = vmatpush1.bf16.msra.mxu1 %v4974_v22  ;;  %v4989_v20 = vld [vmem:[#allocation9 + $0x1a4] ss:$16 sps:$4 sm:$0xff]   ;;  %v4992_v22 = vld [vmem:[#allocation9 + $0x1ac] ss:$16 sps:$4 sm:$0xff]  }
 0x41b   :  { %1770 = vmatprep.subr.bf16.mxu0 %v4977_v23  ;;  %1811 = vmatprep.subr.bf16.mxu1 %v4980_v13  ;;  %6375 = vst [vmem:[#allocation73_spill] sm:$0xff] %v4989_v20  ;;  %6376 = vst [vmem:[#allocation74_spill] sm:$0xff] %v4992_v22  ;;  %v4995_v23 = vld [vmem:[#allocation9 + $0x1a0] ss:$16 sps:$4 sm:$0xff]   ;;  %v4998_v13 = vld [vmem:[#allocation9 + $0x1a8] ss:$16 sps:$4 sm:$0xff]  }
 0x41c   :  { %6377 = vst [vmem:[#allocation20_spill] sm:$0xff] %v4995_v23  ;;  %6378 = vst [vmem:[#allocation21_spill] sm:$0xff] %v4998_v13 }
 0x41e   :  { %1771 = vmatpush1.bf16.msra.mxu0 %v4983_v14  ;;  %1812 = vmatpush1.bf16.msra.mxu1 %v4986_v18  ;;  %v5001_v14 = vld [vmem:[#allocation9 + $0x1c4] ss:$16 sps:$4 sm:$0xff]   ;;  %v5004_v18 = vld [vmem:[#allocation9 + $0x1cc] ss:$16 sps:$4 sm:$0xff]  }
 0x41f   :  { %1772 = vmatprep.subr.bf16.mxu0 %v4989_v20  ;;  %1813 = vmatprep.subr.bf16.mxu1 %v4992_v22  ;;  %6379 = vst [vmem:[#allocation80_spill] sm:$0xff] %v5001_v14  ;;  %6380 = vst [vmem:[#allocation81_spill] sm:$0xff] %v5004_v18  ;;  %v5007_v20 = vld [vmem:[#allocation9 + $0x1c0] ss:$16 sps:$4 sm:$0xff]   ;;  %v5010_v22 = vld [vmem:[#allocation9 + $0x1c8] ss:$16 sps:$4 sm:$0xff]  }
 0x420   :  { %6381 = vst [vmem:[#allocation82_spill] sm:$0xff] %v5007_v20  ;;  %6382 = vst [vmem:[#allocation83_spill] sm:$0xff] %v5010_v22 }
 0x422   :  { %1773 = vmatpush1.bf16.msra.mxu0 %v4995_v23  ;;  %1814 = vmatpush1.bf16.msra.mxu1 %v4998_v13  ;;  %v5013_v23 = vld [vmem:[#allocation9 + $0x1e4] ss:$16 sps:$4 sm:$0xff]   ;;  %v5016_v13 = vld [vmem:[#allocation9 + $0x1ec] ss:$16 sps:$4 sm:$0xff]  }
 0x423   :  { %1774 = vmatprep.subr.bf16.mxu0 %v5001_v14  ;;  %1815 = vmatprep.subr.bf16.mxu1 %v5004_v18  ;;  %6383 = vst [vmem:[#allocation26_spill] sm:$0xff] %v5013_v23  ;;  %6384 = vst [vmem:[#allocation27_spill] sm:$0xff] %v5016_v13  ;;  %v5019_v14 = vld [vmem:[#allocation9 + $0x1e0] ss:$16 sps:$4 sm:$0xff]   ;;  %v5022_v18 = vld [vmem:[#allocation9 + $0x1e8] ss:$16 sps:$4 sm:$0xff]  }
 0x424   :  { %6385 = vst [vmem:[#allocation28_spill] sm:$0xff] %v5019_v14  ;;  %6386 = vst [vmem:[#allocation29_spill] sm:$0xff] %v5022_v18 }
 0x426   :  { %1775 = vmatpush1.bf16.msra.mxu0 %v5007_v20  ;;  %1816 = vmatpush1.bf16.msra.mxu1 %v5010_v22 }
 0x427   :  { %1776 = vmatprep.subr.bf16.mxu0 %v5013_v23  ;;  %1817 = vmatprep.subr.bf16.mxu1 %v5016_v13 }
 0x42a   :  { %1777 = vmatpush1.bf16.msra.mxu0 %v5019_v14  ;;  %1818 = vmatpush1.bf16.msra.mxu1 %v5022_v18 }
 0x42b   :  { %1857 = vmatprep.subr.bf16.mxu0 %v6313_v30  ;;  %1898 = vmatprep.subr.bf16.mxu1 %v6314_v32 }
 0x4a0   :  { %v1557_v22 = vpop.f32.mrb[36].mxu0  ;;  %v1598_v20 = vpop.f32.mrb[36].mxu1 }
 0x4a1   :  { %v1558_v23 = vadd.f32 %v1557_v22, %v6315_v35  ;;  %v1559_v12 = vpop.f32.mrb[37].mxu0  ;;  %v1600_v11 = vpop.f32.mrb[37].mxu1  ;;  %v1599_v30 = vadd.f32 %v1598_v20, %v6317_v61  ;;  %v6390_v61 = vld [vmem:[#allocation87_spill] sm:$0xff] }
 0x4a2   :  { %v1560_v13 = vadd.f32 %v1559_v12, %v6316_v41  ;;  %v1561_v10 = vpop.f32.mrb[38].mxu0  ;;  %v1602_v59 = vpop.f32.mrb[38].mxu1  ;;  %v1601_v32 = vadd.f32 %v1600_v11, %v6318_v52 }
 0x4a3   :  { %v3038_v58 = vmul.f32 -1.442695, %v1558_v23  ;;  %v1562_v14 = vpop.f32.mrb[39].mxu0  ;;  %v1603_v57 = vpop.f32.mrb[39].mxu1  ;;  %v3040_v18 = vmul.f32 -1.442695, %v1599_v30 }
 0x4a4   :  { %v3039_v56 = vmul.f32 -1.442695, %v1560_v13  ;;  %v6387_v30 = vld [vmem:[#allocation84_spill] sm:$0xff] }
 0x4a5   :  { %3361 = vpow2.f32 %v3038_v58 }
 0x4a6   :  { %3363 = vpow2.f32 %v3039_v56 }
 0x4a7   :  { %3365 = vtanh.f32 %v1601_v32  ;;  %v6388_v32 = vld [vmem:[#allocation85_spill] sm:$0xff] }
 0x4a8   :  { %3367 = vpow2.f32 %v3040_v18 }
 0x4af   :  { %v3362_v55 = vpop.eup %3361 }
 0x4b0   :  { %v1614_v54 = vadd.f32 1.0, %v3362_v55  ;;  %v3364_v22 = vpop.eup %3363 }
 0x4b1   :  { %v1615_v12 = vadd.f32 1.0, %v3364_v22  ;;  %v3366_v59 = vpop.eup %3365  ;;  %v6389_v22 = vld [vmem:[#allocation86_spill] sm:$0xff] }
 0x4b2   :  { %3369 = vrcp.f32 %v1614_v54  ;;  %v3368_v10 = vpop.eup %3367 }
 0x4b3   :  { %3371 = vrcp.f32 %v1615_v12  ;;  %v1616_v58 = vadd.f32 1.0, %v3368_v10 }
 0x4b5   :  { %3373 = vrcp.f32 %v1616_v58 }
 0x4bc   :  { %v3370_v14 = vpop.eup %3369 }
 0x4bd   :  { %v1625_v57 = vmul.f32 %v3370_v14, %v3366_v59  ;;  %v3372_v13 = vpop.eup %3371 }
 0x4be   :  { %v1624_v56 = vmul.f32 %v3372_v13, %v4790_v21 }
 0x4bf   :  { %v3374_v13 = vpop.eup %3373 }
 0x4c0   :  { %v1668_v20 = vpop.f32.mrb[40].mxu0  ;;  %v1709_v23 = vpop.f32.mrb[40].mxu1  ;;  %v5032_v11 = vadd.f32 %v1625_v57, %v1624_v56 }
 0x4c1   :  { %v1716_v55 = vadd.f32 %v1668_v20, %v6387_v30  ;;  %v1718_v52 = vadd.f32 %v1709_v23, %v6388_v32  ;;  %v1670_v18 = vpop.f32.mrb[41].mxu0  ;;  %v1711_v54 = vpop.f32.mrb[41].mxu1 }
 0x4c2   :  { %v1717_v12 = vadd.f32 %v1670_v18, %v6389_v22  ;;  %v1719_v41 = vadd.f32 %v1711_v54, %v6390_v61  ;;  %v1672_v59 = vpop.f32.mrb[42].mxu0  ;;  %v1713_v14 = vpop.f32.mrb[42].mxu1  ;;  %3375 = vtanh.f32 %v5032_v11 }
 0x4c3   :  { %v3041_v10 = vmul.f32 -1.442695, %v1716_v55  ;;  %v1673_v35 = vpop.f32.mrb[43].mxu0  ;;  %v1714_v21 = vpop.f32.mrb[43].mxu1  ;;  %v3043_v20 = vmul.f32 -1.442695, %v1718_v52 }
 0x4c4   :  { %v3042_v57 = vmul.f32 -1.442695, %v1717_v12 }
 0x4c5   :  { %3377 = vpow2.f32 %v3041_v10 }
 0x4c6   :  { %3379 = vpow2.f32 %v3042_v57 }
 0x4c7   :  { %3381 = vtanh.f32 %v1719_v41 }
 0x4c8   :  { %3383 = vpow2.f32 %v3043_v20  ;;  %v6424_v20 = vld [vmem:[#allocation64_spill] sm:$0xff] }
 0x4cc   :  { %v3376_v56 = vpop.eup %3375 }
 0x4cd   :  { %v1628_v23 = vmul.f32 %v3376_v56, %v3374_v13  ;;  %v6422_v13 = vld [vmem:[#allocation62_spill] sm:$0xff]  ;;  %v6423_v56 = vld [vmem:[#allocation63_spill] sm:$0xff] }
 0x4cf   :  { %v3378_v30 = vpop.eup %3377  ;;  %v1745_v32 = vpack.c.bf16 %v1628_v23, %v1628_v23  ;;  %v6425_v23 = vld [vmem:[#allocation65_spill] sm:$0xff] }
 0x4d0   :  { %v1729_v58 = vadd.f32 1.0, %v3378_v30  ;;  %v3380_v18 = vpop.eup %3379  ;;  %v6426_v30 = vld [vmem:[#allocation66_spill] sm:$0xff] }
 0x4d1   :  { %v1730_v61 = vadd.f32 1.0, %v3380_v18  ;;  %1778 = vmatprep.mubr.bf16.mxu0 %v1745_v32  ;;  %1819 = vmatprep.mubr.bf16.mxu1 %v1745_v32  ;;  %v3382_v35 = vpop.eup %3381  ;;  %v6428_v32 = vld [vmem:[#allocation68_spill] sm:$0xff]  ;;  %v6429_v18 = vld [vmem:[#allocation69_spill] sm:$0xff] }
 0x4d2   :  { %3385 = vrcp.f32 %v1729_v58  ;;  %v3384_v55 = vpop.eup %3383  ;;  %v6427_v58 = vld [vmem:[#allocation67_spill] sm:$0xff] }
 0x4d3   :  { %3387 = vrcp.f32 %v1730_v61  ;;  %v1731_v59 = vadd.f32 1.0, %v3384_v55  ;;  %v6430_v61 = vld [vmem:[#allocation70_spill] sm:$0xff]  ;;  %v6432_v55 = vld [vmem:[#allocation72_spill] sm:$0xff] }
 0x4d5   :  { %3389 = vrcp.f32 %v1731_v59  ;;  %v6436_v59 = vld [vmem:[#allocation21_spill] sm:$0xff] }
 0x4dc   :  { %v3386_v54 = vpop.eup %3385 }
 0x4dd   :  { %v1740_v22 = vmul.f32 %v3386_v54, %v3382_v35  ;;  %v3388_v12 = vpop.eup %3387  ;;  %v6431_v35 = vld [vmem:[#allocation71_spill] sm:$0xff]  ;;  %v6433_v54 = vld [vmem:[#allocation73_spill] sm:$0xff] }
 0x4de   :  { %v1739_v52 = vmul.f32 %v3388_v12, %v4798_v15  ;;  %v6411_v15 = vld [vmem:[#allocation51_spill] sm:$0xff]  ;;  %v6435_v12 = vld [vmem:[#allocation20_spill] sm:$0xff] }
 0x4df   :  { %v3390_v41 = vpop.eup %3389 }
 0x4e0   :  { %v5040_v14 = vadd.f32 %v1740_v22, %v1739_v52  ;;  %v6434_v22 = vld [vmem:[#allocation74_spill] sm:$0xff]  ;;  %v6437_v52 = vld [vmem:[#allocation80_spill] sm:$0xff] }
 0x4e2   :  { %3391 = vtanh.f32 %v5040_v14 }
 0x4ec   :  { %v3392_v10 = vpop.eup %3391 }
 0x4ed   :  { %v1743_v21 = vmul.f32 %v3392_v10, %v3390_v41  ;;  %v6438_v41 = vld [vmem:[#allocation81_spill] sm:$0xff]  ;;  %v6439_v10 = vld [vmem:[#allocation82_spill] sm:$0xff] }
 0x4ef   :  { %v1744_v57 = vpack.c.bf16 %v1743_v21, %v1743_v21  ;;  %v6440_v21 = vld [vmem:[#allocation83_spill] sm:$0xff] }
 0x4f1   :  { %1779 = vmatmul.mubr.bf16.vlgmr.msra.gmra.mrb[44].mxu0 %v1744_v57  ;;  %1820 = vmatmul.mubr.bf16.vlgmr.msra.gmra.mrb[44].mxu1 %v1744_v57 }
 0x4f2   :  { %1858 = vmatpush1.bf16.msra.mxu0 %v4625_v60  ;;  %1899 = vmatpush1.bf16.msra.mxu1 %v4628_v2  ;;  %v6391_v60 = vld [vmem:[#allocation36_spill] sm:$0xff]  ;;  %v6392_v2 = vld [vmem:[#allocation37_spill] sm:$0xff] }
 0x4f3   :  { %1859 = vmatprep.subr.bf16.mxu0 %v4631_v3  ;;  %1900 = vmatprep.subr.bf16.mxu1 %v4634_v7  ;;  %v6393_v3 = vld [vmem:[#allocation38_spill] sm:$0xff]  ;;  %v6394_v7 = vld [vmem:[#allocation39_spill] sm:$0xff] }
 0x4f4   :  { %1889 = vmatprep.mubr.bf16.mxu0 %v6208_v19  ;;  %1930 = vmatprep.mubr.bf16.mxu1 %v6208_v19 }
 0x4f6   :  { %1860 = vmatpush1.bf16.msra.mxu0 %v4639_v31  ;;  %1901 = vmatpush1.bf16.msra.mxu1 %v4642_v39  ;;  %v6395_v31 = vld [vmem:[#allocation40_spill] sm:$0xff]  ;;  %v6396_v39 = vld [vmem:[#allocation41_spill] sm:$0xff] }
 0x4f7   :  { %1861 = vmatprep.subr.bf16.mxu0 %v4645_v9  ;;  %1902 = vmatprep.subr.bf16.mxu1 %v4648_v62  ;;  %v6397_v9 = vld [vmem:[#allocation42_spill] sm:$0xff]  ;;  %v6398_v62 = vld [vmem:[#allocation43_spill] sm:$0xff] }
 0x4fa   :  { %1862 = vmatpush1.bf16.msra.mxu0 %v4651_v8  ;;  %1903 = vmatpush1.bf16.msra.mxu1 %v4654_v5  ;;  %v6399_v8 = vld [vmem:[#allocation44_spill] sm:$0xff]  ;;  %v6400_v5 = vld [vmem:[#allocation45_spill] sm:$0xff] }
 0x4fb   :  { %1863 = vmatprep.subr.bf16.mxu0 %v4657_v38  ;;  %1904 = vmatprep.subr.bf16.mxu1 %v4660_v17  ;;  %v6401_v38 = vld [vmem:[#allocation46_spill] sm:$0xff]  ;;  %v6402_v17 = vld [vmem:[#allocation47_spill] sm:$0xff] }
 0x4fe   :  { %1864 = vmatpush1.bf16.msra.mxu0 %v4663_v26  ;;  %1905 = vmatpush1.bf16.msra.mxu1 %v4666_v16  ;;  %v6403_v26 = vld [vmem:[#allocation48_spill] sm:$0xff]  ;;  %v6404_v16 = vld [vmem:[#allocation49_spill] sm:$0xff] }
 0x4ff   :  { %1865 = vmatprep.subr.bf16.mxu0 %v6323_v43  ;;  %1906 = vmatprep.subr.bf16.mxu1 %v6324_v24  ;;  %v6412_v43 = vld [vmem:[#allocation52_spill] sm:$0xff]  ;;  %v6413_v24 = vld [vmem:[#allocation53_spill] sm:$0xff] }
 0x502   :  { %1866 = vmatpush1.bf16.msra.mxu0 %v6325_v25  ;;  %1907 = vmatpush1.bf16.msra.mxu1 %v6326_v28  ;;  %v6414_v25 = vld [vmem:[#allocation54_spill] sm:$0xff]  ;;  %v6415_v28 = vld [vmem:[#allocation55_spill] sm:$0xff] }
 0x503   :  { %1867 = vmatprep.subr.bf16.mxu0 %v6327_v29  ;;  %1908 = vmatprep.subr.bf16.mxu1 %v6328_v33  ;;  %v6416_v29 = vld [vmem:[#allocation56_spill] sm:$0xff]  ;;  %v6417_v33 = vld [vmem:[#allocation57_spill] sm:$0xff] }
 0x506   :  { %1868 = vmatpush1.bf16.msra.mxu0 %v6329_v34  ;;  %1909 = vmatpush1.bf16.msra.mxu1 %v6330_v36  ;;  %v6418_v34 = vld [vmem:[#allocation58_spill] sm:$0xff]  ;;  %v6419_v36 = vld [vmem:[#allocation59_spill] sm:$0xff] }
 0x507   :  { %1869 = vmatprep.subr.bf16.mxu0 %v6331_v37  ;;  %1910 = vmatprep.subr.bf16.mxu1 %v6332_v40  ;;  %v6420_v37 = vld [vmem:[#allocation60_spill] sm:$0xff]  ;;  %v6421_v40 = vld [vmem:[#allocation61_spill] sm:$0xff] }
 0x50a   :  { %1870 = vmatpush1.bf16.msra.mxu0 %v4699_v1  ;;  %1911 = vmatpush1.bf16.msra.mxu1 %v4702_v4  ;;  %v6409_v1 = vld [vmem:[#allocation78_spill] sm:$0xff]  ;;  %v6410_v4 = vld [vmem:[#allocation79_spill] sm:$0xff] }
 0x50b   :  { %1871 = vmatprep.subr.bf16.mxu0 %v4705_v48  ;;  %1912 = vmatprep.subr.bf16.mxu1 %v4708_v27  ;;  %v6405_v48 = vld [vmem:[#allocation50_spill] sm:$0xff]  ;;  %v6406_v27 = vld [vmem:[#allocation75_spill] sm:$0xff] }
 0x50e   :  { %1872 = vmatpush1.bf16.msra.mxu0 %v4711_v50  ;;  %1913 = vmatpush1.bf16.msra.mxu1 %v4714_v0  ;;  %v6407_v50 = vld [vmem:[#allocation76_spill] sm:$0xff]  ;;  %v6408_v0 = vld [vmem:[#allocation77_spill] sm:$0xff] }
 0x50f   :  { %1969 = vmatprep.subr.bf16.mxu0 %v4833_v42  ;;  %2010 = vmatprep.subr.bf16.mxu1 %v4836_v44 }
 0x511   :  { %1890 = vmatmul.mubr.bf16.vlgmr.msra.gmra.mrb[48].mxu0 %v1744_v57  ;;  %1931 = vmatmul.mubr.bf16.vlgmr.msra.gmra.mrb[48].mxu1 %v1744_v57  ;;  %v6441_v57 = vld [vmem:[#allocation26_spill] sm:$0xff] }
 0x512   :  { %1970 = vmatpush1.bf16.msra.mxu0 %v4839_v45  ;;  %2011 = vmatpush1.bf16.msra.mxu1 %v4842_v63 }
 0x513   :  { %1971 = vmatprep.subr.bf16.mxu0 %v4845_v46  ;;  %2012 = vmatprep.subr.bf16.mxu1 %v4848_v47 }
 0x516   :  { %1972 = vmatpush1.bf16.msra.mxu0 %v4851_v49  ;;  %2013 = vmatpush1.bf16.msra.mxu1 %v4854_v6 }
 0x517   :  { %1973 = vmatprep.subr.bf16.mxu0 %v4857_v51  ;;  %2014 = vmatprep.subr.bf16.mxu1 %v4860_v53 }
 0x51a   :  { %1974 = vmatpush1.bf16.msra.mxu0 %v6391_v60  ;;  %2015 = vmatpush1.bf16.msra.mxu1 %v6392_v2 }
 0x51b   :  { %1975 = vmatprep.subr.bf16.mxu0 %v6393_v3  ;;  %2016 = vmatprep.subr.bf16.mxu1 %v6394_v7 }
 0x51e   :  { %1976 = vmatpush1.bf16.msra.mxu0 %v6395_v31  ;;  %2017 = vmatpush1.bf16.msra.mxu1 %v6396_v39 }
 0x51f   :  { %1977 = vmatprep.subr.bf16.mxu0 %v6397_v9  ;;  %2018 = vmatprep.subr.bf16.mxu1 %v6398_v62 }
 0x522   :  { %1978 = vmatpush1.bf16.msra.mxu0 %v6399_v8  ;;  %2019 = vmatpush1.bf16.msra.mxu1 %v6400_v5 }
 0x523   :  { %1979 = vmatprep.subr.bf16.mxu0 %v6401_v38  ;;  %2020 = vmatprep.subr.bf16.mxu1 %v6402_v17 }
 0x526   :  { %1980 = vmatpush1.bf16.msra.mxu0 %v6403_v26  ;;  %2021 = vmatpush1.bf16.msra.mxu1 %v6404_v16 }
 0x527   :  { %1981 = vmatprep.subr.bf16.mxu0 %v6405_v48  ;;  %2022 = vmatprep.subr.bf16.mxu1 %v6406_v27 }
 0x52a   :  { %1982 = vmatpush1.bf16.msra.mxu0 %v6407_v50  ;;  %2023 = vmatpush1.bf16.msra.mxu1 %v6408_v0 }
 0x52b   :  { %1983 = vmatprep.subr.bf16.mxu0 %v6409_v1  ;;  %2024 = vmatprep.subr.bf16.mxu1 %v6410_v4 }
 0x52e   :  { %1984 = vmatpush1.bf16.msra.mxu0 %v6411_v15  ;;  %2025 = vmatpush1.bf16.msra.mxu1 %v6412_v43 }
 0x52f   :  { %1985 = vmatprep.subr.bf16.mxu0 %v6413_v24  ;;  %2026 = vmatprep.subr.bf16.mxu1 %v6414_v25 }
 0x532   :  { %1986 = vmatpush1.bf16.msra.mxu0 %v6415_v28  ;;  %2027 = vmatpush1.bf16.msra.mxu1 %v6416_v29 }
 0x533   :  { %1987 = vmatprep.subr.bf16.mxu0 %v6417_v33  ;;  %2028 = vmatprep.subr.bf16.mxu1 %v6418_v34 }
 0x536   :  { %1988 = vmatpush1.bf16.msra.mxu0 %v6419_v36  ;;  %2029 = vmatpush1.bf16.msra.mxu1 %v6420_v37 }
 0x537   :  { %1989 = vmatprep.subr.bf16.mxu0 %v6421_v40  ;;  %2030 = vmatprep.subr.bf16.mxu1 %v6422_v13 }
 0x53a   :  { %1990 = vmatpush1.bf16.msra.mxu0 %v6423_v56  ;;  %2031 = vmatpush1.bf16.msra.mxu1 %v6424_v20  ;;  %v6450_v20 = vld [vmem:[#allocation25_spill] sm:$0xff] }
 0x53b   :  { %1991 = vmatprep.subr.bf16.mxu0 %v6425_v23  ;;  %2032 = vmatprep.subr.bf16.mxu1 %v6426_v30 }
 0x53e   :  { %1992 = vmatpush1.bf16.msra.mxu0 %v6427_v58  ;;  %2033 = vmatpush1.bf16.msra.mxu1 %v6428_v32 }
 0x53f   :  { %1993 = vmatprep.subr.bf16.mxu0 %v6429_v18  ;;  %2034 = vmatprep.subr.bf16.mxu1 %v6430_v61  ;;  %v6448_v61 = vld [vmem:[#allocation23_spill] sm:$0xff] }
 0x542   :  { %1994 = vmatpush1.bf16.msra.mxu0 %v6431_v35  ;;  %2035 = vmatpush1.bf16.msra.mxu1 %v6432_v55  ;;  %v6442_v35 = vld [vmem:[#allocation27_spill] sm:$0xff]  ;;  %v6443_v55 = vld [vmem:[#allocation28_spill] sm:$0xff] }
 0x543   :  { %1995 = vmatprep.subr.bf16.mxu0 %v6433_v54  ;;  %2036 = vmatprep.subr.bf16.mxu1 %v6434_v22  ;;  %v6444_v54 = vld [vmem:[#allocation29_spill] sm:$0xff]  ;;  %v5139_v22 = vld [vmem:[#allocation8 + $0x4] ss:$16 sps:$4 sm:$0xff]  }
 0x544   :  { %6445 = vst [vmem:[#allocation30_spill] sm:$0xff] %v5139_v22 }
 0x546   :  { %1996 = vmatpush1.bf16.msra.mxu0 %v6435_v12  ;;  %2037 = vmatpush1.bf16.msra.mxu1 %v6436_v59  ;;  %v5142_v59 = vld [vmem:[#allocation8 + $0xc] ss:$16 sps:$4 sm:$0xff]  }
 0x547   :  { %1997 = vmatprep.subr.bf16.mxu0 %v6437_v52  ;;  %2038 = vmatprep.subr.bf16.mxu1 %v6438_v41  ;;  %6446 = vst [vmem:[#allocation31_spill] sm:$0xff] %v5142_v59  ;;  %v6447_v52 = vld [vmem:[#allocation22_spill] sm:$0xff] }
 0x54a   :  { %1998 = vmatpush1.bf16.msra.mxu0 %v6439_v10  ;;  %2039 = vmatpush1.bf16.msra.mxu1 %v6440_v21 }
 0x54b   :  { %1999 = vmatprep.subr.bf16.mxu0 %v6441_v57  ;;  %2040 = vmatprep.subr.bf16.mxu1 %v6442_v35 }
 0x54e   :  { %2000 = vmatpush1.bf16.msra.mxu0 %v6443_v55  ;;  %2041 = vmatpush1.bf16.msra.mxu1 %v6444_v54 }
 0x54f   :  { %2080 = vmatprep.subr.bf16.mxu0 %v5139_v22  ;;  %2121 = vmatprep.subr.bf16.mxu1 %v5142_v59  ;;  %v6449_v22 = vld [vmem:[#allocation24_spill] sm:$0xff] }
 0x5c4   :  { %v1780_v41 = vpop.f32.mrb[44].mxu0  ;;  %v1821_v10 = vpop.f32.mrb[44].mxu1 }
 0x5c5   :  { %v1781_v21 = vadd.f32 %v1780_v41, %v6447_v52  ;;  %v1782_v12 = vpop.f32.mrb[45].mxu0  ;;  %v1823_v57 = vpop.f32.mrb[45].mxu1  ;;  %v1822_v23 = vadd.f32 %v1821_v10, %v6449_v22  ;;  %v6454_v22 = vld [vmem:[#allocation91_spill] sm:$0xff] }
 0x5c6   :  { %v1783_v35 = vadd.f32 %v1782_v12, %v6448_v61  ;;  %v1784_v18 = vpop.f32.mrb[46].mxu0  ;;  %v1825_v55 = vpop.f32.mrb[46].mxu1  ;;  %v1824_v59 = vadd.f32 %v1823_v57, %v6450_v20 }
 0x5c7   :  { %v3044_v32 = vmul.f32 -1.442695, %v1781_v21  ;;  %v1785_v54 = vpop.f32.mrb[47].mxu0  ;;  %v1826_v58 = vpop.f32.mrb[47].mxu1  ;;  %v3046_v56 = vmul.f32 -1.442695, %v1822_v23 }
 0x5c8   :  { %v3045_v30 = vmul.f32 -1.442695, %v1783_v35  ;;  %v6451_v23 = vld [vmem:[#allocation88_spill] sm:$0xff] }
 0x5c9   :  { %3393 = vpow2.f32 %v3044_v32 }
 0x5ca   :  { %3395 = vpow2.f32 %v3045_v30 }
 0x5cb   :  { %3397 = vtanh.f32 %v1824_v59  ;;  %v6452_v59 = vld [vmem:[#allocation89_spill] sm:$0xff] }
 0x5cc   :  { %3399 = vpow2.f32 %v3046_v56 }
 0x5d3   :  { %v3394_v13 = vpop.eup %3393 }
 0x5d4   :  { %v1837_v40 = vadd.f32 1.0, %v3394_v13  ;;  %v3396_v41 = vpop.eup %3395 }
 0x5d5   :  { %v1838_v12 = vadd.f32 1.0, %v3396_v41  ;;  %v3398_v18 = vpop.eup %3397  ;;  %v6453_v41 = vld [vmem:[#allocation90_spill] sm:$0xff] }
 0x5d6   :  { %3401 = vrcp.f32 %v1837_v40  ;;  %v3400_v55 = vpop.eup %3399 }
 0x5d7   :  { %3403 = vrcp.f32 %v1838_v12  ;;  %v1839_v32 = vadd.f32 1.0, %v3400_v55 }
 0x5d9   :  { %3405 = vrcp.f32 %v1839_v32 }
 0x5e0   :  { %v3402_v54 = vpop.eup %3401 }
 0x5e1   :  { %v1848_v58 = vmul.f32 %v3402_v54, %v3398_v18  ;;  %v3404_v35 = vpop.eup %3403 }
 0x5e2   :  { %v1847_v30 = vmul.f32 %v3404_v35, %v5032_v11 }
 0x5e3   :  { %v3406_v35 = vpop.eup %3405 }
 0x5e4   :  { %v1891_v10 = vpop.f32.mrb[48].mxu0  ;;  %v1932_v21 = vpop.f32.mrb[48].mxu1  ;;  %v5150_v57 = vadd.f32 %v1848_v58, %v1847_v30 }
 0x5e5   :  { %v1939_v13 = vadd.f32 %v1891_v10, %v6451_v23  ;;  %v1941_v20 = vadd.f32 %v1932_v21, %v6452_v59  ;;  %v1893_v56 = vpop.f32.mrb[49].mxu0  ;;  %v1934_v40 = vpop.f32.mrb[49].mxu1 }
 0x5e6   :  { %v1940_v12 = vadd.f32 %v1893_v56, %v6453_v41  ;;  %v1942_v61 = vadd.f32 %v1934_v40, %v6454_v22  ;;  %v1895_v18 = vpop.f32.mrb[50].mxu0  ;;  %v1936_v54 = vpop.f32.mrb[50].mxu1  ;;  %3407 = vtanh.f32 %v5150_v57 }
 0x5e7   :  { %v3047_v55 = vmul.f32 -1.442695, %v1939_v13  ;;  %v1896_v52 = vpop.f32.mrb[51].mxu0  ;;  %v1937_v11 = vpop.f32.mrb[51].mxu1  ;;  %v3049_v10 = vmul.f32 -1.442695, %v1941_v20 }
 0x5e8   :  { %v3048_v58 = vmul.f32 -1.442695, %v1940_v12 }
 0x5e9   :  { %3409 = vpow2.f32 %v3047_v55 }
 0x5ea   :  { %3411 = vpow2.f32 %v3048_v58 }
 0x5eb   :  { %3413 = vtanh.f32 %v1942_v61 }
 0x5ec   :  { %3415 = vpow2.f32 %v3049_v10  ;;  %v5174_v10 = vld [vmem:[#allocation8 + $0x2c] ss:$16 sps:$4 sm:$0xff]  }
 0x5f0   :  { %v3408_v30 = vpop.eup %3407 }
 0x5f1   :  { %v1851_v21 = vmul.f32 %v3408_v30, %v3406_v35  ;;  %v5165_v35 = vld [vmem:[#allocation8] ss:$16 sps:$4 sm:$0xff]   ;;  %v5168_v30 = vld [vmem:[#allocation8 + $0x8] ss:$16 sps:$4 sm:$0xff]  }
 0x5f3   :  { %v3410_v23 = vpop.eup %3409  ;;  %v1968_v59 = vpack.c.bf16 %v1851_v21, %v1851_v21  ;;  %v5179_v21 = vld [vmem:[#allocation8 + $0x20] ss:$16 sps:$4 sm:$0xff]  }
 0x5f4   :  { %v1952_v32 = vadd.f32 1.0, %v3410_v23  ;;  %v3412_v56 = vpop.eup %3411  ;;  %v5182_v23 = vld [vmem:[#allocation8 + $0x28] ss:$16 sps:$4 sm:$0xff]  }
 0x5f5   :  { %v1953_v22 = vadd.f32 1.0, %v3412_v56  ;;  %2001 = vmatprep.mubr.bf16.mxu0 %v1968_v59  ;;  %2042 = vmatprep.mubr.bf16.mxu1 %v1968_v59  ;;  %v3414_v52 = vpop.eup %3413  ;;  %v5188_v59 = vld [vmem:[#allocation8 + $0x4c] ss:$16 sps:$4 sm:$0xff]   ;;  %v5191_v56 = vld [vmem:[#allocation8 + $0x40] ss:$16 sps:$4 sm:$0xff]  }
 0x5f6   :  { %3417 = vrcp.f32 %v1952_v32  ;;  %v3416_v13 = vpop.eup %3415  ;;  %v5185_v32 = vld [vmem:[#allocation8 + $0x44] ss:$16 sps:$4 sm:$0xff]  }
 0x5f7   :  { %3419 = vrcp.f32 %v1953_v22  ;;  %v1954_v18 = vadd.f32 1.0, %v3416_v13  ;;  %v5194_v22 = vld [vmem:[#allocation8 + $0x48] ss:$16 sps:$4 sm:$0xff]   ;;  %v5200_v13 = vld [vmem:[#allocation8 + $0x6c] ss:$16 sps:$4 sm:$0xff]  }
 0x5f9   :  { %3421 = vrcp.f32 %v1954_v18  ;;  %v5212_v18 = vld [vmem:[#allocation8 + $0x8c] ss:$16 sps:$4 sm:$0xff]  }
 0x5fa   :  { %6456 = vst [vmem:[#allocation33_spill] sm:$0xff] %v5212_v18 }
 0x600   :  { %v3418_v40 = vpop.eup %3417 }
 0x601   :  { %v1963_v41 = vmul.f32 %v3418_v40, %v3414_v52  ;;  %v3420_v12 = vpop.eup %3419  ;;  %v5197_v52 = vld [vmem:[#allocation8 + $0x64] ss:$16 sps:$4 sm:$0xff]   ;;  %v5203_v40 = vld [vmem:[#allocation8 + $0x60] ss:$16 sps:$4 sm:$0xff]  }
 0x602   :  { %v1962_v20 = vmul.f32 %v3420_v12, %v5040_v14  ;;  %v5171_v14 = vld [vmem:[#allocation8 + $0x24] ss:$16 sps:$4 sm:$0xff]  }
 0x603   :  { %v3422_v61 = vpop.eup %3421  ;;  %v5209_v12 = vld [vmem:[#allocation8 + $0x84] ss:$16 sps:$4 sm:$0xff]  }
 0x604   :  { %v5158_v54 = vadd.f32 %v1963_v41, %v1962_v20  ;;  %v5206_v41 = vld [vmem:[#allocation8 + $0x68] ss:$16 sps:$4 sm:$0xff]   ;;  %6455 = vst [vmem:[#allocation32_spill] sm:$0xff] %v5209_v12  ;;  %v5215_v20 = vld [vmem:[#allocation8 + $0x80] ss:$16 sps:$4 sm:$0xff]  }
 0x605   :  { %6457 = vst [vmem:[#allocation34_spill] sm:$0xff] %v5215_v20 }
 0x606   :  { %3423 = vtanh.f32 %v5158_v54 }
 0x610   :  { %v3424_v55 = vpop.eup %3423 }
 0x611   :  { %v1966_v11 = vmul.f32 %v3424_v55, %v3422_v61  ;;  %v5218_v61 = vld [vmem:[#allocation8 + $0x88] ss:$16 sps:$4 sm:$0xff]   ;;  %v5221_v55 = vld [vmem:[#allocation8 + $0xa4] ss:$16 sps:$4 sm:$0xff]  }
 0x612   :  { %6458 = vst [vmem:[#allocation35_spill] sm:$0xff] %v5218_v61  ;;  %6459 = vst [vmem:[#allocation84_spill] sm:$0xff] %v5221_v55 }
 0x613   :  { %v5161_v58 = vpack.c.bf16 %v1966_v11, %v1966_v11  ;;  %v5224_v11 = vld [vmem:[#allocation8 + $0xac] ss:$16 sps:$4 sm:$0xff]  }
 0x614   :  { %6460 = vst [vmem:[#allocation85_spill] sm:$0xff] %v5224_v11 }
 0x615   :  { %2002 = vmatmul.mubr.bf16.vlgmr.msra.gmra.mrb[52].mxu0 %v5161_v58  ;;  %2043 = vmatmul.mubr.bf16.vlgmr.msra.gmra.mrb[52].mxu1 %v5161_v58 }
 0x616   :  { %2081 = vmatpush1.bf16.msra.mxu0 %v5165_v35  ;;  %2122 = vmatpush1.bf16.msra.mxu1 %v5168_v30 }
 0x617   :  { %2082 = vmatprep.subr.bf16.mxu0 %v5171_v14  ;;  %2123 = vmatprep.subr.bf16.mxu1 %v5174_v10 }
 0x618   :  { %2112 = vmatprep.mubr.bf16.mxu0 %v6208_v19  ;;  %2153 = vmatprep.mubr.bf16.mxu1 %v6208_v19 }
 0x61a   :  { %2083 = vmatpush1.bf16.msra.mxu0 %v5179_v21  ;;  %2124 = vmatpush1.bf16.msra.mxu1 %v5182_v23 }
 0x61b   :  { %2084 = vmatprep.subr.bf16.mxu0 %v5185_v32  ;;  %2125 = vmatprep.subr.bf16.mxu1 %v5188_v59 }
 0x61e   :  { %2085 = vmatpush1.bf16.msra.mxu0 %v5191_v56  ;;  %2126 = vmatpush1.bf16.msra.mxu1 %v5194_v22 }
 0x61f   :  { %2086 = vmatprep.subr.bf16.mxu0 %v5197_v52  ;;  %2127 = vmatprep.subr.bf16.mxu1 %v5200_v13 }
 0x622   :  { %2087 = vmatpush1.bf16.msra.mxu0 %v5203_v40  ;;  %2128 = vmatpush1.bf16.msra.mxu1 %v5206_v41 }
 0x623   :  { %2088 = vmatprep.subr.bf16.mxu0 %v5209_v12  ;;  %2129 = vmatprep.subr.bf16.mxu1 %v5212_v18  ;;  %v5227_v12 = vld [vmem:[#allocation8 + $0xa0] ss:$16 sps:$4 sm:$0xff]   ;;  %v5230_v18 = vld [vmem:[#allocation8 + $0xa8] ss:$16 sps:$4 sm:$0xff]  }
 0x624   :  { %6461 = vst [vmem:[#allocation86_spill] sm:$0xff] %v5227_v12  ;;  %6462 = vst [vmem:[#allocation87_spill] sm:$0xff] %v5230_v18 }
 0x626   :  { %2089 = vmatpush1.bf16.msra.mxu0 %v5215_v20  ;;  %2130 = vmatpush1.bf16.msra.mxu1 %v5218_v61  ;;  %v5233_v20 = vld [vmem:[#allocation8 + $0xc4] ss:$16 sps:$4 sm:$0xff]   ;;  %v5236_v61 = vld [vmem:[#allocation8 + $0xcc] ss:$16 sps:$4 sm:$0xff]  }
 0x627   :  { %2090 = vmatprep.subr.bf16.mxu0 %v5221_v55  ;;  %2131 = vmatprep.subr.bf16.mxu1 %v5224_v11  ;;  %6463 = vst [vmem:[#allocation36_spill] sm:$0xff] %v5233_v20  ;;  %6464 = vst [vmem:[#allocation37_spill] sm:$0xff] %v5236_v61  ;;  %v5239_v55 = vld [vmem:[#allocation8 + $0xc0] ss:$16 sps:$4 sm:$0xff]   ;;  %v5242_v11 = vld [vmem:[#allocation8 + $0xc8] ss:$16 sps:$4 sm:$0xff]  }
 0x62a   :  { %2091 = vmatpush1.bf16.msra.mxu0 %v5227_v12  ;;  %2132 = vmatpush1.bf16.msra.mxu1 %v5230_v18  ;;  %v5245_v12 = vld [vmem:[#allocation8 + $0xe4] ss:$16 sps:$4 sm:$0xff]   ;;  %v5248_v18 = vld [vmem:[#allocation8 + $0xec] ss:$16 sps:$4 sm:$0xff]  }
 0x62b   :  { %2092 = vmatprep.subr.bf16.mxu0 %v5233_v20  ;;  %2133 = vmatprep.subr.bf16.mxu1 %v5236_v61  ;;  %v5251_v20 = vld [vmem:[#allocation8 + $0xe0] ss:$16 sps:$4 sm:$0xff]   ;;  %v5254_v61 = vld [vmem:[#allocation8 + $0xe8] ss:$16 sps:$4 sm:$0xff]  }
 0x62e   :  { %2093 = vmatpush1.bf16.msra.mxu0 %v5239_v55  ;;  %2134 = vmatpush1.bf16.msra.mxu1 %v5242_v11 }
 0x62f   :  { %2094 = vmatprep.subr.bf16.mxu0 %v5245_v12  ;;  %2135 = vmatprep.subr.bf16.mxu1 %v5248_v18 }
 0x632   :  { %2095 = vmatpush1.bf16.msra.mxu0 %v5251_v20  ;;  %2136 = vmatpush1.bf16.msra.mxu1 %v5254_v61 }
 0x633   :  { %2192 = vmatprep.subr.bf16.mxu0 %v4833_v42  ;;  %2233 = vmatprep.subr.bf16.mxu1 %v4836_v44  ;;  %v6465_v42 = vld [vmem:[#allocation61_spill] sm:$0xff]  ;;  %v6466_v44 = vld [vmem:[#allocation62_spill] sm:$0xff] }
 0x635   :  { %2113 = vmatmul.mubr.bf16.vlgmr.msra.gmra.mrb[56].mxu0 %v5161_v58  ;;  %2154 = vmatmul.mubr.bf16.vlgmr.msra.gmra.mrb[56].mxu1 %v5161_v58  ;;  %v6493_v58 = vld [vmem:[#allocation24_spill] sm:$0xff] }
 0x636   :  { %2193 = vmatpush1.bf16.msra.mxu0 %v4839_v45  ;;  %2234 = vmatpush1.bf16.msra.mxu1 %v4842_v63  ;;  %v6467_v45 = vld [vmem:[#allocation63_spill] sm:$0xff]  ;;  %v6468_v63 = vld [vmem:[#allocation64_spill] sm:$0xff] }
 0x637   :  { %2194 = vmatprep.subr.bf16.mxu0 %v4845_v46  ;;  %2235 = vmatprep.subr.bf16.mxu1 %v4848_v47  ;;  %v6469_v46 = vld [vmem:[#allocation65_spill] sm:$0xff]  ;;  %v6470_v47 = vld [vmem:[#allocation66_spill] sm:$0xff] }
 0x63a   :  { %2195 = vmatpush1.bf16.msra.mxu0 %v4851_v49  ;;  %2236 = vmatpush1.bf16.msra.mxu1 %v4854_v6  ;;  %v6471_v49 = vld [vmem:[#allocation67_spill] sm:$0xff]  ;;  %v6472_v6 = vld [vmem:[#allocation68_spill] sm:$0xff] }
 0x63b   :  { %2196 = vmatprep.subr.bf16.mxu0 %v4857_v51  ;;  %2237 = vmatprep.subr.bf16.mxu1 %v4860_v53  ;;  %v6473_v51 = vld [vmem:[#allocation69_spill] sm:$0xff]  ;;  %v6474_v53 = vld [vmem:[#allocation70_spill] sm:$0xff] }
 0x63e   :  { %2197 = vmatpush1.bf16.msra.mxu0 %v6391_v60  ;;  %2238 = vmatpush1.bf16.msra.mxu1 %v6392_v2  ;;  %v6475_v60 = vld [vmem:[#allocation71_spill] sm:$0xff]  ;;  %v6476_v2 = vld [vmem:[#allocation72_spill] sm:$0xff] }
 0x63f   :  { %2198 = vmatprep.subr.bf16.mxu0 %v6393_v3  ;;  %2239 = vmatprep.subr.bf16.mxu1 %v6394_v7  ;;  %v6477_v3 = vld [vmem:[#allocation73_spill] sm:$0xff]  ;;  %v6478_v7 = vld [vmem:[#allocation74_spill] sm:$0xff] }
 0x642   :  { %2199 = vmatpush1.bf16.msra.mxu0 %v6395_v31  ;;  %2240 = vmatpush1.bf16.msra.mxu1 %v6396_v39  ;;  %v6479_v31 = vld [vmem:[#allocation20_spill] sm:$0xff]  ;;  %v6480_v39 = vld [vmem:[#allocation21_spill] sm:$0xff] }
 0x643   :  { %2200 = vmatprep.subr.bf16.mxu0 %v6397_v9  ;;  %2241 = vmatprep.subr.bf16.mxu1 %v6398_v62  ;;  %v6481_v9 = vld [vmem:[#allocation80_spill] sm:$0xff]  ;;  %v6482_v62 = vld [vmem:[#allocation81_spill] sm:$0xff] }
 0x646   :  { %2201 = vmatpush1.bf16.msra.mxu0 %v6399_v8  ;;  %2242 = vmatpush1.bf16.msra.mxu1 %v6400_v5  ;;  %v6483_v8 = vld [vmem:[#allocation82_spill] sm:$0xff]  ;;  %v6484_v5 = vld [vmem:[#allocation83_spill] sm:$0xff] }
 0x647   :  { %2202 = vmatprep.subr.bf16.mxu0 %v6401_v38  ;;  %2243 = vmatprep.subr.bf16.mxu1 %v6402_v17  ;;  %v6485_v38 = vld [vmem:[#allocation26_spill] sm:$0xff]  ;;  %v6486_v17 = vld [vmem:[#allocation27_spill] sm:$0xff] }
 0x64a   :  { %2203 = vmatpush1.bf16.msra.mxu0 %v6403_v26  ;;  %2244 = vmatpush1.bf16.msra.mxu1 %v6404_v16  ;;  %v6487_v26 = vld [vmem:[#allocation28_spill] sm:$0xff]  ;;  %v6488_v16 = vld [vmem:[#allocation29_spill] sm:$0xff] }
 0x64b   :  { %2204 = vmatprep.subr.bf16.mxu0 %v6405_v48  ;;  %2245 = vmatprep.subr.bf16.mxu1 %v6406_v27  ;;  %v6489_v48 = vld [vmem:[#allocation30_spill] sm:$0xff]  ;;  %v6490_v27 = vld [vmem:[#allocation31_spill] sm:$0xff] }
 0x64e   :  { %2205 = vmatpush1.bf16.msra.mxu0 %v6407_v50  ;;  %2246 = vmatpush1.bf16.msra.mxu1 %v6408_v0 }
 0x64f   :  { %2206 = vmatprep.subr.bf16.mxu0 %v6409_v1  ;;  %2247 = vmatprep.subr.bf16.mxu1 %v6410_v4  ;;  %v6491_v1 = vld [vmem:[#allocation22_spill] sm:$0xff] }
 0x652   :  { %2207 = vmatpush1.bf16.msra.mxu0 %v6411_v15  ;;  %2248 = vmatpush1.bf16.msra.mxu1 %v6412_v43 }
 0x653   :  { %2208 = vmatprep.subr.bf16.mxu0 %v6413_v24  ;;  %2249 = vmatprep.subr.bf16.mxu1 %v6414_v25  ;;  %v6492_v24 = vld [vmem:[#allocation23_spill] sm:$0xff] }
 0x656   :  { %2209 = vmatpush1.bf16.msra.mxu0 %v6415_v28  ;;  %2250 = vmatpush1.bf16.msra.mxu1 %v6416_v29 }
 0x657   :  { %2210 = vmatprep.subr.bf16.mxu0 %v6417_v33  ;;  %2251 = vmatprep.subr.bf16.mxu1 %v6418_v34 }
 0x65a   :  { %2211 = vmatpush1.bf16.msra.mxu0 %v6419_v36  ;;  %2252 = vmatpush1.bf16.msra.mxu1 %v6420_v37 }
 0x65b   :  { %2212 = vmatprep.subr.bf16.mxu0 %v6465_v42  ;;  %2253 = vmatprep.subr.bf16.mxu1 %v6466_v44  ;;  %v6494_v44 = vld [vmem:[#allocation25_spill] sm:$0xff] }
 0x65e   :  { %2213 = vmatpush1.bf16.msra.mxu0 %v6467_v45  ;;  %2254 = vmatpush1.bf16.msra.mxu1 %v6468_v63 }
 0x65f   :  { %2214 = vmatprep.subr.bf16.mxu0 %v6469_v46  ;;  %2255 = vmatprep.subr.bf16.mxu1 %v6470_v47 }
 0x662   :  { %2215 = vmatpush1.bf16.msra.mxu0 %v6471_v49  ;;  %2256 = vmatpush1.bf16.msra.mxu1 %v6472_v6 }
 0x663   :  { %2216 = vmatprep.subr.bf16.mxu0 %v6473_v51  ;;  %2257 = vmatprep.subr.bf16.mxu1 %v6474_v53 }
 0x666   :  { %2217 = vmatpush1.bf16.msra.mxu0 %v6475_v60  ;;  %2258 = vmatpush1.bf16.msra.mxu1 %v6476_v2 }
 0x667   :  { %2218 = vmatprep.subr.bf16.mxu0 %v6477_v3  ;;  %2259 = vmatprep.subr.bf16.mxu1 %v6478_v7 }
 0x66a   :  { %2219 = vmatpush1.bf16.msra.mxu0 %v6479_v31  ;;  %2260 = vmatpush1.bf16.msra.mxu1 %v6480_v39 }
 0x66b   :  { %2220 = vmatprep.subr.bf16.mxu0 %v6481_v9  ;;  %2261 = vmatprep.subr.bf16.mxu1 %v6482_v62 }
 0x66e   :  { %2221 = vmatpush1.bf16.msra.mxu0 %v6483_v8  ;;  %2262 = vmatpush1.bf16.msra.mxu1 %v6484_v5  ;;  %v6495_v8 = vld [vmem:[#allocation92_spill] sm:$0xff] }
 0x66f   :  { %2222 = vmatprep.subr.bf16.mxu0 %v6485_v38  ;;  %2263 = vmatprep.subr.bf16.mxu1 %v6486_v17  ;;  %v6496_v38 = vld [vmem:[#allocation93_spill] sm:$0xff] }
 0x672   :  { %2223 = vmatpush1.bf16.msra.mxu0 %v6487_v26  ;;  %2264 = vmatpush1.bf16.msra.mxu1 %v6488_v16 }
 0x673   :  { %2303 = vmatprep.subr.bf16.mxu0 %v6489_v48  ;;  %2344 = vmatprep.subr.bf16.mxu1 %v6490_v27 }
 0x6e8   :  { %v2003_v50 = vpop.f32.mrb[52].mxu0  ;;  %v2044_v0 = vpop.f32.mrb[52].mxu1 }
 0x6e9   :  { %v2004_v4 = vadd.f32 %v2003_v50, %v6491_v1  ;;  %v2005_v15 = vpop.f32.mrb[53].mxu0  ;;  %v2046_v43 = vpop.f32.mrb[53].mxu1  ;;  %v2045_v42 = vadd.f32 %v2044_v0, %v6493_v58  ;;  %v6497_v50 = vld [vmem:[#allocation94_spill] sm:$0xff] }
 0x6ea   :  { %v2006_v25 = vadd.f32 %v2005_v15, %v6492_v24  ;;  %v2007_v28 = vpop.f32.mrb[54].mxu0  ;;  %v2048_v29 = vpop.f32.mrb[54].mxu1  ;;  %v2047_v45 = vadd.f32 %v2046_v43, %v6494_v44 }
 0x6eb   :  { %v3050_v33 = vmul.f32 -1.442695, %v2004_v4  ;;  %v2008_v34 = vpop.f32.mrb[55].mxu0  ;;  %v2049_v36 = vpop.f32.mrb[55].mxu1  ;;  %v3052_v63 = vmul.f32 -1.442695, %v2045_v42 }
 0x6ec   :  { %v3051_v37 = vmul.f32 -1.442695, %v2006_v25  ;;  %v6498_v4 = vld [vmem:[#allocation95_spill] sm:$0xff] }
 0x6ed   :  { %3425 = vpow2.f32 %v3050_v33 }
 0x6ee   :  { %3427 = vpow2.f32 %v3051_v37 }
 0x6ef   :  { %3429 = vtanh.f32 %v2047_v45 }
 0x6f0   :  { %3431 = vpow2.f32 %v3052_v63 }
 0x6f7   :  { %v3426_v46 = vpop.eup %3425 }
 0x6f8   :  { %v2060_v47 = vadd.f32 1.0, %v3426_v46  ;;  %v3428_v49 = vpop.eup %3427 }
 0x6f9   :  { %v2061_v6 = vadd.f32 1.0, %v3428_v49  ;;  %v3430_v51 = vpop.eup %3429 }
 0x6fa   :  { %3433 = vrcp.f32 %v2060_v47  ;;  %v3432_v53 = vpop.eup %3431 }
 0x6fb   :  { %3435 = vrcp.f32 %v2061_v6  ;;  %v2062_v7 = vadd.f32 1.0, %v3432_v53 }
 0x6fd   :  { %3437 = vrcp.f32 %v2062_v7 }
 0x704   :  { %v3434_v60 = vpop.eup %3433 }
 0x705   :  { %v2071_v2 = vmul.f32 %v3434_v60, %v3430_v51  ;;  %v3436_v3 = vpop.eup %3435 }
 0x706   :  { %v2070_v31 = vmul.f32 %v3436_v3, %v5150_v57 }
 0x707   :  { %v3438_v34 = vpop.eup %3437 }
 0x708   :  { %v2114_v39 = vpop.f32.mrb[56].mxu0  ;;  %v2155_v9 = vpop.f32.mrb[56].mxu1  ;;  %v5330_v62 = vadd.f32 %v2071_v2, %v2070_v31 }
 0x709   :  { %v2162_v5 = vadd.f32 %v2114_v39, %v6495_v8  ;;  %v2164_v17 = vadd.f32 %v2155_v9, %v6496_v38  ;;  %v2116_v26 = vpop.f32.mrb[57].mxu0  ;;  %v2157_v16 = vpop.f32.mrb[57].mxu1  ;;  %v6500_v38 = vld [vmem:[#allocation33_spill] sm:$0xff] }
 0x70a   :  { %v2163_v0 = vadd.f32 %v2116_v26, %v6497_v50  ;;  %v2165_v15 = vadd.f32 %v2157_v16, %v6498_v4  ;;  %v2118_v43 = vpop.f32.mrb[58].mxu0  ;;  %v2159_v25 = vpop.f32.mrb[58].mxu1  ;;  %3439 = vtanh.f32 %v5330_v62  ;;  %v6502_v26 = vld [vmem:[#allocation35_spill] sm:$0xff]  ;;  %v6503_v16 = vld [vmem:[#allocation84_spill] sm:$0xff]  ;;  %v6504_v50 = vld [vmem:[#allocation85_spill] sm:$0xff] }
 0x70b   :  { %v3053_v28 = vmul.f32 -1.442695, %v2162_v5  ;;  %v2119_v29 = vpop.f32.mrb[59].mxu0  ;;  %v2160_v57 = vpop.f32.mrb[59].mxu1  ;;  %v3055_v37 = vmul.f32 -1.442695, %v2164_v17 }
 0x70c   :  { %v3054_v33 = vmul.f32 -1.442695, %v2163_v0  ;;  %v6501_v17 = vld [vmem:[#allocation34_spill] sm:$0xff]  ;;  %v6506_v4 = vld [vmem:[#allocation87_spill] sm:$0xff]  ;;  %v6508_v43 = vld [vmem:[#allocation37_spill] sm:$0xff] }
 0x70d   :  { %3441 = vpow2.f32 %v3053_v28  ;;  %v6505_v0 = vld [vmem:[#allocation86_spill] sm:$0xff]  ;;  %v5376_v28 = vld [vmem:[#allocation9 + $0xc] ss:$16 sps:$4 sm:$0xff]   ;;  %v5382_v57 = vld [vmem:[#allocation9 + $0x8] ss:$16 sps:$4 sm:$0xff]  }
 0x70e   :  { %3443 = vpow2.f32 %v3054_v33  ;;  %v5373_v25 = vld [vmem:[#allocation9 + $0x4] ss:$16 sps:$4 sm:$0xff]   ;;  %v5379_v29 = vld [vmem:[#allocation9] ss:$16 sps:$4 sm:$0xff]  }
 0x70f   :  { %3445 = vtanh.f32 %v2165_v15  ;;  %v6507_v15 = vld [vmem:[#allocation36_spill] sm:$0xff] }
 0x710   :  { %3447 = vpow2.f32 %v3055_v37  ;;  %v5385_v33 = vld [vmem:[#allocation9 + $0x24] ss:$16 sps:$4 sm:$0xff]   ;;  %v5394_v37 = vld [vmem:[#allocation9 + $0x28] ss:$16 sps:$4 sm:$0xff]  }
 0x714   :  { %v3440_v36 = vpop.eup %3439 }
 0x715   :  { %v2074_v42 = vmul.f32 %v3440_v36, %v3438_v34  ;;  %v5388_v34 = vld [vmem:[#allocation9 + $0x2c] ss:$16 sps:$4 sm:$0xff]   ;;  %v5391_v36 = vld [vmem:[#allocation9 + $0x20] ss:$16 sps:$4 sm:$0xff]  }
 0x717   :  { %v3442_v45 = vpop.eup %3441  ;;  %v2191_v46 = vpack.c.bf16 %v2074_v42, %v2074_v42  ;;  %v5397_v42 = vld [vmem:[#allocation9 + $0x44] ss:$16 sps:$4 sm:$0xff]  }
 0x718   :  { %v2175_v63 = vadd.f32 1.0, %v3442_v45  ;;  %v3444_v47 = vpop.eup %3443  ;;  %v5400_v45 = vld [vmem:[#allocation9 + $0x4c] ss:$16 sps:$4 sm:$0xff]  }
 0x719   :  { %v2176_v49 = vadd.f32 1.0, %v3444_v47  ;;  %2224 = vmatprep.mubr.bf16.mxu0 %v2191_v46  ;;  %2265 = vmatprep.mubr.bf16.mxu1 %v2191_v46  ;;  %v3446_v6 = vpop.eup %3445  ;;  %v5406_v46 = vld [vmem:[#allocation9 + $0x48] ss:$16 sps:$4 sm:$0xff]   ;;  %v5409_v47 = vld [vmem:[#allocation9 + $0x64] ss:$16 sps:$4 sm:$0xff]  }
 0x71a   :  { %3449 = vrcp.f32 %v2175_v63  ;;  %v3448_v51 = vpop.eup %3447  ;;  %v5403_v63 = vld [vmem:[#allocation9 + $0x40] ss:$16 sps:$4 sm:$0xff]   ;;  %6510 = vst [vmem:[#allocation39_spill] sm:$0xff] %v5406_v46  ;;  %6511 = vst [vmem:[#allocation40_spill] sm:$0xff] %v5409_v47 }
 0x71b   :  { %3451 = vrcp.f32 %v2176_v49  ;;  %v2177_v3 = vadd.f32 1.0, %v3448_v51  ;;  %6509 = vst [vmem:[#allocation38_spill] sm:$0xff] %v5403_v63  ;;  %v5412_v49 = vld [vmem:[#allocation9 + $0x6c] ss:$16 sps:$4 sm:$0xff]   ;;  %v5418_v51 = vld [vmem:[#allocation9 + $0x68] ss:$16 sps:$4 sm:$0xff]  }
 0x71c   :  { %6512 = vst [vmem:[#allocation41_spill] sm:$0xff] %v5412_v49  ;;  %6514 = vst [vmem:[#allocation43_spill] sm:$0xff] %v5418_v51 }
 0x71d   :  { %3453 = vrcp.f32 %v2177_v3  ;;  %v5430_v3 = vld [vmem:[#allocation9 + $0x88] ss:$16 sps:$4 sm:$0xff]  }
 0x71e   :  { %6518 = vst [vmem:[#allocation47_spill] sm:$0xff] %v5430_v3 }
 0x724   :  { %v3450_v53 = vpop.eup %3449 }
 0x725   :  { %v2186_v60 = vmul.f32 %v3450_v53, %v3446_v6  ;;  %v3452_v2 = vpop.eup %3451  ;;  %v5415_v6 = vld [vmem:[#allocation9 + $0x60] ss:$16 sps:$4 sm:$0xff]   ;;  %v5421_v53 = vld [vmem:[#allocation9 + $0x84] ss:$16 sps:$4 sm:$0xff]  }
 0x726   :  { %v2185_v7 = vmul.f32 %v3452_v2, %v5158_v54  ;;  %v6499_v54 = vld [vmem:[#allocation32_spill] sm:$0xff]  ;;  %6513 = vst [vmem:[#allocation42_spill] sm:$0xff] %v5415_v6  ;;  %6515 = vst [vmem:[#allocation44_spill] sm:$0xff] %v5421_v53 }
 0x727   :  { %v3454_v39 = vpop.eup %3453  ;;  %v5427_v2 = vld [vmem:[#allocation9 + $0x80] ss:$16 sps:$4 sm:$0xff]  }
 0x728   :  { %v5338_v31 = vadd.f32 %v2186_v60, %v2185_v7  ;;  %v5424_v60 = vld [vmem:[#allocation9 + $0x8c] ss:$16 sps:$4 sm:$0xff]   ;;  %6517 = vst [vmem:[#allocation46_spill] sm:$0xff] %v5427_v2  ;;  %v5433_v7 = vld [vmem:[#allocation9 + $0xa4] ss:$16 sps:$4 sm:$0xff]  }
 0x729   :  { %6516 = vst [vmem:[#allocation45_spill] sm:$0xff] %v5424_v60  ;;  %6519 = vst [vmem:[#allocation48_spill] sm:$0xff] %v5433_v7 }
 0x72a   :  { %3455 = vtanh.f32 %v5338_v31 }
 0x734   :  { %v3456_v9 = vpop.eup %3455 }
 0x735   :  { %v2189_v8 = vmul.f32 %v3456_v9, %v3454_v39  ;;  %v5436_v39 = vld [vmem:[#allocation9 + $0xac] ss:$16 sps:$4 sm:$0xff]   ;;  %v5439_v9 = vld [vmem:[#allocation9 + $0xa0] ss:$16 sps:$4 sm:$0xff]  }
 0x736   :  { %6520 = vst [vmem:[#allocation49_spill] sm:$0xff] %v5436_v39  ;;  %6521 = vst [vmem:[#allocation50_spill] sm:$0xff] %v5439_v9 }
 0x737   :  { %v2190_v5 = vpack.c.bf16 %v2189_v8, %v2189_v8  ;;  %v5442_v8 = vld [vmem:[#allocation9 + $0xa8] ss:$16 sps:$4 sm:$0xff]  }
 0x738   :  { %6522 = vst [vmem:[#allocation75_spill] sm:$0xff] %v5442_v8 }
 0x739   :  { %2225 = vmatmul.mubr.bf16.vlgmr.msra.gmra.mrb[60].mxu0 %v2190_v5  ;;  %2266 = vmatmul.mubr.bf16.vlgmr.msra.gmra.mrb[60].mxu1 %v2190_v5 }
 0x73a   :  { %2304 = vmatpush1.bf16.msra.mxu0 %v5165_v35  ;;  %2345 = vmatpush1.bf16.msra.mxu1 %v5168_v30 }
 0x73b   :  { %2305 = vmatprep.subr.bf16.mxu0 %v5171_v14  ;;  %2346 = vmatprep.subr.bf16.mxu1 %v5174_v10 }
 0x73c   :  { %2335 = vmatprep.mubr.bf16.mxu0 %v6208_v19  ;;  %2376 = vmatprep.mubr.bf16.mxu1 %v6208_v19 }
 0x73e   :  { %2306 = vmatpush1.bf16.msra.mxu0 %v5179_v21  ;;  %2347 = vmatpush1.bf16.msra.mxu1 %v5182_v23 }
 0x73f   :  { %2307 = vmatprep.subr.bf16.mxu0 %v5185_v32  ;;  %2348 = vmatprep.subr.bf16.mxu1 %v5188_v59 }
 0x742   :  { %2308 = vmatpush1.bf16.msra.mxu0 %v5191_v56  ;;  %2349 = vmatpush1.bf16.msra.mxu1 %v5194_v22 }
 0x743   :  { %2309 = vmatprep.subr.bf16.mxu0 %v5197_v52  ;;  %2350 = vmatprep.subr.bf16.mxu1 %v5200_v13 }
 0x746   :  { %2310 = vmatpush1.bf16.msra.mxu0 %v5203_v40  ;;  %2351 = vmatpush1.bf16.msra.mxu1 %v5206_v41 }
 0x747   :  { %2311 = vmatprep.subr.bf16.mxu0 %v6499_v54  ;;  %2352 = vmatprep.subr.bf16.mxu1 %v6500_v38 }
 0x74a   :  { %2312 = vmatpush1.bf16.msra.mxu0 %v6501_v17  ;;  %2353 = vmatpush1.bf16.msra.mxu1 %v6502_v26 }
 0x74b   :  { %2313 = vmatprep.subr.bf16.mxu0 %v6503_v16  ;;  %2354 = vmatprep.subr.bf16.mxu1 %v6504_v50 }
 0x74e   :  { %2314 = vmatpush1.bf16.msra.mxu0 %v6505_v0  ;;  %2355 = vmatpush1.bf16.msra.mxu1 %v6506_v4 }
 0x74f   :  { %2315 = vmatprep.subr.bf16.mxu0 %v6507_v15  ;;  %2356 = vmatprep.subr.bf16.mxu1 %v6508_v43 }
 0x752   :  { %2316 = vmatpush1.bf16.msra.mxu0 %v5239_v55  ;;  %2357 = vmatpush1.bf16.msra.mxu1 %v5242_v11 }
 0x753   :  { %2317 = vmatprep.subr.bf16.mxu0 %v5245_v12  ;;  %2358 = vmatprep.subr.bf16.mxu1 %v5248_v18 }
 0x756   :  { %2318 = vmatpush1.bf16.msra.mxu0 %v5251_v20  ;;  %2359 = vmatpush1.bf16.msra.mxu1 %v5254_v61 }
 0x757   :  { %2415 = vmatprep.subr.bf16.mxu0 %v5373_v25  ;;  %2456 = vmatprep.subr.bf16.mxu1 %v5376_v28 }
 0x759   :  { %2336 = vmatmul.mubr.bf16.vlgmr.msra.gmra.mrb[64].mxu0 %v2190_v5  ;;  %2377 = vmatmul.mubr.bf16.vlgmr.msra.gmra.mrb[64].mxu1 %v2190_v5  ;;  %v5445_v5 = vld [vmem:[#allocation9 + $0xc4] ss:$16 sps:$4 sm:$0xff]  }
 0x75a   :  { %2416 = vmatpush1.bf16.msra.mxu0 %v5379_v29  ;;  %2457 = vmatpush1.bf16.msra.mxu1 %v5382_v57  ;;  %6523 = vst [vmem:[#allocation76_spill] sm:$0xff] %v5445_v5 }
 0x75b   :  { %2417 = vmatprep.subr.bf16.mxu0 %v5385_v33  ;;  %2458 = vmatprep.subr.bf16.mxu1 %v5388_v34 }
 0x75e   :  { %2418 = vmatpush1.bf16.msra.mxu0 %v5391_v36  ;;  %2459 = vmatpush1.bf16.msra.mxu1 %v5394_v37 }
 0x75f   :  { %2419 = vmatprep.subr.bf16.mxu0 %v5397_v42  ;;  %2460 = vmatprep.subr.bf16.mxu1 %v5400_v45 }
 0x762   :  { %2420 = vmatpush1.bf16.msra.mxu0 %v5403_v63  ;;  %2461 = vmatpush1.bf16.msra.mxu1 %v5406_v46 }
 0x763   :  { %2421 = vmatprep.subr.bf16.mxu0 %v5409_v47  ;;  %2462 = vmatprep.subr.bf16.mxu1 %v5412_v49 }
 0x766   :  { %2422 = vmatpush1.bf16.msra.mxu0 %v5415_v6  ;;  %2463 = vmatpush1.bf16.msra.mxu1 %v5418_v51 }
 0x767   :  { %2423 = vmatprep.subr.bf16.mxu0 %v5421_v53  ;;  %2464 = vmatprep.subr.bf16.mxu1 %v5424_v60 }
 0x76a   :  { %2424 = vmatpush1.bf16.msra.mxu0 %v5427_v2  ;;  %2465 = vmatpush1.bf16.msra.mxu1 %v5430_v3  ;;  %v5448_v3 = vld [vmem:[#allocation9 + $0xcc] ss:$16 sps:$4 sm:$0xff]  }
 0x76b   :  { %2425 = vmatprep.subr.bf16.mxu0 %v5433_v7  ;;  %2466 = vmatprep.subr.bf16.mxu1 %v5436_v39  ;;  %6524 = vst [vmem:[#allocation77_spill] sm:$0xff] %v5448_v3  ;;  %v5451_v7 = vld [vmem:[#allocation9 + $0xc0] ss:$16 sps:$4 sm:$0xff]   ;;  %v5454_v39 = vld [vmem:[#allocation9 + $0xc8] ss:$16 sps:$4 sm:$0xff]  }
 0x76c   :  { %6525 = vst [vmem:[#allocation78_spill] sm:$0xff] %v5451_v7  ;;  %6526 = vst [vmem:[#allocation79_spill] sm:$0xff] %v5454_v39 }
 0x76e   :  { %2426 = vmatpush1.bf16.msra.mxu0 %v5439_v9  ;;  %2467 = vmatpush1.bf16.msra.mxu1 %v5442_v8  ;;  %v5457_v9 = vld [vmem:[#allocation9 + $0xe4] ss:$16 sps:$4 sm:$0xff]   ;;  %v5460_v8 = vld [vmem:[#allocation9 + $0xec] ss:$16 sps:$4 sm:$0xff]  }
 0x76f   :  { %2427 = vmatprep.subr.bf16.mxu0 %v5445_v5  ;;  %2468 = vmatprep.subr.bf16.mxu1 %v5448_v3  ;;  %6527 = vst [vmem:[#allocation51_spill] sm:$0xff] %v5457_v9  ;;  %6528 = vst [vmem:[#allocation52_spill] sm:$0xff] %v5460_v8  ;;  %v5463_v5 = vld [vmem:[#allocation9 + $0xe0] ss:$16 sps:$4 sm:$0xff]   ;;  %v5466_v3 = vld [vmem:[#allocation9 + $0xe8] ss:$16 sps:$4 sm:$0xff]  }
 0x770   :  { %6529 = vst [vmem:[#allocation53_spill] sm:$0xff] %v5463_v5  ;;  %6530 = vst [vmem:[#allocation54_spill] sm:$0xff] %v5466_v3 }
 0x772   :  { %2428 = vmatpush1.bf16.msra.mxu0 %v5451_v7  ;;  %2469 = vmatpush1.bf16.msra.mxu1 %v5454_v39  ;;  %v5469_v7 = vld [vmem:[#allocation9 + $0x104] ss:$16 sps:$4 sm:$0xff]   ;;  %v5472_v39 = vld [vmem:[#allocation9 + $0x10c] ss:$16 sps:$4 sm:$0xff]  }
 0x773   :  { %2429 = vmatprep.subr.bf16.mxu0 %v5457_v9  ;;  %2470 = vmatprep.subr.bf16.mxu1 %v5460_v8  ;;  %6531 = vst [vmem:[#allocation55_spill] sm:$0xff] %v5469_v7  ;;  %6532 = vst [vmem:[#allocation56_spill] sm:$0xff] %v5472_v39  ;;  %v5475_v9 = vld [vmem:[#allocation9 + $0x100] ss:$16 sps:$4 sm:$0xff]   ;;  %v5478_v8 = vld [vmem:[#allocation9 + $0x108] ss:$16 sps:$4 sm:$0xff]  }
 0x774   :  { %6533 = vst [vmem:[#allocation57_spill] sm:$0xff] %v5475_v9  ;;  %6534 = vst [vmem:[#allocation58_spill] sm:$0xff] %v5478_v8 }
 0x776   :  { %2430 = vmatpush1.bf16.msra.mxu0 %v5463_v5  ;;  %2471 = vmatpush1.bf16.msra.mxu1 %v5466_v3  ;;  %v5481_v5 = vld [vmem:[#allocation9 + $0x124] ss:$16 sps:$4 sm:$0xff]   ;;  %v5484_v3 = vld [vmem:[#allocation9 + $0x12c] ss:$16 sps:$4 sm:$0xff]  }
 0x777   :  { %2431 = vmatprep.subr.bf16.mxu0 %v5469_v7  ;;  %2472 = vmatprep.subr.bf16.mxu1 %v5472_v39  ;;  %6535 = vst [vmem:[#allocation59_spill] sm:$0xff] %v5481_v5  ;;  %6536 = vst [vmem:[#allocation60_spill] sm:$0xff] %v5484_v3  ;;  %v5487_v7 = vld [vmem:[#allocation9 + $0x120] ss:$16 sps:$4 sm:$0xff]   ;;  %v5490_v39 = vld [vmem:[#allocation9 + $0x128] ss:$16 sps:$4 sm:$0xff]  }
 0x778   :  { %6537 = vst [vmem:[#allocation88_spill] sm:$0xff] %v5487_v7  ;;  %6538 = vst [vmem:[#allocation89_spill] sm:$0xff] %v5490_v39 }
 0x77a   :  { %2432 = vmatpush1.bf16.msra.mxu0 %v5475_v9  ;;  %2473 = vmatpush1.bf16.msra.mxu1 %v5478_v8  ;;  %v5493_v9 = vld [vmem:[#allocation9 + $0x144] ss:$16 sps:$4 sm:$0xff]   ;;  %v5496_v8 = vld [vmem:[#allocation9 + $0x14c] ss:$16 sps:$4 sm:$0xff]  }
 0x77b   :  { %2433 = vmatprep.subr.bf16.mxu0 %v5481_v5  ;;  %2474 = vmatprep.subr.bf16.mxu1 %v5484_v3  ;;  %6539 = vst [vmem:[#allocation90_spill] sm:$0xff] %v5493_v9  ;;  %6540 = vst [vmem:[#allocation91_spill] sm:$0xff] %v5496_v8  ;;  %v5499_v5 = vld [vmem:[#allocation9 + $0x140] ss:$16 sps:$4 sm:$0xff]   ;;  %v5502_v3 = vld [vmem:[#allocation9 + $0x148] ss:$16 sps:$4 sm:$0xff]  }
 0x77c   :  { %6541 = vst [vmem:[#allocation61_spill] sm:$0xff] %v5499_v5  ;;  %6542 = vst [vmem:[#allocation62_spill] sm:$0xff] %v5502_v3 }
 0x77e   :  { %2434 = vmatpush1.bf16.msra.mxu0 %v5487_v7  ;;  %2475 = vmatpush1.bf16.msra.mxu1 %v5490_v39  ;;  %v5505_v7 = vld [vmem:[#allocation9 + $0x164] ss:$16 sps:$4 sm:$0xff]   ;;  %v5508_v39 = vld [vmem:[#allocation9 + $0x16c] ss:$16 sps:$4 sm:$0xff]  }
 0x77f   :  { %2435 = vmatprep.subr.bf16.mxu0 %v5493_v9  ;;  %2476 = vmatprep.subr.bf16.mxu1 %v5496_v8  ;;  %6543 = vst [vmem:[#allocation63_spill] sm:$0xff] %v5505_v7  ;;  %6544 = vst [vmem:[#allocation64_spill] sm:$0xff] %v5508_v39  ;;  %v5511_v9 = vld [vmem:[#allocation9 + $0x160] ss:$16 sps:$4 sm:$0xff]   ;;  %v5514_v8 = vld [vmem:[#allocation9 + $0x168] ss:$16 sps:$4 sm:$0xff]  }
 0x780   :  { %6545 = vst [vmem:[#allocation65_spill] sm:$0xff] %v5511_v9  ;;  %6546 = vst [vmem:[#allocation66_spill] sm:$0xff] %v5514_v8 }
 0x782   :  { %2436 = vmatpush1.bf16.msra.mxu0 %v5499_v5  ;;  %2477 = vmatpush1.bf16.msra.mxu1 %v5502_v3  ;;  %v5517_v5 = vld [vmem:[#allocation9 + $0x184] ss:$16 sps:$4 sm:$0xff]   ;;  %v5520_v3 = vld [vmem:[#allocation9 + $0x18c] ss:$16 sps:$4 sm:$0xff]  }
 0x783   :  { %2437 = vmatprep.subr.bf16.mxu0 %v5505_v7  ;;  %2478 = vmatprep.subr.bf16.mxu1 %v5508_v39  ;;  %6547 = vst [vmem:[#allocation67_spill] sm:$0xff] %v5517_v5  ;;  %6548 = vst [vmem:[#allocation68_spill] sm:$0xff] %v5520_v3  ;;  %v5523_v7 = vld [vmem:[#allocation9 + $0x180] ss:$16 sps:$4 sm:$0xff]   ;;  %v5526_v39 = vld [vmem:[#allocation9 + $0x188] ss:$16 sps:$4 sm:$0xff]  }
 0x784   :  { %6549 = vst [vmem:[#allocation69_spill] sm:$0xff] %v5523_v7  ;;  %6550 = vst [vmem:[#allocation70_spill] sm:$0xff] %v5526_v39 }
 0x786   :  { %2438 = vmatpush1.bf16.msra.mxu0 %v5511_v9  ;;  %2479 = vmatpush1.bf16.msra.mxu1 %v5514_v8  ;;  %v5529_v9 = vld [vmem:[#allocation9 + $0x1a4] ss:$16 sps:$4 sm:$0xff]   ;;  %v5532_v8 = vld [vmem:[#allocation9 + $0x1ac] ss:$16 sps:$4 sm:$0xff]  }
 0x787   :  { %2439 = vmatprep.subr.bf16.mxu0 %v5517_v5  ;;  %2480 = vmatprep.subr.bf16.mxu1 %v5520_v3  ;;  %6551 = vst [vmem:[#allocation71_spill] sm:$0xff] %v5529_v9  ;;  %6552 = vst [vmem:[#allocation72_spill] sm:$0xff] %v5532_v8  ;;  %v5535_v5 = vld [vmem:[#allocation9 + $0x1a0] ss:$16 sps:$4 sm:$0xff]   ;;  %v5538_v3 = vld [vmem:[#allocation9 + $0x1a8] ss:$16 sps:$4 sm:$0xff]  }
 0x788   :  { %6553 = vst [vmem:[#allocation73_spill] sm:$0xff] %v5535_v5  ;;  %6554 = vst [vmem:[#allocation74_spill] sm:$0xff] %v5538_v3 }
 0x78a   :  { %2440 = vmatpush1.bf16.msra.mxu0 %v5523_v7  ;;  %2481 = vmatpush1.bf16.msra.mxu1 %v5526_v39  ;;  %v5541_v7 = vld [vmem:[#allocation9 + $0x1c4] ss:$16 sps:$4 sm:$0xff]   ;;  %v5544_v39 = vld [vmem:[#allocation9 + $0x1cc] ss:$16 sps:$4 sm:$0xff]  }
 0x78b   :  { %2441 = vmatprep.subr.bf16.mxu0 %v5529_v9  ;;  %2482 = vmatprep.subr.bf16.mxu1 %v5532_v8  ;;  %6555 = vst [vmem:[#allocation20_spill] sm:$0xff] %v5541_v7  ;;  %6556 = vst [vmem:[#allocation21_spill] sm:$0xff] %v5544_v39  ;;  %v5547_v9 = vld [vmem:[#allocation9 + $0x1c0] ss:$16 sps:$4 sm:$0xff]   ;;  %v5550_v8 = vld [vmem:[#allocation9 + $0x1c8] ss:$16 sps:$4 sm:$0xff]  }
 0x78c   :  { %6557 = vst [vmem:[#allocation80_spill] sm:$0xff] %v5547_v9  ;;  %6558 = vst [vmem:[#allocation81_spill] sm:$0xff] %v5550_v8 }
 0x78e   :  { %2442 = vmatpush1.bf16.msra.mxu0 %v5535_v5  ;;  %2483 = vmatpush1.bf16.msra.mxu1 %v5538_v3  ;;  %v5553_v5 = vld [vmem:[#allocation9 + $0x1e4] ss:$16 sps:$4 sm:$0xff]   ;;  %v5556_v3 = vld [vmem:[#allocation9 + $0x1ec] ss:$16 sps:$4 sm:$0xff]  }
 0x78f   :  { %2443 = vmatprep.subr.bf16.mxu0 %v5541_v7  ;;  %2484 = vmatprep.subr.bf16.mxu1 %v5544_v39  ;;  %6559 = vst [vmem:[#allocation82_spill] sm:$0xff] %v5553_v5  ;;  %6560 = vst [vmem:[#allocation83_spill] sm:$0xff] %v5556_v3  ;;  %v5559_v7 = vld [vmem:[#allocation9 + $0x1e0] ss:$16 sps:$4 sm:$0xff]   ;;  %v5562_v39 = vld [vmem:[#allocation9 + $0x1e8] ss:$16 sps:$4 sm:$0xff]  }
 0x790   :  { %6561 = vst [vmem:[#allocation26_spill] sm:$0xff] %v5559_v7  ;;  %6562 = vst [vmem:[#allocation27_spill] sm:$0xff] %v5562_v39 }
 0x792   :  { %2444 = vmatpush1.bf16.msra.mxu0 %v5547_v9  ;;  %2485 = vmatpush1.bf16.msra.mxu1 %v5550_v8 }
 0x793   :  { %2445 = vmatprep.subr.bf16.mxu0 %v5553_v5  ;;  %2486 = vmatprep.subr.bf16.mxu1 %v5556_v3 }
 0x796   :  { %2446 = vmatpush1.bf16.msra.mxu0 %v5559_v7  ;;  %2487 = vmatpush1.bf16.msra.mxu1 %v5562_v39 }
 0x797   :  { %2526 = vmatprep.subr.bf16.mxu0 %v6489_v48  ;;  %2567 = vmatprep.subr.bf16.mxu1 %v6490_v27 }
 0x80c   :  { %v2226_v8 = vpop.f32.mrb[60].mxu0  ;;  %v2267_v9 = vpop.f32.mrb[60].mxu1 }
 0x80d   :  { %v2227_v5 = vadd.f32 %v2226_v8, %v6491_v1  ;;  %v2228_v2 = vpop.f32.mrb[61].mxu0  ;;  %v2269_v60 = vpop.f32.mrb[61].mxu1  ;;  %v2268_v48 = vadd.f32 %v2267_v9, %v6493_v58  ;;  %v6566_v58 = vld [vmem:[#allocation99_spill] sm:$0xff] }
 0x80e   :  { %v2229_v3 = vadd.f32 %v2228_v2, %v6492_v24  ;;  %v2230_v53 = vpop.f32.mrb[62].mxu0  ;;  %v2271_v51 = vpop.f32.mrb[62].mxu1  ;;  %v2270_v27 = vadd.f32 %v2269_v60, %v6494_v44 }
 0x80f   :  { %v3056_v6 = vmul.f32 -1.442695, %v2227_v5  ;;  %v2231_v7 = vpop.f32.mrb[63].mxu0  ;;  %v2272_v49 = vpop.f32.mrb[63].mxu1  ;;  %v3058_v39 = vmul.f32 -1.442695, %v2268_v48 }
 0x810   :  { %v3057_v47 = vmul.f32 -1.442695, %v2229_v3  ;;  %v6563_v48 = vld [vmem:[#allocation96_spill] sm:$0xff] }
 0x811   :  { %3457 = vpow2.f32 %v3056_v6 }
 0x812   :  { %3459 = vpow2.f32 %v3057_v47 }
 0x813   :  { %3461 = vtanh.f32 %v2270_v27  ;;  %v6564_v27 = vld [vmem:[#allocation97_spill] sm:$0xff] }
 0x814   :  { %3463 = vpow2.f32 %v3058_v39 }
 0x81b   :  { %v3458_v46 = vpop.eup %3457 }
 0x81c   :  { %v2283_v63 = vadd.f32 1.0, %v3458_v46  ;;  %v3460_v8 = vpop.eup %3459 }
 0x81d   :  { %v2284_v2 = vadd.f32 1.0, %v3460_v8  ;;  %v3462_v51 = vpop.eup %3461  ;;  %v6565_v8 = vld [vmem:[#allocation98_spill] sm:$0xff] }
 0x81e   :  { %3465 = vrcp.f32 %v2283_v63  ;;  %v3464_v53 = vpop.eup %3463 }
 0x81f   :  { %3467 = vrcp.f32 %v2284_v2  ;;  %v2285_v6 = vadd.f32 1.0, %v3464_v53 }
 0x821   :  { %3469 = vrcp.f32 %v2285_v6 }
 0x828   :  { %v3466_v7 = vpop.eup %3465 }
 0x829   :  { %v2294_v49 = vmul.f32 %v3466_v7, %v3462_v51  ;;  %v3468_v3 = vpop.eup %3467 }
 0x82a   :  { %v2293_v47 = vmul.f32 %v3468_v3, %v5330_v62 }
 0x82b   :  { %v3470_v3 = vpop.eup %3469 }
 0x82c   :  { %v2337_v9 = vpop.f32.mrb[64].mxu0  ;;  %v2378_v5 = vpop.f32.mrb[64].mxu1  ;;  %v5572_v60 = vadd.f32 %v2294_v49, %v2293_v47 }
 0x82d   :  { %v2385_v46 = vadd.f32 %v2337_v9, %v6563_v48  ;;  %v2387_v44 = vadd.f32 %v2378_v5, %v6564_v27  ;;  %v2339_v39 = vpop.f32.mrb[65].mxu0  ;;  %v2380_v63 = vpop.f32.mrb[65].mxu1 }
 0x82e   :  { %v2386_v2 = vadd.f32 %v2339_v39, %v6565_v8  ;;  %v2388_v24 = vadd.f32 %v2380_v63, %v6566_v58  ;;  %v2341_v51 = vpop.f32.mrb[66].mxu0  ;;  %v2382_v7 = vpop.f32.mrb[66].mxu1  ;;  %3471 = vtanh.f32 %v5572_v60 }
 0x82f   :  { %v3059_v53 = vmul.f32 -1.442695, %v2385_v46  ;;  %v2342_v1 = vpop.f32.mrb[67].mxu0  ;;  %v2383_v62 = vpop.f32.mrb[67].mxu1  ;;  %v3061_v9 = vmul.f32 -1.442695, %v2387_v44 }
 0x830   :  { %v3060_v49 = vmul.f32 -1.442695, %v2386_v2 }
 0x831   :  { %3473 = vpow2.f32 %v3059_v53 }
 0x832   :  { %3475 = vpow2.f32 %v3060_v49 }
 0x833   :  { %3477 = vtanh.f32 %v2388_v24 }
 0x834   :  { %3479 = vpow2.f32 %v3061_v9  ;;  %v6611_v9 = vld [vmem:[#allocation73_spill] sm:$0xff] }
 0x838   :  { %v3472_v47 = vpop.eup %3471 }
 0x839   :  { %v2297_v5 = vmul.f32 %v3472_v47, %v3470_v3  ;;  %v6609_v3 = vld [vmem:[#allocation71_spill] sm:$0xff]  ;;  %v6610_v47 = vld [vmem:[#allocation72_spill] sm:$0xff] }
 0x83b   :  { %v3474_v48 = vpop.eup %3473  ;;  %v2414_v27 = vpack.c.bf16 %v2297_v5, %v2297_v5  ;;  %v6612_v5 = vld [vmem:[#allocation74_spill] sm:$0xff] }
 0x83c   :  { %v2398_v6 = vadd.f32 1.0, %v3474_v48  ;;  %v3476_v39 = vpop.eup %3475  ;;  %v6613_v48 = vld [vmem:[#allocation20_spill] sm:$0xff] }
 0x83d   :  { %v2399_v58 = vadd.f32 1.0, %v3476_v39  ;;  %2447 = vmatprep.mubr.bf16.mxu0 %v2414_v27  ;;  %2488 = vmatprep.mubr.bf16.mxu1 %v2414_v27  ;;  %v3478_v1 = vpop.eup %3477  ;;  %v6615_v27 = vld [vmem:[#allocation80_spill] sm:$0xff]  ;;  %v6616_v39 = vld [vmem:[#allocation81_spill] sm:$0xff] }
 0x83e   :  { %3481 = vrcp.f32 %v2398_v6  ;;  %v3480_v46 = vpop.eup %3479  ;;  %v6614_v6 = vld [vmem:[#allocation21_spill] sm:$0xff] }
 0x83f   :  { %3483 = vrcp.f32 %v2399_v58  ;;  %v2400_v51 = vadd.f32 1.0, %v3480_v46  ;;  %v6617_v58 = vld [vmem:[#allocation82_spill] sm:$0xff] }
 0x840   :  { %v6619_v46 = vld [vmem:[#allocation26_spill] sm:$0xff] }
 0x841   :  { %3485 = vrcp.f32 %v2400_v51  ;;  %v6621_v51 = vld [vmem:[#allocation22_spill] sm:$0xff] }
 0x848   :  { %v3482_v63 = vpop.eup %3481 }
 0x849   :  { %v2409_v8 = vmul.f32 %v3482_v63, %v3478_v1  ;;  %v3484_v2 = vpop.eup %3483  ;;  %v6618_v1 = vld [vmem:[#allocation83_spill] sm:$0xff] }
 0x84a   :  { %v2408_v44 = vmul.f32 %v3484_v2, %v5338_v31  ;;  %v6588_v31 = vld [vmem:[#allocation54_spill] sm:$0xff]  ;;  %v6620_v63 = vld [vmem:[#allocation27_spill] sm:$0xff] }
 0x84b   :  { %v3486_v24 = vpop.eup %3485 }
 0x84c   :  { %v5580_v7 = vadd.f32 %v2409_v8, %v2408_v44 }
 0x84e   :  { %3487 = vtanh.f32 %v5580_v7 }
 0x858   :  { %v3488_v53 = vpop.eup %3487 }
 0x859   :  { %v2412_v62 = vmul.f32 %v3488_v53, %v3486_v24 }
 0x85b   :  { %v2413_v49 = vpack.c.bf16 %v2412_v62, %v2412_v62  ;;  %v6622_v62 = vld [vmem:[#allocation23_spill] sm:$0xff] }
 0x85d   :  { %2448 = vmatmul.mubr.bf16.vlgmr.msra.gmra.mrb[68].mxu0 %v2413_v49  ;;  %2489 = vmatmul.mubr.bf16.vlgmr.msra.gmra.mrb[68].mxu1 %v2413_v49 }
 0x85e   :  { %2527 = vmatpush1.bf16.msra.mxu0 %v5165_v35  ;;  %2568 = vmatpush1.bf16.msra.mxu1 %v5168_v30  ;;  %v6568_v35 = vld [vmem:[#allocation39_spill] sm:$0xff]  ;;  %v6569_v30 = vld [vmem:[#allocation40_spill] sm:$0xff] }
 0x85f   :  { %2528 = vmatprep.subr.bf16.mxu0 %v5171_v14  ;;  %2569 = vmatprep.subr.bf16.mxu1 %v5174_v10  ;;  %v6570_v14 = vld [vmem:[#allocation41_spill] sm:$0xff]  ;;  %v6571_v10 = vld [vmem:[#allocation42_spill] sm:$0xff] }
 0x860   :  { %2558 = vmatprep.mubr.bf16.mxu0 %v6208_v19  ;;  %2599 = vmatprep.mubr.bf16.mxu1 %v6208_v19  ;;  %v6567_v19 = vld [vmem:[#allocation38_spill] sm:$0xff] }
 0x862   :  { %2529 = vmatpush1.bf16.msra.mxu0 %v5179_v21  ;;  %2570 = vmatpush1.bf16.msra.mxu1 %v5182_v23  ;;  %v6572_v21 = vld [vmem:[#allocation43_spill] sm:$0xff]  ;;  %v6573_v23 = vld [vmem:[#allocation44_spill] sm:$0xff] }
 0x863   :  { %2530 = vmatprep.subr.bf16.mxu0 %v5185_v32  ;;  %2571 = vmatprep.subr.bf16.mxu1 %v5188_v59  ;;  %v6574_v32 = vld [vmem:[#allocation45_spill] sm:$0xff]  ;;  %v6575_v59 = vld [vmem:[#allocation46_spill] sm:$0xff] }
 0x866   :  { %2531 = vmatpush1.bf16.msra.mxu0 %v5191_v56  ;;  %2572 = vmatpush1.bf16.msra.mxu1 %v5194_v22  ;;  %v6576_v56 = vld [vmem:[#allocation47_spill] sm:$0xff]  ;;  %v6577_v22 = vld [vmem:[#allocation48_spill] sm:$0xff] }
 0x867   :  { %2532 = vmatprep.subr.bf16.mxu0 %v5197_v52  ;;  %2573 = vmatprep.subr.bf16.mxu1 %v5200_v13  ;;  %v6578_v52 = vld [vmem:[#allocation49_spill] sm:$0xff]  ;;  %v6579_v13 = vld [vmem:[#allocation50_spill] sm:$0xff] }
 0x86a   :  { %2533 = vmatpush1.bf16.msra.mxu0 %v5203_v40  ;;  %2574 = vmatpush1.bf16.msra.mxu1 %v5206_v41  ;;  %v6580_v40 = vld [vmem:[#allocation75_spill] sm:$0xff]  ;;  %v6581_v41 = vld [vmem:[#allocation76_spill] sm:$0xff] }
 0x86b   :  { %2534 = vmatprep.subr.bf16.mxu0 %v6499_v54  ;;  %2575 = vmatprep.subr.bf16.mxu1 %v6500_v38  ;;  %v6589_v54 = vld [vmem:[#allocation55_spill] sm:$0xff]  ;;  %v6590_v38 = vld [vmem:[#allocation56_spill] sm:$0xff] }
 0x86e   :  { %2535 = vmatpush1.bf16.msra.mxu0 %v6501_v17  ;;  %2576 = vmatpush1.bf16.msra.mxu1 %v6502_v26  ;;  %v6591_v17 = vld [vmem:[#allocation57_spill] sm:$0xff]  ;;  %v6592_v26 = vld [vmem:[#allocation58_spill] sm:$0xff] }
 0x86f   :  { %2536 = vmatprep.subr.bf16.mxu0 %v6503_v16  ;;  %2577 = vmatprep.subr.bf16.mxu1 %v6504_v50  ;;  %v6593_v16 = vld [vmem:[#allocation59_spill] sm:$0xff]  ;;  %v6594_v50 = vld [vmem:[#allocation60_spill] sm:$0xff] }
 0x872   :  { %2537 = vmatpush1.bf16.msra.mxu0 %v6505_v0  ;;  %2578 = vmatpush1.bf16.msra.mxu1 %v6506_v4  ;;  %v6595_v0 = vld [vmem:[#allocation88_spill] sm:$0xff]  ;;  %v6596_v4 = vld [vmem:[#allocation89_spill] sm:$0xff] }
 0x873   :  { %2538 = vmatprep.subr.bf16.mxu0 %v6507_v15  ;;  %2579 = vmatprep.subr.bf16.mxu1 %v6508_v43  ;;  %v6597_v15 = vld [vmem:[#allocation90_spill] sm:$0xff]  ;;  %v6598_v43 = vld [vmem:[#allocation91_spill] sm:$0xff] }
 0x876   :  { %2539 = vmatpush1.bf16.msra.mxu0 %v5239_v55  ;;  %2580 = vmatpush1.bf16.msra.mxu1 %v5242_v11  ;;  %v6586_v55 = vld [vmem:[#allocation52_spill] sm:$0xff]  ;;  %v6587_v11 = vld [vmem:[#allocation53_spill] sm:$0xff] }
 0x877   :  { %2540 = vmatprep.subr.bf16.mxu0 %v5245_v12  ;;  %2581 = vmatprep.subr.bf16.mxu1 %v5248_v18  ;;  %v6582_v12 = vld [vmem:[#allocation77_spill] sm:$0xff]  ;;  %v6583_v18 = vld [vmem:[#allocation78_spill] sm:$0xff] }
 0x87a   :  { %2541 = vmatpush1.bf16.msra.mxu0 %v5251_v20  ;;  %2582 = vmatpush1.bf16.msra.mxu1 %v5254_v61  ;;  %v6584_v20 = vld [vmem:[#allocation79_spill] sm:$0xff] }
 0x87b   :  { %2638 = vmatprep.subr.bf16.mxu0 %v5373_v25  ;;  %2679 = vmatprep.subr.bf16.mxu1 %v5376_v28  ;;  %v6585_v61 = vld [vmem:[#allocation51_spill] sm:$0xff]  ;;  %v6599_v25 = vld [vmem:[#allocation61_spill] sm:$0xff]  ;;  %v6600_v28 = vld [vmem:[#allocation62_spill] sm:$0xff] }
 0x87d   :  { %2559 = vmatmul.mubr.bf16.vlgmr.msra.gmra.mrb[72].mxu0 %v2413_v49  ;;  %2600 = vmatmul.mubr.bf16.vlgmr.msra.gmra.mrb[72].mxu1 %v2413_v49 }
 0x87e   :  { %2639 = vmatpush1.bf16.msra.mxu0 %v5379_v29  ;;  %2680 = vmatpush1.bf16.msra.mxu1 %v5382_v57  ;;  %v6601_v29 = vld [vmem:[#allocation63_spill] sm:$0xff]  ;;  %v6602_v57 = vld [vmem:[#allocation64_spill] sm:$0xff] }
 0x87f   :  { %2640 = vmatprep.subr.bf16.mxu0 %v5385_v33  ;;  %2681 = vmatprep.subr.bf16.mxu1 %v5388_v34  ;;  %v6603_v33 = vld [vmem:[#allocation65_spill] sm:$0xff]  ;;  %v6604_v34 = vld [vmem:[#allocation66_spill] sm:$0xff] }
 0x882   :  { %2641 = vmatpush1.bf16.msra.mxu0 %v5391_v36  ;;  %2682 = vmatpush1.bf16.msra.mxu1 %v5394_v37  ;;  %v6605_v36 = vld [vmem:[#allocation67_spill] sm:$0xff]  ;;  %v6606_v37 = vld [vmem:[#allocation68_spill] sm:$0xff] }
 0x883   :  { %2642 = vmatprep.subr.bf16.mxu0 %v5397_v42  ;;  %2683 = vmatprep.subr.bf16.mxu1 %v5400_v45  ;;  %v6607_v42 = vld [vmem:[#allocation69_spill] sm:$0xff]  ;;  %v6608_v45 = vld [vmem:[#allocation70_spill] sm:$0xff] }
 0x886   :  { %2643 = vmatpush1.bf16.msra.mxu0 %v6567_v19  ;;  %2684 = vmatpush1.bf16.msra.mxu1 %v6568_v35 }
 0x887   :  { %2644 = vmatprep.subr.bf16.mxu0 %v6569_v30  ;;  %2685 = vmatprep.subr.bf16.mxu1 %v6570_v14 }
 0x88a   :  { %2645 = vmatpush1.bf16.msra.mxu0 %v6571_v10  ;;  %2686 = vmatpush1.bf16.msra.mxu1 %v6572_v21 }
 0x88b   :  { %2646 = vmatprep.subr.bf16.mxu0 %v6573_v23  ;;  %2687 = vmatprep.subr.bf16.mxu1 %v6574_v32  ;;  %v6623_v23 = vld [vmem:[#allocation24_spill] sm:$0xff] }
 0x88e   :  { %2647 = vmatpush1.bf16.msra.mxu0 %v6575_v59  ;;  %2688 = vmatpush1.bf16.msra.mxu1 %v6576_v56  ;;  %v6624_v59 = vld [vmem:[#allocation25_spill] sm:$0xff] }
 0x88f   :  { %2648 = vmatprep.subr.bf16.mxu0 %v6577_v22  ;;  %2689 = vmatprep.subr.bf16.mxu1 %v6578_v52 }
 0x892   :  { %2649 = vmatpush1.bf16.msra.mxu0 %v6579_v13  ;;  %2690 = vmatpush1.bf16.msra.mxu1 %v6580_v40 }
 0x893   :  { %2650 = vmatprep.subr.bf16.mxu0 %v6581_v41  ;;  %2691 = vmatprep.subr.bf16.mxu1 %v6582_v12 }
 0x896   :  { %2651 = vmatpush1.bf16.msra.mxu0 %v6583_v18  ;;  %2692 = vmatpush1.bf16.msra.mxu1 %v6584_v20 }
 0x897   :  { %2652 = vmatprep.subr.bf16.mxu0 %v6585_v61  ;;  %2693 = vmatprep.subr.bf16.mxu1 %v6586_v55 }
 0x89a   :  { %2653 = vmatpush1.bf16.msra.mxu0 %v6587_v11  ;;  %2694 = vmatpush1.bf16.msra.mxu1 %v6588_v31 }
 0x89b   :  { %2654 = vmatprep.subr.bf16.mxu0 %v6589_v54  ;;  %2695 = vmatprep.subr.bf16.mxu1 %v6590_v38 }
 0x89e   :  { %2655 = vmatpush1.bf16.msra.mxu0 %v6591_v17  ;;  %2696 = vmatpush1.bf16.msra.mxu1 %v6592_v26  ;;  %v6625_v26 = vld [vmem:[#allocation100_spill] sm:$0xff] }
 0x89f   :  { %2656 = vmatprep.subr.bf16.mxu0 %v6593_v16  ;;  %2697 = vmatprep.subr.bf16.mxu1 %v6594_v50  ;;  %v6626_v50 = vld [vmem:[#allocation101_spill] sm:$0xff] }
 0x8a2   :  { %2657 = vmatpush1.bf16.msra.mxu0 %v6595_v0  ;;  %2698 = vmatpush1.bf16.msra.mxu1 %v6596_v4 }
 0x8a3   :  { %2658 = vmatprep.subr.bf16.mxu0 %v6597_v15  ;;  %2699 = vmatprep.subr.bf16.mxu1 %v6598_v43  ;;  %v6627_v43 = vld [vmem:[#allocation102_spill] sm:$0xff] }
 0x8a6   :  { %2659 = vmatpush1.bf16.msra.mxu0 %v6599_v25  ;;  %2700 = vmatpush1.bf16.msra.mxu1 %v6600_v28  ;;  %v6628_v28 = vld [vmem:[#allocation103_spill] sm:$0xff] }
 0x8a7   :  { %2660 = vmatprep.subr.bf16.mxu0 %v6601_v29  ;;  %2701 = vmatprep.subr.bf16.mxu1 %v6602_v57 }
 0x8aa   :  { %2661 = vmatpush1.bf16.msra.mxu0 %v6603_v33  ;;  %2702 = vmatpush1.bf16.msra.mxu1 %v6604_v34 }
 0x8ab   :  { %2662 = vmatprep.subr.bf16.mxu0 %v6605_v36  ;;  %2703 = vmatprep.subr.bf16.mxu1 %v6606_v37 }
 0x8ae   :  { %2663 = vmatpush1.bf16.msra.mxu0 %v6607_v42  ;;  %2704 = vmatpush1.bf16.msra.mxu1 %v6608_v45 }
 0x8af   :  { %2664 = vmatprep.subr.bf16.mxu0 %v6609_v3  ;;  %2705 = vmatprep.subr.bf16.mxu1 %v6610_v47 }
 0x8b2   :  { %2665 = vmatpush1.bf16.msra.mxu0 %v6611_v9  ;;  %2706 = vmatpush1.bf16.msra.mxu1 %v6612_v5 }
 0x8b3   :  { %2666 = vmatprep.subr.bf16.mxu0 %v6613_v48  ;;  %2707 = vmatprep.subr.bf16.mxu1 %v6614_v6 }
 0x8b6   :  { %2667 = vmatpush1.bf16.msra.mxu0 %v6615_v27  ;;  %2708 = vmatpush1.bf16.msra.mxu1 %v6616_v39 }
 0x8b7   :  { %2668 = vmatprep.subr.bf16.mxu0 %v6617_v58  ;;  %2709 = vmatprep.subr.bf16.mxu1 %v6618_v1 }
 0x8ba   :  { %2669 = vmatpush1.bf16.msra.mxu0 %v6619_v46  ;;  %2710 = vmatpush1.bf16.msra.mxu1 %v6620_v63 }
 0x930   :  { %v2449_v8 = vpop.f32.mrb[68].mxu0  ;;  %v2490_v2 = vpop.f32.mrb[68].mxu1 }
 0x931   :  { %v2450_v44 = vadd.f32 %v2449_v8, %v6621_v51  ;;  %v2451_v24 = vpop.f32.mrb[69].mxu0  ;;  %v2492_v53 = vpop.f32.mrb[69].mxu1  ;;  %v2491_v32 = vadd.f32 %v2490_v2, %v6623_v23 }
 0x932   :  { %v2452_v49 = vadd.f32 %v2451_v24, %v6622_v62  ;;  %v2453_v19 = vpop.f32.mrb[70].mxu0  ;;  %v2494_v35 = vpop.f32.mrb[70].mxu1  ;;  %v2493_v56 = vadd.f32 %v2492_v53, %v6624_v59 }
 0x933   :  { %v3062_v30 = vmul.f32 -1.442695, %v2450_v44  ;;  %v2454_v14 = vpop.f32.mrb[71].mxu0  ;;  %v2495_v10 = vpop.f32.mrb[71].mxu1  ;;  %v3064_v22 = vmul.f32 -1.442695, %v2491_v32 }
 0x934   :  { %v3063_v21 = vmul.f32 -1.442695, %v2452_v49  ;;  %v3273_v35 = vld [vmem:[%s5775_s8] sm:$0xff]   ;;  %v3275_v14 = vld [vmem:[%s5775_s8 + $0x10] sm:$0xff]   ;;  %v3276_v10 = vld [vmem:[%s5775_s8 + $0x18] sm:$0xff]  }
 0x935   :  { %3489 = vpow2.f32 %v3062_v30  ;;  %v3907_v30 = vmov 0.0   ;;  %v3278_v32 = vld [vmem:[%s5775_s8 + $0x28] sm:$0xff]  }
 0x936   :  { %3491 = vpow2.f32 %v3063_v21  ;;  %3089 = vmatprep.subr.bf16.mxu0 %v3907_v30  ;;  %v3277_v21 = vld [vmem:[%s5775_s8 + $0x20] sm:$0xff]  }
 0x937   :  { %3493 = vtanh.f32 %v2493_v56  ;;  %v3279_v56 = vld [vmem:[%s5775_s8 + $0x30] sm:$0xff]  }
 0x938   :  { %3495 = vpow2.f32 %v3064_v22  ;;  %v3280_v22 = vld [vmem:[%s5775_s8 + $0x38] sm:$0xff]  }
 0x93f   :  { %v3490_v52 = vpop.eup %3489 }
 0x940   :  { %v2506_v13 = vadd.f32 1.0, %v3490_v52  ;;  %v3492_v40 = vpop.eup %3491 }
 0x941   :  { %v2507_v41 = vadd.f32 1.0, %v3492_v40  ;;  %v3494_v12 = vpop.eup %3493 }
 0x942   :  { %3497 = vrcp.f32 %v2506_v13  ;;  %v3496_v18 = vpop.eup %3495 }
 0x943   :  { %3499 = vrcp.f32 %v2507_v41  ;;  %v2508_v11 = vadd.f32 1.0, %v3496_v18 }
 0x945   :  { %3501 = vrcp.f32 %v2508_v11 }
 0x94c   :  { %v3498_v20 = vpop.eup %3497 }
 0x94d   :  { %v2517_v61 = vmul.f32 %v3498_v20, %v3494_v12  ;;  %v3500_v55 = vpop.eup %3499 }
 0x94e   :  { %v2516_v31 = vmul.f32 %v3500_v55, %v5572_v60 }
 0x94f   :  { %v3502_v42 = vpop.eup %3501 }
 0x950   :  { %v2560_v54 = vpop.f32.mrb[72].mxu0  ;;  %v2601_v38 = vpop.f32.mrb[72].mxu1  ;;  %v5684_v17 = vadd.f32 %v2517_v61, %v2516_v31 }
 0x951   :  { %v2608_v16 = vadd.f32 %v2560_v54, %v6625_v26  ;;  %v2610_v0 = vadd.f32 %v2601_v38, %v6626_v50  ;;  %v2562_v4 = vpop.f32.mrb[73].mxu0  ;;  %v2603_v15 = vpop.f32.mrb[73].mxu1 }
 0x952   :  { %v2609_v25 = vadd.f32 %v2562_v4, %v6627_v43  ;;  %v2611_v29 = vadd.f32 %v2603_v15, %v6628_v28  ;;  %v2564_v57 = vpop.f32.mrb[74].mxu0  ;;  %v2605_v33 = vpop.f32.mrb[74].mxu1  ;;  %3503 = vtanh.f32 %v5684_v17 }
 0x953   :  { %v3065_v34 = vmul.f32 -1.442695, %v2608_v16  ;;  %v2565_v36 = vpop.f32.mrb[75].mxu0  ;;  %v2606_v60 = vpop.f32.mrb[75].mxu1  ;;  %v3067_v3 = vmul.f32 -1.442695, %v2610_v0 }
 0x954   :  { %v3066_v37 = vmul.f32 -1.442695, %v2609_v25  ;;  %v3071_v60 = vld [vmem:[%s5776_s9] ss:$0 sm:$0xff]  ;;  %s3910_s9 = smov [#allocation13]  }
 0x955   :  { %3505 = vpow2.f32 %v3065_v34  ;;  %s2894_s23 = sshll.u32 %s3910_s9, 4  ;;  %s5726_s23 = int_to_ptr.vmem [resolvable:$true] %s2894_s23 }
 0x956   :  { %3507 = vpow2.f32 %v3066_v37 }
 0x957   :  { %3509 = vtanh.f32 %v2611_v29 }
 0x958   :  { %3511 = vpow2.f32 %v3067_v3 }
 0x95c   :  { %v3504_v45 = vpop.eup %3503 }
 0x95d   :  { %v2520_v47 = vmul.f32 %v3504_v45, %v3502_v42 }
 0x95f   :  { %v3506_v9 = vpop.eup %3505  ;;  %v2637_v48 = vpack.c.bf16 %v2520_v47, %v2520_v47 }
 0x960   :  { %v2621_v5 = vadd.f32 1.0, %v3506_v9  ;;  %v3508_v6 = vpop.eup %3507 }
 0x961   :  { %v2622_v27 = vadd.f32 1.0, %v3508_v6  ;;  %2670 = vmatprep.mubr.bf16.mxu0 %v2637_v48  ;;  %2711 = vmatprep.mubr.bf16.mxu1 %v2637_v48  ;;  %v3510_v39 = vpop.eup %3509 }
 0x962   :  { %3513 = vrcp.f32 %v2621_v5  ;;  %v3512_v58 = vpop.eup %3511 }
 0x963   :  { %3515 = vrcp.f32 %v2622_v27  ;;  %v2623_v8 = vadd.f32 1.0, %v3512_v58 }
 0x965   :  { %3517 = vrcp.f32 %v2623_v8 }
 0x96c   :  { %v3514_v1 = vpop.eup %3513 }
 0x96d   :  { %v2632_v46 = vmul.f32 %v3514_v1, %v3510_v39  ;;  %v3516_v63 = vpop.eup %3515 }
 0x96e   :  { %v2631_v2 = vmul.f32 %v3516_v63, %v5580_v7  ;;  %v3274_v7 = vld [vmem:[%s5775_s8 + $0x8] sm:$0xff]  }
 0x96f   :  { %v3518_v24 = vpop.eup %3517 }
 0x970   :  { %v2633_v44 = vadd.f32 %v2632_v46, %v2631_v2 }
 0x972   :  { %3519 = vtanh.f32 %v2633_v44  ;;  %2745 = vst [vmem:[#allocation13] sm:$0xff] %v2633_v44 }
 0x97c   :  { %v3520_v53 = vpop.eup %3519 }
 0x97d   :  { %v2635_v49 = vmul.f32 %v3520_v53, %v3518_v24 }
 0x97f   :  { %v2636_v19 = vpack.c.bf16 %v2635_v49, %v2635_v49  ;;  %2744 = vst [vmem:[#allocation12] sm:$0xff] %v2635_v49 }
 0x981   :  { %2671 = vmatmul.mubr.bf16.vlgmr.msra.gmra.mrb[76].mxu0 %v2636_v19  ;;  %2712 = vmatmul.mubr.bf16.vlgmr.msra.gmra.mrb[76].mxu1 %v2636_v19 }
 0x982   :  { %3090 = vmatpush3.bf16.msra.mxu0 %v3273_v35  ;;  %3105 = vmatprep.mubr.msk.bf16.mxu0 %vm3908_vm1, %v3907_v30 }
 0x983   :  { %3091 = vmatprep.subr.bf16.mxu0 %v3907_v30 }
 0x986   :  { %3092 = vmatpush3.bf16.msra.mxu0 %v3274_v7 }
 0x987   :  { %3093 = vmatprep.subr.bf16.mxu0 %v3907_v30 }
 0x98a   :  { %3094 = vmatpush3.bf16.msra.mxu0 %v3275_v14 }
 0x98b   :  { %3095 = vmatprep.subr.bf16.mxu0 %v3907_v30 }
 0x98e   :  { %3096 = vmatpush3.bf16.msra.mxu0 %v3276_v10 }
 0x98f   :  { %3097 = vmatprep.subr.bf16.mxu0 %v3907_v30 }
 0x992   :  { %3098 = vmatpush3.bf16.msra.mxu0 %v3277_v21 }
 0x993   :  { %3099 = vmatprep.subr.bf16.mxu0 %v3907_v30 }
 0x996   :  { %3100 = vmatpush3.bf16.msra.mxu0 %v3278_v32 }
 0x997   :  { %3101 = vmatprep.subr.bf16.mxu0 %v3907_v30 }
 0x99a   :  { %3102 = vmatpush3.bf16.msra.mxu0 %v3279_v56 }
 0x99b   :  { %3103 = vmatprep.subr.bf16.mxu0 %v3907_v30 }
 0x99e   :  { %3104 = vmatpush3.bf16.msra.mxu0 %v3280_v22 }
 0xa54   :  { %v2672_v52 = vpop.f32.mrb[76].mxu0  ;;  %v2713_v13 = vpop.f32.mrb[76].mxu1 }
 0xa55   :  { %v2673_v40 = vadd.f32 %v2672_v52, %v6621_v51  ;;  %v2674_v41 = vpop.f32.mrb[77].mxu0  ;;  %v2715_v12 = vpop.f32.mrb[77].mxu1  ;;  %v2714_v38 = vadd.f32 %v2713_v13, %v6623_v23 }
 0xa56   :  { %v2675_v18 = vadd.f32 %v2674_v41, %v6622_v62  ;;  %v2676_v20 = vpop.f32.mrb[78].mxu0  ;;  %v2717_v61 = vpop.f32.mrb[78].mxu1  ;;  %v2716_v26 = vadd.f32 %v2715_v12, %v6624_v59 }
 0xa57   :  { %v3068_v55 = vmul.f32 -1.442695, %v2673_v40  ;;  %v2677_v11 = vpop.f32.mrb[79].mxu0  ;;  %v2718_v31 = vpop.f32.mrb[79].mxu1  ;;  %v3070_v16 = vmul.f32 -1.442695, %v2714_v38 }
 0xa58   :  { %v3069_v54 = vmul.f32 -1.442695, %v2675_v18 }
 0xa59   :  { %3521 = vpow2.f32 %v3068_v55 }
 0xa5a   :  { %3523 = vpow2.f32 %v3069_v54 }
 0xa5b   :  { %3525 = vtanh.f32 %v2716_v26 }
 0xa5c   :  { %3527 = vpow2.f32 %v3070_v16 }
 0xa63   :  { %v3522_v50 = vpop.eup %3521 }
 0xa64   :  { %v2729_v0 = vadd.f32 1.0, %v3522_v50  ;;  %v3524_v51 = vpop.eup %3523 }
 0xa65   :  { %v2730_v62 = vadd.f32 1.0, %v3524_v51  ;;  %v3526_v4 = vpop.eup %3525 }
 0xa66   :  { %3529 = vrcp.f32 %v2729_v0  ;;  %v3528_v15 = vpop.eup %3527 }
 0xa67   :  { %3531 = vrcp.f32 %v2730_v62  ;;  %v2731_v29 = vadd.f32 1.0, %v3528_v15 }
 0xa69   :  { %3533 = vrcp.f32 %v2731_v29 }
 0xa70   :  { %v3530_v43 = vpop.eup %3529 }
 0xa71   :  { %v2740_v25 = vmul.f32 %v3530_v43, %v3526_v4  ;;  %v3532_v28 = vpop.eup %3531 }
 0xa72   :  { %v2739_v57 = vmul.f32 %v3532_v28, %v5684_v17 }
 0xa73   :  { %v3534_v59 = vpop.eup %3533 }
 0xa74   :  { %v2741_v23 = vadd.f32 %v2740_v25, %v2739_v57 }
 0xa76   :  { %3535 = vtanh.f32 %v2741_v23  ;;  %2749 = vst [vmem:[#allocation13 + $0x8] sm:$0xff] %v2741_v23 }
 0xa80   :  { %v3536_v33 = vpop.eup %3535 }
 0xa81   :  { %v2743_v34 = vmul.f32 %v3536_v33, %v3534_v59 }
 0xa83   :  { %v2750_v36 = vpack.c.bf16 %v2743_v34, %v2743_v34  ;;  %2747 = vst [vmem:[#allocation12 + $0x8] sm:$0xff] %v2743_v34 }
 0xa85   :  { %3106 = vmatmul.mubr.bf16.vlgmr.msra.gmra.mrb[80].mxu0 %v2750_v36 }
 0xb58   :  { %v2856_v37 = vpop.f32.mrb[80].mxu0 }
 0xb59   :  { %v2857_v42 = vadd.f32 %v3071_v60, %v2856_v37  ;;  %v3107_v45 = vpop.f32.mrb[81].mxu0 }
 0xb5a   :  { %v2859_v3 = vpop.f32.mrb[82].mxu0 }
 0xb5b   :  { %v3108_v17 = vpop.f32.mrb[83].mxu0  ;;  %v2863_v47 = vsel %vm2862_vm2, %v2857_v42, -inf }
 0xb5c   :  { %2864 = vmax.xlane.f32.xlu0 %v2863_v47 }
 0xbe9   :  { %v2865_v9 = vpop.xlane.xlu0 %2864 }
 0xbea   :  { %v2866_v5 = vsub.f32 %v2857_v42, %v2865_v9 }
 0xbec   :  { %v2867_v48 = vmul.f32 1.442695, %v2866_v5 }
 0xbee   :  { %3537 = vpow2.f32 %v2867_v48 }
 0xbf8   :  { %v3538_v6 = vpop.eup %3537 }
 0xbf9   :  { %v2869_v27 = vsel %vm2862_vm2, %v3538_v6, 0.0 }
 0xbfa   :  { %2870 = vadd.xlane.f32.xlu0 %v2869_v27 }
 0xbfb   :  { %3854 = shalt.err (!%p3851_p2)
}
 0xbfc   :  { %s3855_s27 = scalar_lea.hbm %s5778_s11, 256 }
 0xbfd   :  { %p3856_p3 = scmp.ne.s32.totalorder %s5778_s11, %s3855_s27  ;;  %p3859_p4 = scmp.lt.u32.totalorder %s3855_s27, %s5778_s11 }
 0xbff   :  { %p3861_p5 = pnand %p3859_p4, %p3856_p3 }
 0xc01   :  { %3864 = shalt.err (!%p3861_p5)
}
 0xc02   :  { %2888 = dma.vmem_to_hbm [thread:$0]  %s2883_s0, 256, %s5778_s11, [#allocation5], %s3904_s3, %s3904_s3, %s3905_s22  }
 0xc03   :  { %s3865_s30 = scalar_lea.vmem %s5726_s23, 256  ;;  %p3870_p7 = scmp.lt.s32.totalorder %s5726_s23, %s5726_s23 }
 0xc04   :  { %p3866_p6 = scmp.ne.s32.totalorder %s5726_s23, %s3865_s30  ;;  %p3871_p8 = scmp.lt.s32.totalorder %s3865_s30, %s3865_s30 }
 0xc06   :  { %p3872_p9 = por %p3871_p8, %p3870_p7 }
 0xc08   :  { %p3873_p10 = pnand %p3872_p9, %p3866_p6 }
 0xc0a   :  { %3876 = shalt.err (!%p3873_p10)
}
 0xc0b   :  { %s3877_s15 = scalar_lea.hbm %s5779_s12, 256 }
 0xc0c   :  { %p3878_p11 = scmp.ne.s32.totalorder %s5779_s12, %s3877_s15  ;;  %p3881_p12 = scmp.lt.u32.totalorder %s3877_s15, %s5779_s12 }
 0xc0e   :  { %p3883_p13 = pnand %p3881_p12, %p3878_p11 }
 0xc10   :  { %3886 = shalt.err (!%p3883_p13)
}
 0xc11   :  { %2900 = dma.vmem_to_hbm [thread:$0]  %s5726_s23, 256, %s5779_s12, [#allocation14], %s3904_s3, %s3904_s3, %s3905_s22  }
 0xc87   :  { %v2871_v39 = vpop.xlane.xlu0 %2870 }
 0xc88   :  { %3539 = vrcp.f32 %v2871_v39 }
 0xc92   :  { %v3540_v58 = vpop.eup %3539 }
 0xc93   :  { %v2873_v1 = vmul.f32 %v3540_v58, %v3538_v6 }
 0xc95   :  { %2874 = vst.msk [vmem:[%s5777_s10] sm:$0xff] %vm2862_vm2, %v2873_v1 }
 0xc96   :  { %3893 = dma.done.wait [#allocation5], 256  }
 0xc97   :  { %3894 = vsyncadd [#allocation5], 4294967040 }
 0xc98   :  { %3895 = dma.done.wait [#allocation14], 256  }
 0xc99   :  { %3896 = vsyncadd [#allocation14], 4294967040 }
 0xc9a   :  { %2909 = vsyncpa [#allocation4], 1 }
 0xc9b   :  { %2910 = vsyncpa [#allocation7], 1 }
 0xc9c   :  { %2911 = vsyncpa [#allocation10], 1 }
 0xc9d   :  { %2912 = vsyncpa [#allocation5], 1 }
 0xc9e   :  { %2913 = vsyncpa [#allocation14], 1 }

</bundles_post_ra>
